<compile_context>
chip_gen: v5e
topology: v5e:2x2
jax: 0.10.0
libtpu: 0.0.40
codegen_flags: <defaults>
</compile_context>

<pallas_src>
import math

import jax
import jax.numpy as jnp
from jax.experimental import pallas as pl
from jax.experimental.pallas import tpu as pltpu

# ----------------------------- model hyper-params ---------------------------
B = 2
SEQ_LEN = 16          # L
PRED_LEN = 8          # P
ENC_IN = 8            # N (number of variables == number of "tokens")
D_MODEL = 64
N_HEADS = 8
D_HEAD = D_MODEL // N_HEADS
D_FF = 4 * D_MODEL
E_LAYERS = 3
EPS = 1e-5

BN = B * ENC_IN                    # batch-folded token rows            (16)
HBN = N_HEADS * BN                 # heads x batch-folded tokens        (128)
QKV_W = 128 + 2 * D_MODEL          # [Q | 0-pad | K | V] lanes (tile aligned) (256)
KV_W = 2 * D_MODEL                 # packed K|V lanes                   (128)
LVW_W = max(QKV_W, D_FF)           # packed wide per-layer bias rows
TAIL_W = max(PRED_LEN, ENC_IN, 1)


def _layernorm(x, g, b):
    mu = jnp.mean(x, axis=-1, keepdims=True)
    xc = x - mu
    var = jnp.mean(xc * xc, axis=-1, keepdims=True)
    return xc * jax.lax.rsqrt(var + EPS) * g + b


# --------------------------- fully fused forward kernel ----------------------
def fused_kernel(x_ref, w_emb_ref, wqkv_ref, wo_ref, w1_ref, w2_ref,
                 lvd_ref, lvw_ref, gvec_ref, w_proj_ref, tail_ref,
                 hmask_ref, group_ref, bmask_ref, out_ref):
    scale = 1.0 / math.sqrt(D_HEAD)

    gv = gvec_ref[...]                                       # (3, D)
    b_emb, g_f, b_f = gv[0:1, :], gv[1:2, :], gv[2:3, :]
    tl = tail_ref[...]                                       # (3, TAIL_W)
    b_proj = tl[0:1, 0:PRED_LEN]
    w_df = tl[1:2, 0:ENC_IN]
    b_df = tl[2:3, 0:1]

    # ---- series normalization + inverted embedding (Linear L -> D on x^T) ----
    w_emb = w_emb_ref[...]                                   # (L, D) bf16
    h_parts, mu_all, std_all = [], [], []
    for b in range(B):                                       # static, B=2
        xb = x_ref[b]                                        # (L, N)
        mu = jnp.mean(xb, axis=0, keepdims=True)             # (1, N)
        xc = xb - mu
        var = jnp.mean(xc * xc, axis=0, keepdims=True)       # unbiased=False
        mu_all.append(mu)
        std_all.append(jnp.sqrt(var + EPS))
        xn = xc * jax.lax.rsqrt(var + EPS)                   # (L, N)
        hb = jax.lax.dot_general(xn.astype(jnp.bfloat16), w_emb,
                                 (((0,), (0,)), ((), ())),
                                 preferred_element_type=jnp.float32)   # (N, D)
        h_parts.append(hb)
    h = jnp.concatenate(h_parts, axis=0) + b_emb             # (BN, D) f32

    # ---- precomputed attention masks (constants passed from host) -------------
    hmask = hmask_ref[...]                                   # (HBN, KV_W)
    group = group_ref[...]                                   # (HBN, HBN)
    bmask = bmask_ref[...]                                   # (BN, HBN)

    # ------------------------------ encoder layers -----------------------------
    for l in range(E_LAYERS):                                # static layer loop
        lv = lvd_ref[l]                                      # (6, D)
        bo, g1, be1, g2, be2, b2 = (lv[i:i + 1, :] for i in range(6))
        lw = lvw_ref[l]                                      # (2, LVW_W)
        bqkv = lw[0:1, 0:QKV_W]
        b1 = lw[1:2, 0:D_FF]

        # fused, lane-aligned QKV projection: [Q | 0 | K | V]
        qkv = jnp.dot(h.astype(jnp.bfloat16), wqkv_ref[l],
                      preferred_element_type=jnp.float32) + bqkv      # (BN, QKV_W)
        q_pad = qkv[:, 0:128]                                # Q in lanes 0:64, zeros after
        kv = qkv[:, 128:QKV_W]                               # K lanes 0:64, V lanes 64:128

        # block-diagonal (head x batch) K|V built with one tile + one mask multiply
        kv_bd = jnp.tile(kv, (N_HEADS, 1)) * hmask           # (HBN, KV_W)

        # scores for all heads / both samples in one matmul (V lanes killed by q pad)
        s = jax.lax.dot_general(q_pad, kv_bd, (((1,), (1,)), ((), ())),
                                preferred_element_type=jnp.float32) * scale   # (BN, HBN)
        p = jnp.exp(s - jnp.max(s, axis=-1, keepdims=True)) * bmask
        denom = jnp.dot(p, group, preferred_element_type=jnp.float32)         # (BN, HBN)
        p = p * pl.reciprocal(denom + (1.0 - bmask), approx=True)             # per-head softmax
        o_kv = jnp.dot(p, kv_bd, preferred_element_type=jnp.float32)          # (BN, KV_W)
        # out projection: zero rows of wo_ext discard the K half of o_kv
        attn = jnp.dot(o_kv.astype(jnp.bfloat16), wo_ref[l],
                       preferred_element_type=jnp.float32) + bo               # (BN, D)

        h1 = _layernorm(h + attn, g1, be1)                   # norm1
        # position-wise FFN (Conv1d kernel_size=1 == per-token Linear)
        y = jnp.dot(h1.astype(jnp.bfloat16), w1_ref[l],
                    preferred_element_type=jnp.float32) + b1
        y = jnp.maximum(y, 0.0)
        y = jnp.dot(y.astype(jnp.bfloat16), w2_ref[l],
                    preferred_element_type=jnp.float32) + b2
        h = _layernorm(h1 + y, g2, be2)                      # norm2

    # ---- final norm + projection + de-normalization + dense_feature ----------
    hf = _layernorm(h, g_f, b_f)                             # encoder final LayerNorm
    proj = jnp.dot(hf.astype(jnp.bfloat16), w_proj_ref[...],
                   preferred_element_type=jnp.float32) + b_proj               # (BN, P)

    rows = []
    for b in range(B):
        proj_b = proj[b * ENC_IN:(b + 1) * ENC_IN, :]        # (N, P)
        sw = std_all[b] * w_df                               # (1, N)
        # out[t] = sum_n (proj[n,t]*std[n] + mu[n]) * w_df[n] + b_df
        row = jnp.dot(sw, proj_b, preferred_element_type=jnp.float32)         # (1, P)
        row = row + jnp.sum(mu_all[b] * w_df, axis=1, keepdims=True) + b_df
        rows.append(row)
    out_ref[...] = jnp.concatenate(rows, axis=0)             # (B, P)


# ------------------------------- wrapper --------------------------------------
def _const_spec(shape):
    n = len(shape)
    return pl.BlockSpec(shape, lambda i, _n=n: (0,) * _n)


_PARAM_ORDER = ["w_emb", "wqkv", "wo", "w1", "w2", "lvd", "lvw",
                "gvec", "w_proj", "tail", "hmask", "group", "bmask"]


def model_forward(x, params):
    p = params
    in_specs = [pl.BlockSpec((B, SEQ_LEN, ENC_IN), lambda i: (0, 0, 0))]
    in_specs += [_const_spec(p[name].shape) for name in _PARAM_ORDER]
    out = pl.pallas_call(
        fused_kernel,
        out_shape=jax.ShapeDtypeStruct((B, PRED_LEN), jnp.float32),
        grid=(1,),
        in_specs=in_specs,
        out_specs=pl.BlockSpec((B, PRED_LEN), lambda i: (0, 0)),
        compiler_params=pltpu.CompilerParams(dimension_semantics=("arbitrary",)),
    )(x, *[p[name] for name in _PARAM_ORDER])
    # TODO(synk): on v7x the B=2 samples could be split across the 2 TensorCores via
    # core-parallel semantics; here the batch is folded into one fused invocation.
    return out                                                # (B, PRED_LEN)


# --------------------------- parameter init ----------------------------------
def _dense(key, fan_in, fan_out):
    # torch nn.Linear default init, stored as (in, out) so kernels do x @ W + b
    k1, k2 = jax.random.split(key)
    bound = 1.0 / math.sqrt(fan_in)
    w = jax.random.uniform(k1, (fan_in, fan_out), jnp.float32, -bound, bound)
    b = jax.random.uniform(k2, (1, fan_out), jnp.float32, -bound, bound)
    return w, b


def _init_layer(key):
    ks = jax.random.split(key, 6)
    wq, bq = _dense(ks[0], D_MODEL, D_MODEL)
    wk, bk = _dense(ks[1], D_MODEL, D_MODEL)
    wv, bv = _dense(ks[2], D_MODEL, D_MODEL)
    wo, bo = _dense(ks[3], D_MODEL, D_MODEL)
    w1, b1 = _dense(ks[4], D_MODEL, D_FF)     # conv1 (kernel_size=1)
    w2, b2 = _dense(ks[5], D_FF, D_MODEL)     # conv2 (kernel_size=1)
    pad_w = jnp.zeros((D_MODEL, 128 - D_MODEL), jnp.float32)
    pad_b = jnp.zeros((1, 128 - D_MODEL), jnp.float32)
    wqkv = jnp.concatenate([wq, pad_w, wk, wv], axis=1)        # (D, QKV_W)  Q|0|K|V
    bqkv = jnp.concatenate([bq, pad_b, bk, bv], axis=1)        # (1, QKV_W)
    wo_ext = jnp.concatenate(                                   # (KV_W, D): zero rows eat K half
        [jnp.zeros((D_MODEL, D_MODEL), jnp.float32), wo], axis=0)
    g1 = jnp.ones((1, D_MODEL), jnp.float32)
    be1 = jnp.zeros((1, D_MODEL), jnp.float32)
    g2 = jnp.ones((1, D_MODEL), jnp.float32)
    be2 = jnp.zeros((1, D_MODEL), jnp.float32)
    lvd = jnp.concatenate([bo, g1, be1, g2, be2, b2], axis=0)  # (6, D)

    def _padw(v):
        return jnp.pad(v, ((0, 0), (0, LVW_W - v.shape[1])))
    lvw = jnp.concatenate([_padw(bqkv), _padw(b1)], axis=0)    # (2, LVW_W)
    return dict(wqkv=wqkv, wo=wo_ext, w1=w1, w2=w2, lvd=lvd, lvw=lvw)


def init_params(key):
    ks = jax.random.split(key, E_LAYERS + 3)
    w_emb, b_emb = _dense(ks[0], SEQ_LEN, D_MODEL)        # DataEmbedding_inverted
    w_proj, b_proj = _dense(ks[1], D_MODEL, PRED_LEN)     # projection
    w_df_io, b_df = _dense(ks[2], ENC_IN, 1)              # dense_feature
    layers = [_init_layer(ks[3 + i]) for i in range(E_LAYERS)]
    stacked = {name: jnp.stack([lyr[name] for lyr in layers], axis=0)
               for name in layers[0]}

    g_f = jnp.ones((1, D_MODEL), jnp.float32)             # encoder final LayerNorm
    b_f = jnp.zeros((1, D_MODEL), jnp.float32)
    gvec = jnp.concatenate([b_emb, g_f, b_f], axis=0)     # (3, D)

    def _padt(v):
        return jnp.pad(v, ((0, 0), (0, TAIL_W - v.shape[1])))
    tail = jnp.concatenate([_padt(b_proj), _padt(w_df_io.T), _padt(b_df)],
                           axis=0)                        # (3, TAIL_W)

    # ---- precomputed block-diagonal attention masks (constants) --------------
    row = jnp.arange(HBN)
    head_of_row = row // BN
    batch_of_row = (row % BN) // ENC_IN
    lane = jnp.arange(KV_W)
    head_of_lane = (lane % D_MODEL) // D_HEAD
    hmask = (head_of_row[:, None] == head_of_lane[None, :]).astype(jnp.float32)
    group = ((head_of_row[:, None] == head_of_row[None, :])
             & (batch_of_row[:, None] == batch_of_row[None, :])).astype(jnp.float32)
    tok = jnp.arange(BN)
    bmask = ((tok // ENC_IN)[:, None] == batch_of_row[None, :]).astype(jnp.float32)

    bf16 = jnp.bfloat16
    return dict(
        w_emb=w_emb.astype(bf16),
        wqkv=stacked["wqkv"].astype(bf16),
        wo=stacked["wo"].astype(bf16),
        w1=stacked["w1"].astype(bf16),
        w2=stacked["w2"].astype(bf16),
        lvd=stacked["lvd"],
        lvw=stacked["lvw"],
        gvec=gvec,
        w_proj=w_proj.astype(bf16),
        tail=tail,
        hmask=hmask, group=group, bmask=bmask)


# --------------------------------- main ---------------------------------------
if __name__ == "__main__":
    key = jax.random.PRNGKey(0)
    kx, kp = jax.random.split(key)
    x = jax.random.normal(kx, (B, SEQ_LEN, ENC_IN), dtype=jnp.float32)
    params = init_params(kp)

    out = jax.jit(model_forward)(x, params)
    out = jax.block_until_ready(out)
    assert out.shape == (B, PRED_LEN), out.shape
    assert bool(jnp.all(jnp.isfinite(out)))
    print("KERNEL_OK")
</pallas_src>

<mosaic_0001>
module attributes {stable_mosaic.version = 11 : i64} {
  func.func @fused_kernel(%arg0: i32, %arg1: memref<2x16x8xf32, #tpu.memory_space<vmem>>, %arg2: memref<16x64xbf16, #tpu.memory_space<vmem>>, %arg3: memref<3x64x256xbf16, #tpu.memory_space<vmem>>, %arg4: memref<3x128x64xbf16, #tpu.memory_space<vmem>>, %arg5: memref<3x64x256xbf16, #tpu.memory_space<vmem>>, %arg6: memref<3x256x64xbf16, #tpu.memory_space<vmem>>, %arg7: memref<3x6x64xf32, #tpu.memory_space<vmem>>, %arg8: memref<3x2x256xf32, #tpu.memory_space<vmem>>, %arg9: memref<3x64xf32, #tpu.memory_space<vmem>>, %arg10: memref<64x8xbf16, #tpu.memory_space<vmem>>, %arg11: memref<3x8xf32, #tpu.memory_space<vmem>>, %arg12: memref<128x128xf32, #tpu.memory_space<vmem>>, %arg13: memref<128x128xf32, #tpu.memory_space<vmem>>, %arg14: memref<16x128xf32, #tpu.memory_space<vmem>>, %arg15: memref<2x8xf32, #tpu.memory_space<vmem>>) attributes {dimension_semantics = [#tpu.dimension_semantics<arbitrary>], iteration_bounds = array<i64: 1>, scalar_prefetch = 0 : i64, scratch_operands = 0 : i64, tpu.core_type = #tpu.core_type<tc>, window_params = [{pipeline_mode = #tpu.pipeline_mode<synchronous>, transform_indices = @transform_0, window_bounds = array<i64: 2, 16, 8>}, {pipeline_mode = #tpu.pipeline_mode<synchronous>, transform_indices = @transform_1, window_bounds = array<i64: 16, 64>}, {pipeline_mode = #tpu.pipeline_mode<synchronous>, transform_indices = @transform_2, window_bounds = array<i64: 3, 64, 256>}, {pipeline_mode = #tpu.pipeline_mode<synchronous>, transform_indices = @transform_3, window_bounds = array<i64: 3, 128, 64>}, {pipeline_mode = #tpu.pipeline_mode<synchronous>, transform_indices = @transform_4, window_bounds = array<i64: 3, 64, 256>}, {pipeline_mode = #tpu.pipeline_mode<synchronous>, transform_indices = @transform_5, window_bounds = array<i64: 3, 256, 64>}, {pipeline_mode = #tpu.pipeline_mode<synchronous>, transform_indices = @transform_6, window_bounds = array<i64: 3, 6, 64>}, {pipeline_mode = #tpu.pipeline_mode<synchronous>, transform_indices = @transform_7, window_bounds = array<i64: 3, 2, 256>}, {pipeline_mode = #tpu.pipeline_mode<synchronous>, transform_indices = @transform_8, window_bounds = array<i64: 3, 64>}, {pipeline_mode = #tpu.pipeline_mode<synchronous>, transform_indices = @transform_9, window_bounds = array<i64: 64, 8>}, {pipeline_mode = #tpu.pipeline_mode<synchronous>, transform_indices = @transform_10, window_bounds = array<i64: 3, 8>}, {pipeline_mode = #tpu.pipeline_mode<synchronous>, transform_indices = @transform_11, window_bounds = array<i64: 128, 128>}, {pipeline_mode = #tpu.pipeline_mode<synchronous>, transform_indices = @transform_12, window_bounds = array<i64: 128, 128>}, {pipeline_mode = #tpu.pipeline_mode<synchronous>, transform_indices = @transform_13, window_bounds = array<i64: 16, 128>}, {pipeline_mode = #tpu.pipeline_mode<synchronous>, transform_indices = @transform_14, window_bounds = array<i64: 2, 8>}]} {
    %c0 = arith.constant 0 : index
    %c0_0 = arith.constant 0 : index
    %0 = vector.load %arg9[%c0, %c0_0] : memref<3x64xf32, #tpu.memory_space<vmem>>, vector<3x64xf32>
    %1 = vector.extract_strided_slice %0 {offsets = [0, 0], sizes = [1, 64], strides = [1, 1]} : vector<3x64xf32> to vector<1x64xf32>
    %2 = vector.extract_strided_slice %0 {offsets = [1, 0], sizes = [1, 64], strides = [1, 1]} : vector<3x64xf32> to vector<1x64xf32>
    %3 = vector.extract_strided_slice %0 {offsets = [2, 0], sizes = [1, 64], strides = [1, 1]} : vector<3x64xf32> to vector<1x64xf32>
    %c0_1 = arith.constant 0 : index
    %c0_2 = arith.constant 0 : index
    %4 = vector.load %arg11[%c0_1, %c0_2] : memref<3x8xf32, #tpu.memory_space<vmem>>, vector<3x8xf32>
    %5 = vector.extract_strided_slice %4 {offsets = [0, 0], sizes = [1, 8], strides = [1, 1]} : vector<3x8xf32> to vector<1x8xf32>
    %6 = vector.extract_strided_slice %4 {offsets = [1, 0], sizes = [1, 8], strides = [1, 1]} : vector<3x8xf32> to vector<1x8xf32>
    %7 = vector.extract_strided_slice %4 {offsets = [2, 0], sizes = [1, 1], strides = [1, 1]} : vector<3x8xf32> to vector<1x1xf32>
    %c0_3 = arith.constant 0 : index
    %c0_4 = arith.constant 0 : index
    %8 = vector.load %arg2[%c0_3, %c0_4] : memref<16x64xbf16, #tpu.memory_space<vmem>>, vector<16x64xbf16>
    %c0_5 = arith.constant 0 : index
    %c0_6 = arith.constant 0 : index
    %c0_7 = arith.constant 0 : index
    %9 = vector.load %arg1[%c0_5, %c0_6, %c0_7] : memref<2x16x8xf32, #tpu.memory_space<vmem>>, vector<1x16x8xf32>
    %10 = vector.shape_cast %9 : vector<1x16x8xf32> to vector<16x8xf32>
    %cst = arith.constant dense<0.000000e+00> : vector<8xf32>
    %11 = vector.multi_reduction <add>, %10, %cst [0] : vector<16x8xf32> to vector<8xf32>
    %12 = vector.shape_cast %11 : vector<8xf32> to vector<1x8xf32>
    %cst_8 = arith.constant 1.600000e+01 : f32
    %13 = vector.broadcast %cst_8 : f32 to vector<1x8xf32>
    %14 = arith.divf %12, %13 : vector<1x8xf32>
    %15 = vector.broadcast %14 : vector<1x8xf32> to vector<16x8xf32>
    %16 = arith.subf %10, %15 : vector<16x8xf32>
    %17 = arith.mulf %16, %16 : vector<16x8xf32>
    %cst_9 = arith.constant dense<0.000000e+00> : vector<8xf32>
    %18 = vector.multi_reduction <add>, %17, %cst_9 [0] : vector<16x8xf32> to vector<8xf32>
    %19 = vector.shape_cast %18 : vector<8xf32> to vector<1x8xf32>
    %cst_10 = arith.constant 1.600000e+01 : f32
    %20 = vector.broadcast %cst_10 : f32 to vector<1x8xf32>
    %21 = arith.divf %19, %20 : vector<1x8xf32>
    %cst_11 = arith.constant 9.99999974E-6 : f32
    %22 = vector.broadcast %cst_11 : f32 to vector<1x8xf32>
    %23 = arith.addf %21, %22 : vector<1x8xf32>
    %24 = math.sqrt %23 : vector<1x8xf32>
    %cst_12 = arith.constant 9.99999974E-6 : f32
    %25 = vector.broadcast %cst_12 : f32 to vector<1x8xf32>
    %26 = arith.addf %21, %25 : vector<1x8xf32>
    %27 = math.rsqrt %26 : vector<1x8xf32>
    %28 = vector.broadcast %27 : vector<1x8xf32> to vector<16x8xf32>
    %29 = arith.mulf %16, %28 : vector<16x8xf32>
    %30 = arith.truncf %29 : vector<16x8xf32> to vector<16x8xbf16>
    %cst_13 = arith.constant dense<0.000000e+00> : vector<8x64xf32>
    %31 = tpu.matmul %30, %8, %cst_13 {dimension_numbers = #tpu.dot_dimension_numbers<[0], [0], [1], [1], [0, 1, 1, 1], [], []>} : vector<16x8xbf16>, vector<16x64xbf16>, vector<8x64xf32> -> vector<8x64xf32>
    %c1 = arith.constant 1 : index
    %c0_14 = arith.constant 0 : index
    %c0_15 = arith.constant 0 : index
    %32 = vector.load %arg1[%c1, %c0_14, %c0_15] : memref<2x16x8xf32, #tpu.memory_space<vmem>>, vector<1x16x8xf32>
    %33 = vector.shape_cast %32 : vector<1x16x8xf32> to vector<16x8xf32>
    %cst_16 = arith.constant dense<0.000000e+00> : vector<8xf32>
    %34 = vector.multi_reduction <add>, %33, %cst_16 [0] : vector<16x8xf32> to vector<8xf32>
    %35 = vector.shape_cast %34 : vector<8xf32> to vector<1x8xf32>
    %cst_17 = arith.constant 1.600000e+01 : f32
    %36 = vector.broadcast %cst_17 : f32 to vector<1x8xf32>
    %37 = arith.divf %35, %36 : vector<1x8xf32>
    %38 = vector.broadcast %37 : vector<1x8xf32> to vector<16x8xf32>
    %39 = arith.subf %33, %38 : vector<16x8xf32>
    %40 = arith.mulf %39, %39 : vector<16x8xf32>
    %cst_18 = arith.constant dense<0.000000e+00> : vector<8xf32>
    %41 = vector.multi_reduction <add>, %40, %cst_18 [0] : vector<16x8xf32> to vector<8xf32>
    %42 = vector.shape_cast %41 : vector<8xf32> to vector<1x8xf32>
    %cst_19 = arith.constant 1.600000e+01 : f32
    %43 = vector.broadcast %cst_19 : f32 to vector<1x8xf32>
    %44 = arith.divf %42, %43 : vector<1x8xf32>
    %cst_20 = arith.constant 9.99999974E-6 : f32
    %45 = vector.broadcast %cst_20 : f32 to vector<1x8xf32>
    %46 = arith.addf %44, %45 : vector<1x8xf32>
    %47 = math.sqrt %46 : vector<1x8xf32>
    %cst_21 = arith.constant 9.99999974E-6 : f32
    %48 = vector.broadcast %cst_21 : f32 to vector<1x8xf32>
    %49 = arith.addf %44, %48 : vector<1x8xf32>
    %50 = math.rsqrt %49 : vector<1x8xf32>
    %51 = vector.broadcast %50 : vector<1x8xf32> to vector<16x8xf32>
    %52 = arith.mulf %39, %51 : vector<16x8xf32>
    %53 = arith.truncf %52 : vector<16x8xf32> to vector<16x8xbf16>
    %cst_22 = arith.constant dense<0.000000e+00> : vector<8x64xf32>
    %54 = tpu.matmul %53, %8, %cst_22 {dimension_numbers = #tpu.dot_dimension_numbers<[0], [0], [1], [1], [0, 1, 1, 1], [], []>} : vector<16x8xbf16>, vector<16x64xbf16>, vector<8x64xf32> -> vector<8x64xf32>
    %55 = tpu.concatenate %31, %54 in 0 : vector<8x64xf32>, vector<8x64xf32> -> vector<16x64xf32>
    %56 = vector.broadcast %1 : vector<1x64xf32> to vector<16x64xf32>
    %57 = arith.addf %55, %56 : vector<16x64xf32>
    %c0_23 = arith.constant 0 : index
    %c0_24 = arith.constant 0 : index
    %58 = vector.load %arg12[%c0_23, %c0_24] : memref<128x128xf32, #tpu.memory_space<vmem>>, vector<128x128xf32>
    %c0_25 = arith.constant 0 : index
    %c0_26 = arith.constant 0 : index
    %59 = vector.load %arg13[%c0_25, %c0_26] : memref<128x128xf32, #tpu.memory_space<vmem>>, vector<128x128xf32>
    %c0_27 = arith.constant 0 : index
    %c0_28 = arith.constant 0 : index
    %60 = vector.load %arg14[%c0_27, %c0_28] : memref<16x128xf32, #tpu.memory_space<vmem>>, vector<16x128xf32>
    %c0_29 = arith.constant 0 : index
    %c0_30 = arith.constant 0 : index
    %c0_31 = arith.constant 0 : index
    %61 = vector.load %arg7[%c0_29, %c0_30, %c0_31] : memref<3x6x64xf32, #tpu.memory_space<vmem>>, vector<1x6x64xf32>
    %62 = vector.shape_cast %61 : vector<1x6x64xf32> to vector<6x64xf32>
    %63 = vector.extract_strided_slice %62 {offsets = [0, 0], sizes = [1, 64], strides = [1, 1]} : vector<6x64xf32> to vector<1x64xf32>
    %64 = vector.extract_strided_slice %62 {offsets = [1, 0], sizes = [1, 64], strides = [1, 1]} : vector<6x64xf32> to vector<1x64xf32>
    %65 = vector.extract_strided_slice %62 {offsets = [2, 0], sizes = [1, 64], strides = [1, 1]} : vector<6x64xf32> to vector<1x64xf32>
    %66 = vector.extract_strided_slice %62 {offsets = [3, 0], sizes = [1, 64], strides = [1, 1]} : vector<6x64xf32> to vector<1x64xf32>
    %67 = vector.extract_strided_slice %62 {offsets = [4, 0], sizes = [1, 64], strides = [1, 1]} : vector<6x64xf32> to vector<1x64xf32>
    %68 = vector.extract_strided_slice %62 {offsets = [5, 0], sizes = [1, 64], strides = [1, 1]} : vector<6x64xf32> to vector<1x64xf32>
    %c0_32 = arith.constant 0 : index
    %c0_33 = arith.constant 0 : index
    %c0_34 = arith.constant 0 : index
    %69 = vector.load %arg8[%c0_32, %c0_33, %c0_34] : memref<3x2x256xf32, #tpu.memory_space<vmem>>, vector<1x2x256xf32>
    %70 = vector.shape_cast %69 : vector<1x2x256xf32> to vector<2x256xf32>
    %71 = vector.extract_strided_slice %70 {offsets = [0, 0], sizes = [1, 256], strides = [1, 1]} : vector<2x256xf32> to vector<1x256xf32>
    %72 = vector.extract_strided_slice %70 {offsets = [1, 0], sizes = [1, 256], strides = [1, 1]} : vector<2x256xf32> to vector<1x256xf32>
    %73 = arith.truncf %57 : vector<16x64xf32> to vector<16x64xbf16>
    %c0_35 = arith.constant 0 : index
    %c0_36 = arith.constant 0 : index
    %c0_37 = arith.constant 0 : index
    %74 = vector.load %arg3[%c0_35, %c0_36, %c0_37] : memref<3x64x256xbf16, #tpu.memory_space<vmem>>, vector<1x64x256xbf16>
    %75 = vector.shape_cast %74 : vector<1x64x256xbf16> to vector<64x256xbf16>
    %cst_38 = arith.constant dense<0.000000e+00> : vector<16x256xf32>
    %76 = tpu.matmul %73, %75, %cst_38 {dimension_numbers = #tpu.dot_dimension_numbers<[1], [0], [0], [1], [0, 0, 1, 1], [], []>} : vector<16x64xbf16>, vector<64x256xbf16>, vector<16x256xf32> -> vector<16x256xf32>
    %77 = vector.broadcast %71 : vector<1x256xf32> to vector<16x256xf32>
    %78 = arith.addf %76, %77 : vector<16x256xf32>
    %79 = vector.extract_strided_slice %78 {offsets = [0, 0], sizes = [16, 128], strides = [1, 1]} : vector<16x256xf32> to vector<16x128xf32>
    %80 = vector.extract_strided_slice %78 {offsets = [0, 128], sizes = [16, 128], strides = [1, 1]} : vector<16x256xf32> to vector<16x128xf32>
    %81 = tpu.concatenate %80, %80, %80, %80, %80, %80, %80, %80 in 0 : vector<16x128xf32>, vector<16x128xf32>, vector<16x128xf32>, vector<16x128xf32>, vector<16x128xf32>, vector<16x128xf32>, vector<16x128xf32>, vector<16x128xf32> -> vector<128x128xf32>
    %82 = arith.mulf %81, %58 : vector<128x128xf32>
    %cst_39 = arith.constant dense<0.000000e+00> : vector<16x128xf32>
    %83 = tpu.matmul %79, %82, %cst_39 {dimension_numbers = #tpu.dot_dimension_numbers<[1], [1], [0], [0], [0, 0, 1, 0], [], []>} : vector<16x128xf32>, vector<128x128xf32>, vector<16x128xf32> -> vector<16x128xf32>
    %cst_40 = arith.constant 0.353553385 : f32
    %84 = vector.broadcast %cst_40 : f32 to vector<16x128xf32>
    %85 = arith.mulf %83, %84 : vector<16x128xf32>
    %cst_41 = arith.constant dense<0xFF800000> : vector<16xf32>
    %86 = vector.multi_reduction <maximumf>, %85, %cst_41 [1] : vector<16x128xf32> to vector<16xf32>
    %87 = vector.shape_cast %86 : vector<16xf32> to vector<16x1xf32>
    %88 = vector.broadcast %87 : vector<16x1xf32> to vector<16x128xf32>
    %89 = arith.subf %85, %88 : vector<16x128xf32>
    %90 = math.exp %89 : vector<16x128xf32>
    %91 = arith.mulf %90, %60 : vector<16x128xf32>
    %cst_42 = arith.constant dense<0.000000e+00> : vector<16x128xf32>
    %92 = tpu.matmul %91, %59, %cst_42 {dimension_numbers = #tpu.dot_dimension_numbers<[1], [0], [0], [1], [0, 0, 1, 1], [], []>} : vector<16x128xf32>, vector<128x128xf32>, vector<16x128xf32> -> vector<16x128xf32>
    %cst_43 = arith.constant 1.000000e+00 : f32
    %93 = vector.broadcast %cst_43 : f32 to vector<16x128xf32>
    %94 = arith.subf %93, %60 : vector<16x128xf32>
    %95 = arith.addf %92, %94 : vector<16x128xf32>
    %96 = tpu.reciprocal %95 {approx = true} : vector<16x128xf32> -> vector<16x128xf32>
    %97 = arith.mulf %91, %96 : vector<16x128xf32>
    %cst_44 = arith.constant dense<0.000000e+00> : vector<16x128xf32>
    %98 = tpu.matmul %97, %82, %cst_44 {dimension_numbers = #tpu.dot_dimension_numbers<[1], [0], [0], [1], [0, 0, 1, 1], [], []>} : vector<16x128xf32>, vector<128x128xf32>, vector<16x128xf32> -> vector<16x128xf32>
    %99 = arith.truncf %98 : vector<16x128xf32> to vector<16x128xbf16>
    %c0_45 = arith.constant 0 : index
    %c0_46 = arith.constant 0 : index
    %c0_47 = arith.constant 0 : index
    %100 = vector.load %arg4[%c0_45, %c0_46, %c0_47] : memref<3x128x64xbf16, #tpu.memory_space<vmem>>, vector<1x128x64xbf16>
    %101 = vector.shape_cast %100 : vector<1x128x64xbf16> to vector<128x64xbf16>
    %cst_48 = arith.constant dense<0.000000e+00> : vector<16x64xf32>
    %102 = tpu.matmul %99, %101, %cst_48 {dimension_numbers = #tpu.dot_dimension_numbers<[1], [0], [0], [1], [0, 0, 1, 1], [], []>} : vector<16x128xbf16>, vector<128x64xbf16>, vector<16x64xf32> -> vector<16x64xf32>
    %103 = vector.broadcast %63 : vector<1x64xf32> to vector<16x64xf32>
    %104 = arith.addf %102, %103 : vector<16x64xf32>
    %105 = arith.addf %57, %104 : vector<16x64xf32>
    %cst_49 = arith.constant dense<0.000000e+00> : vector<16xf32>
    %106 = vector.multi_reduction <add>, %105, %cst_49 [1] : vector<16x64xf32> to vector<16xf32>
    %107 = vector.shape_cast %106 : vector<16xf32> to vector<16x1xf32>
    %cst_50 = arith.constant 6.400000e+01 : f32
    %108 = vector.broadcast %cst_50 : f32 to vector<16x1xf32>
    %109 = arith.divf %107, %108 : vector<16x1xf32>
    %110 = vector.broadcast %109 : vector<16x1xf32> to vector<16x64xf32>
    %111 = arith.subf %105, %110 : vector<16x64xf32>
    %112 = arith.mulf %111, %111 : vector<16x64xf32>
    %cst_51 = arith.constant dense<0.000000e+00> : vector<16xf32>
    %113 = vector.multi_reduction <add>, %112, %cst_51 [1] : vector<16x64xf32> to vector<16xf32>
    %114 = vector.shape_cast %113 : vector<16xf32> to vector<16x1xf32>
    %cst_52 = arith.constant 6.400000e+01 : f32
    %115 = vector.broadcast %cst_52 : f32 to vector<16x1xf32>
    %116 = arith.divf %114, %115 : vector<16x1xf32>
    %cst_53 = arith.constant 9.99999974E-6 : f32
    %117 = vector.broadcast %cst_53 : f32 to vector<16x1xf32>
    %118 = arith.addf %116, %117 : vector<16x1xf32>
    %119 = math.rsqrt %118 : vector<16x1xf32>
    %120 = vector.broadcast %119 : vector<16x1xf32> to vector<16x64xf32>
    %121 = arith.mulf %111, %120 : vector<16x64xf32>
    %122 = vector.broadcast %64 : vector<1x64xf32> to vector<16x64xf32>
    %123 = arith.mulf %121, %122 : vector<16x64xf32>
    %124 = vector.broadcast %65 : vector<1x64xf32> to vector<16x64xf32>
    %125 = arith.addf %123, %124 : vector<16x64xf32>
    %126 = arith.truncf %125 : vector<16x64xf32> to vector<16x64xbf16>
    %c0_54 = arith.constant 0 : index
    %c0_55 = arith.constant 0 : index
    %c0_56 = arith.constant 0 : index
    %127 = vector.load %arg5[%c0_54, %c0_55, %c0_56] : memref<3x64x256xbf16, #tpu.memory_space<vmem>>, vector<1x64x256xbf16>
    %128 = vector.shape_cast %127 : vector<1x64x256xbf16> to vector<64x256xbf16>
    %cst_57 = arith.constant dense<0.000000e+00> : vector<16x256xf32>
    %129 = tpu.matmul %126, %128, %cst_57 {dimension_numbers = #tpu.dot_dimension_numbers<[1], [0], [0], [1], [0, 0, 1, 1], [], []>} : vector<16x64xbf16>, vector<64x256xbf16>, vector<16x256xf32> -> vector<16x256xf32>
    %130 = vector.broadcast %72 : vector<1x256xf32> to vector<16x256xf32>
    %131 = arith.addf %129, %130 : vector<16x256xf32>
    %cst_58 = arith.constant 0.000000e+00 : f32
    %132 = vector.broadcast %cst_58 : f32 to vector<16x256xf32>
    %133 = arith.maximumf %131, %132 : vector<16x256xf32>
    %134 = arith.truncf %133 : vector<16x256xf32> to vector<16x256xbf16>
    %c0_59 = arith.constant 0 : index
    %c0_60 = arith.constant 0 : index
    %c0_61 = arith.constant 0 : index
    %135 = vector.load %arg6[%c0_59, %c0_60, %c0_61] : memref<3x256x64xbf16, #tpu.memory_space<vmem>>, vector<1x256x64xbf16>
    %136 = vector.shape_cast %135 : vector<1x256x64xbf16> to vector<256x64xbf16>
    %cst_62 = arith.constant dense<0.000000e+00> : vector<16x64xf32>
    %137 = tpu.matmul %134, %136, %cst_62 {dimension_numbers = #tpu.dot_dimension_numbers<[1], [0], [0], [1], [0, 0, 1, 1], [], []>} : vector<16x256xbf16>, vector<256x64xbf16>, vector<16x64xf32> -> vector<16x64xf32>
    %138 = vector.broadcast %68 : vector<1x64xf32> to vector<16x64xf32>
    %139 = arith.addf %137, %138 : vector<16x64xf32>
    %140 = arith.addf %125, %139 : vector<16x64xf32>
    %cst_63 = arith.constant dense<0.000000e+00> : vector<16xf32>
    %141 = vector.multi_reduction <add>, %140, %cst_63 [1] : vector<16x64xf32> to vector<16xf32>
    %142 = vector.shape_cast %141 : vector<16xf32> to vector<16x1xf32>
    %cst_64 = arith.constant 6.400000e+01 : f32
    %143 = vector.broadcast %cst_64 : f32 to vector<16x1xf32>
    %144 = arith.divf %142, %143 : vector<16x1xf32>
    %145 = vector.broadcast %144 : vector<16x1xf32> to vector<16x64xf32>
    %146 = arith.subf %140, %145 : vector<16x64xf32>
    %147 = arith.mulf %146, %146 : vector<16x64xf32>
    %cst_65 = arith.constant dense<0.000000e+00> : vector<16xf32>
    %148 = vector.multi_reduction <add>, %147, %cst_65 [1] : vector<16x64xf32> to vector<16xf32>
    %149 = vector.shape_cast %148 : vector<16xf32> to vector<16x1xf32>
    %cst_66 = arith.constant 6.400000e+01 : f32
    %150 = vector.broadcast %cst_66 : f32 to vector<16x1xf32>
    %151 = arith.divf %149, %150 : vector<16x1xf32>
    %cst_67 = arith.constant 9.99999974E-6 : f32
    %152 = vector.broadcast %cst_67 : f32 to vector<16x1xf32>
    %153 = arith.addf %151, %152 : vector<16x1xf32>
    %154 = math.rsqrt %153 : vector<16x1xf32>
    %155 = vector.broadcast %154 : vector<16x1xf32> to vector<16x64xf32>
    %156 = arith.mulf %146, %155 : vector<16x64xf32>
    %157 = vector.broadcast %66 : vector<1x64xf32> to vector<16x64xf32>
    %158 = arith.mulf %156, %157 : vector<16x64xf32>
    %159 = vector.broadcast %67 : vector<1x64xf32> to vector<16x64xf32>
    %160 = arith.addf %158, %159 : vector<16x64xf32>
    %c1_68 = arith.constant 1 : index
    %c0_69 = arith.constant 0 : index
    %c0_70 = arith.constant 0 : index
    %161 = vector.load %arg7[%c1_68, %c0_69, %c0_70] : memref<3x6x64xf32, #tpu.memory_space<vmem>>, vector<1x6x64xf32>
    %162 = vector.shape_cast %161 : vector<1x6x64xf32> to vector<6x64xf32>
    %163 = vector.extract_strided_slice %162 {offsets = [0, 0], sizes = [1, 64], strides = [1, 1]} : vector<6x64xf32> to vector<1x64xf32>
    %164 = vector.extract_strided_slice %162 {offsets = [1, 0], sizes = [1, 64], strides = [1, 1]} : vector<6x64xf32> to vector<1x64xf32>
    %165 = vector.extract_strided_slice %162 {offsets = [2, 0], sizes = [1, 64], strides = [1, 1]} : vector<6x64xf32> to vector<1x64xf32>
    %166 = vector.extract_strided_slice %162 {offsets = [3, 0], sizes = [1, 64], strides = [1, 1]} : vector<6x64xf32> to vector<1x64xf32>
    %167 = vector.extract_strided_slice %162 {offsets = [4, 0], sizes = [1, 64], strides = [1, 1]} : vector<6x64xf32> to vector<1x64xf32>
    %168 = vector.extract_strided_slice %162 {offsets = [5, 0], sizes = [1, 64], strides = [1, 1]} : vector<6x64xf32> to vector<1x64xf32>
    %c1_71 = arith.constant 1 : index
    %c0_72 = arith.constant 0 : index
    %c0_73 = arith.constant 0 : index
    %169 = vector.load %arg8[%c1_71, %c0_72, %c0_73] : memref<3x2x256xf32, #tpu.memory_space<vmem>>, vector<1x2x256xf32>
    %170 = vector.shape_cast %169 : vector<1x2x256xf32> to vector<2x256xf32>
    %171 = vector.extract_strided_slice %170 {offsets = [0, 0], sizes = [1, 256], strides = [1, 1]} : vector<2x256xf32> to vector<1x256xf32>
    %172 = vector.extract_strided_slice %170 {offsets = [1, 0], sizes = [1, 256], strides = [1, 1]} : vector<2x256xf32> to vector<1x256xf32>
    %173 = arith.truncf %160 : vector<16x64xf32> to vector<16x64xbf16>
    %c1_74 = arith.constant 1 : index
    %c0_75 = arith.constant 0 : index
    %c0_76 = arith.constant 0 : index
    %174 = vector.load %arg3[%c1_74, %c0_75, %c0_76] : memref<3x64x256xbf16, #tpu.memory_space<vmem>>, vector<1x64x256xbf16>
    %175 = vector.shape_cast %174 : vector<1x64x256xbf16> to vector<64x256xbf16>
    %cst_77 = arith.constant dense<0.000000e+00> : vector<16x256xf32>
    %176 = tpu.matmul %173, %175, %cst_77 {dimension_numbers = #tpu.dot_dimension_numbers<[1], [0], [0], [1], [0, 0, 1, 1], [], []>} : vector<16x64xbf16>, vector<64x256xbf16>, vector<16x256xf32> -> vector<16x256xf32>
    %177 = vector.broadcast %171 : vector<1x256xf32> to vector<16x256xf32>
    %178 = arith.addf %176, %177 : vector<16x256xf32>
    %179 = vector.extract_strided_slice %178 {offsets = [0, 0], sizes = [16, 128], strides = [1, 1]} : vector<16x256xf32> to vector<16x128xf32>
    %180 = vector.extract_strided_slice %178 {offsets = [0, 128], sizes = [16, 128], strides = [1, 1]} : vector<16x256xf32> to vector<16x128xf32>
    %181 = tpu.concatenate %180, %180, %180, %180, %180, %180, %180, %180 in 0 : vector<16x128xf32>, vector<16x128xf32>, vector<16x128xf32>, vector<16x128xf32>, vector<16x128xf32>, vector<16x128xf32>, vector<16x128xf32>, vector<16x128xf32> -> vector<128x128xf32>
    %182 = arith.mulf %181, %58 : vector<128x128xf32>
    %cst_78 = arith.constant dense<0.000000e+00> : vector<16x128xf32>
    %183 = tpu.matmul %179, %182, %cst_78 {dimension_numbers = #tpu.dot_dimension_numbers<[1], [1], [0], [0], [0, 0, 1, 0], [], []>} : vector<16x128xf32>, vector<128x128xf32>, vector<16x128xf32> -> vector<16x128xf32>
    %cst_79 = arith.constant 0.353553385 : f32
    %184 = vector.broadcast %cst_79 : f32 to vector<16x128xf32>
    %185 = arith.mulf %183, %184 : vector<16x128xf32>
    %cst_80 = arith.constant dense<0xFF800000> : vector<16xf32>
    %186 = vector.multi_reduction <maximumf>, %185, %cst_80 [1] : vector<16x128xf32> to vector<16xf32>
    %187 = vector.shape_cast %186 : vector<16xf32> to vector<16x1xf32>
    %188 = vector.broadcast %187 : vector<16x1xf32> to vector<16x128xf32>
    %189 = arith.subf %185, %188 : vector<16x128xf32>
    %190 = math.exp %189 : vector<16x128xf32>
    %191 = arith.mulf %190, %60 : vector<16x128xf32>
    %cst_81 = arith.constant dense<0.000000e+00> : vector<16x128xf32>
    %192 = tpu.matmul %191, %59, %cst_81 {dimension_numbers = #tpu.dot_dimension_numbers<[1], [0], [0], [1], [0, 0, 1, 1], [], []>} : vector<16x128xf32>, vector<128x128xf32>, vector<16x128xf32> -> vector<16x128xf32>
    %cst_82 = arith.constant 1.000000e+00 : f32
    %193 = vector.broadcast %cst_82 : f32 to vector<16x128xf32>
    %194 = arith.subf %193, %60 : vector<16x128xf32>
    %195 = arith.addf %192, %194 : vector<16x128xf32>
    %196 = tpu.reciprocal %195 {approx = true} : vector<16x128xf32> -> vector<16x128xf32>
    %197 = arith.mulf %191, %196 : vector<16x128xf32>
    %cst_83 = arith.constant dense<0.000000e+00> : vector<16x128xf32>
    %198 = tpu.matmul %197, %182, %cst_83 {dimension_numbers = #tpu.dot_dimension_numbers<[1], [0], [0], [1], [0, 0, 1, 1], [], []>} : vector<16x128xf32>, vector<128x128xf32>, vector<16x128xf32> -> vector<16x128xf32>
    %199 = arith.truncf %198 : vector<16x128xf32> to vector<16x128xbf16>
    %c1_84 = arith.constant 1 : index
    %c0_85 = arith.constant 0 : index
    %c0_86 = arith.constant 0 : index
    %200 = vector.load %arg4[%c1_84, %c0_85, %c0_86] : memref<3x128x64xbf16, #tpu.memory_space<vmem>>, vector<1x128x64xbf16>
    %201 = vector.shape_cast %200 : vector<1x128x64xbf16> to vector<128x64xbf16>
    %cst_87 = arith.constant dense<0.000000e+00> : vector<16x64xf32>
    %202 = tpu.matmul %199, %201, %cst_87 {dimension_numbers = #tpu.dot_dimension_numbers<[1], [0], [0], [1], [0, 0, 1, 1], [], []>} : vector<16x128xbf16>, vector<128x64xbf16>, vector<16x64xf32> -> vector<16x64xf32>
    %203 = vector.broadcast %163 : vector<1x64xf32> to vector<16x64xf32>
    %204 = arith.addf %202, %203 : vector<16x64xf32>
    %205 = arith.addf %160, %204 : vector<16x64xf32>
    %cst_88 = arith.constant dense<0.000000e+00> : vector<16xf32>
    %206 = vector.multi_reduction <add>, %205, %cst_88 [1] : vector<16x64xf32> to vector<16xf32>
    %207 = vector.shape_cast %206 : vector<16xf32> to vector<16x1xf32>
    %cst_89 = arith.constant 6.400000e+01 : f32
    %208 = vector.broadcast %cst_89 : f32 to vector<16x1xf32>
    %209 = arith.divf %207, %208 : vector<16x1xf32>
    %210 = vector.broadcast %209 : vector<16x1xf32> to vector<16x64xf32>
    %211 = arith.subf %205, %210 : vector<16x64xf32>
    %212 = arith.mulf %211, %211 : vector<16x64xf32>
    %cst_90 = arith.constant dense<0.000000e+00> : vector<16xf32>
    %213 = vector.multi_reduction <add>, %212, %cst_90 [1] : vector<16x64xf32> to vector<16xf32>
    %214 = vector.shape_cast %213 : vector<16xf32> to vector<16x1xf32>
    %cst_91 = arith.constant 6.400000e+01 : f32
    %215 = vector.broadcast %cst_91 : f32 to vector<16x1xf32>
    %216 = arith.divf %214, %215 : vector<16x1xf32>
    %cst_92 = arith.constant 9.99999974E-6 : f32
    %217 = vector.broadcast %cst_92 : f32 to vector<16x1xf32>
    %218 = arith.addf %216, %217 : vector<16x1xf32>
    %219 = math.rsqrt %218 : vector<16x1xf32>
    %220 = vector.broadcast %219 : vector<16x1xf32> to vector<16x64xf32>
    %221 = arith.mulf %211, %220 : vector<16x64xf32>
    %222 = vector.broadcast %164 : vector<1x64xf32> to vector<16x64xf32>
    %223 = arith.mulf %221, %222 : vector<16x64xf32>
    %224 = vector.broadcast %165 : vector<1x64xf32> to vector<16x64xf32>
    %225 = arith.addf %223, %224 : vector<16x64xf32>
    %226 = arith.truncf %225 : vector<16x64xf32> to vector<16x64xbf16>
    %c1_93 = arith.constant 1 : index
    %c0_94 = arith.constant 0 : index
    %c0_95 = arith.constant 0 : index
    %227 = vector.load %arg5[%c1_93, %c0_94, %c0_95] : memref<3x64x256xbf16, #tpu.memory_space<vmem>>, vector<1x64x256xbf16>
    %228 = vector.shape_cast %227 : vector<1x64x256xbf16> to vector<64x256xbf16>
    %cst_96 = arith.constant dense<0.000000e+00> : vector<16x256xf32>
    %229 = tpu.matmul %226, %228, %cst_96 {dimension_numbers = #tpu.dot_dimension_numbers<[1], [0], [0], [1], [0, 0, 1, 1], [], []>} : vector<16x64xbf16>, vector<64x256xbf16>, vector<16x256xf32> -> vector<16x256xf32>
    %230 = vector.broadcast %172 : vector<1x256xf32> to vector<16x256xf32>
    %231 = arith.addf %229, %230 : vector<16x256xf32>
    %cst_97 = arith.constant 0.000000e+00 : f32
    %232 = vector.broadcast %cst_97 : f32 to vector<16x256xf32>
    %233 = arith.maximumf %231, %232 : vector<16x256xf32>
    %234 = arith.truncf %233 : vector<16x256xf32> to vector<16x256xbf16>
    %c1_98 = arith.constant 1 : index
    %c0_99 = arith.constant 0 : index
    %c0_100 = arith.constant 0 : index
    %235 = vector.load %arg6[%c1_98, %c0_99, %c0_100] : memref<3x256x64xbf16, #tpu.memory_space<vmem>>, vector<1x256x64xbf16>
    %236 = vector.shape_cast %235 : vector<1x256x64xbf16> to vector<256x64xbf16>
    %cst_101 = arith.constant dense<0.000000e+00> : vector<16x64xf32>
    %237 = tpu.matmul %234, %236, %cst_101 {dimension_numbers = #tpu.dot_dimension_numbers<[1], [0], [0], [1], [0, 0, 1, 1], [], []>} : vector<16x256xbf16>, vector<256x64xbf16>, vector<16x64xf32> -> vector<16x64xf32>
    %238 = vector.broadcast %168 : vector<1x64xf32> to vector<16x64xf32>
    %239 = arith.addf %237, %238 : vector<16x64xf32>
    %240 = arith.addf %225, %239 : vector<16x64xf32>
    %cst_102 = arith.constant dense<0.000000e+00> : vector<16xf32>
    %241 = vector.multi_reduction <add>, %240, %cst_102 [1] : vector<16x64xf32> to vector<16xf32>
    %242 = vector.shape_cast %241 : vector<16xf32> to vector<16x1xf32>
    %cst_103 = arith.constant 6.400000e+01 : f32
    %243 = vector.broadcast %cst_103 : f32 to vector<16x1xf32>
    %244 = arith.divf %242, %243 : vector<16x1xf32>
    %245 = vector.broadcast %244 : vector<16x1xf32> to vector<16x64xf32>
    %246 = arith.subf %240, %245 : vector<16x64xf32>
    %247 = arith.mulf %246, %246 : vector<16x64xf32>
    %cst_104 = arith.constant dense<0.000000e+00> : vector<16xf32>
    %248 = vector.multi_reduction <add>, %247, %cst_104 [1] : vector<16x64xf32> to vector<16xf32>
    %249 = vector.shape_cast %248 : vector<16xf32> to vector<16x1xf32>
    %cst_105 = arith.constant 6.400000e+01 : f32
    %250 = vector.broadcast %cst_105 : f32 to vector<16x1xf32>
    %251 = arith.divf %249, %250 : vector<16x1xf32>
    %cst_106 = arith.constant 9.99999974E-6 : f32
    %252 = vector.broadcast %cst_106 : f32 to vector<16x1xf32>
    %253 = arith.addf %251, %252 : vector<16x1xf32>
    %254 = math.rsqrt %253 : vector<16x1xf32>
    %255 = vector.broadcast %254 : vector<16x1xf32> to vector<16x64xf32>
    %256 = arith.mulf %246, %255 : vector<16x64xf32>
    %257 = vector.broadcast %166 : vector<1x64xf32> to vector<16x64xf32>
    %258 = arith.mulf %256, %257 : vector<16x64xf32>
    %259 = vector.broadcast %167 : vector<1x64xf32> to vector<16x64xf32>
    %260 = arith.addf %258, %259 : vector<16x64xf32>
    %c2 = arith.constant 2 : index
    %c0_107 = arith.constant 0 : index
    %c0_108 = arith.constant 0 : index
    %261 = vector.load %arg7[%c2, %c0_107, %c0_108] : memref<3x6x64xf32, #tpu.memory_space<vmem>>, vector<1x6x64xf32>
    %262 = vector.shape_cast %261 : vector<1x6x64xf32> to vector<6x64xf32>
    %263 = vector.extract_strided_slice %262 {offsets = [0, 0], sizes = [1, 64], strides = [1, 1]} : vector<6x64xf32> to vector<1x64xf32>
    %264 = vector.extract_strided_slice %262 {offsets = [1, 0], sizes = [1, 64], strides = [1, 1]} : vector<6x64xf32> to vector<1x64xf32>
    %265 = vector.extract_strided_slice %262 {offsets = [2, 0], sizes = [1, 64], strides = [1, 1]} : vector<6x64xf32> to vector<1x64xf32>
    %266 = vector.extract_strided_slice %262 {offsets = [3, 0], sizes = [1, 64], strides = [1, 1]} : vector<6x64xf32> to vector<1x64xf32>
    %267 = vector.extract_strided_slice %262 {offsets = [4, 0], sizes = [1, 64], strides = [1, 1]} : vector<6x64xf32> to vector<1x64xf32>
    %268 = vector.extract_strided_slice %262 {offsets = [5, 0], sizes = [1, 64], strides = [1, 1]} : vector<6x64xf32> to vector<1x64xf32>
    %c2_109 = arith.constant 2 : index
    %c0_110 = arith.constant 0 : index
    %c0_111 = arith.constant 0 : index
    %269 = vector.load %arg8[%c2_109, %c0_110, %c0_111] : memref<3x2x256xf32, #tpu.memory_space<vmem>>, vector<1x2x256xf32>
    %270 = vector.shape_cast %269 : vector<1x2x256xf32> to vector<2x256xf32>
    %271 = vector.extract_strided_slice %270 {offsets = [0, 0], sizes = [1, 256], strides = [1, 1]} : vector<2x256xf32> to vector<1x256xf32>
    %272 = vector.extract_strided_slice %270 {offsets = [1, 0], sizes = [1, 256], strides = [1, 1]} : vector<2x256xf32> to vector<1x256xf32>
    %273 = arith.truncf %260 : vector<16x64xf32> to vector<16x64xbf16>
    %c2_112 = arith.constant 2 : index
    %c0_113 = arith.constant 0 : index
    %c0_114 = arith.constant 0 : index
    %274 = vector.load %arg3[%c2_112, %c0_113, %c0_114] : memref<3x64x256xbf16, #tpu.memory_space<vmem>>, vector<1x64x256xbf16>
    %275 = vector.shape_cast %274 : vector<1x64x256xbf16> to vector<64x256xbf16>
    %cst_115 = arith.constant dense<0.000000e+00> : vector<16x256xf32>
    %276 = tpu.matmul %273, %275, %cst_115 {dimension_numbers = #tpu.dot_dimension_numbers<[1], [0], [0], [1], [0, 0, 1, 1], [], []>} : vector<16x64xbf16>, vector<64x256xbf16>, vector<16x256xf32> -> vector<16x256xf32>
    %277 = vector.broadcast %271 : vector<1x256xf32> to vector<16x256xf32>
    %278 = arith.addf %276, %277 : vector<16x256xf32>
    %279 = vector.extract_strided_slice %278 {offsets = [0, 0], sizes = [16, 128], strides = [1, 1]} : vector<16x256xf32> to vector<16x128xf32>
    %280 = vector.extract_strided_slice %278 {offsets = [0, 128], sizes = [16, 128], strides = [1, 1]} : vector<16x256xf32> to vector<16x128xf32>
    %281 = tpu.concatenate %280, %280, %280, %280, %280, %280, %280, %280 in 0 : vector<16x128xf32>, vector<16x128xf32>, vector<16x128xf32>, vector<16x128xf32>, vector<16x128xf32>, vector<16x128xf32>, vector<16x128xf32>, vector<16x128xf32> -> vector<128x128xf32>
    %282 = arith.mulf %281, %58 : vector<128x128xf32>
    %cst_116 = arith.constant dense<0.000000e+00> : vector<16x128xf32>
    %283 = tpu.matmul %279, %282, %cst_116 {dimension_numbers = #tpu.dot_dimension_numbers<[1], [1], [0], [0], [0, 0, 1, 0], [], []>} : vector<16x128xf32>, vector<128x128xf32>, vector<16x128xf32> -> vector<16x128xf32>
    %cst_117 = arith.constant 0.353553385 : f32
    %284 = vector.broadcast %cst_117 : f32 to vector<16x128xf32>
    %285 = arith.mulf %283, %284 : vector<16x128xf32>
    %cst_118 = arith.constant dense<0xFF800000> : vector<16xf32>
    %286 = vector.multi_reduction <maximumf>, %285, %cst_118 [1] : vector<16x128xf32> to vector<16xf32>
    %287 = vector.shape_cast %286 : vector<16xf32> to vector<16x1xf32>
    %288 = vector.broadcast %287 : vector<16x1xf32> to vector<16x128xf32>
    %289 = arith.subf %285, %288 : vector<16x128xf32>
    %290 = math.exp %289 : vector<16x128xf32>
    %291 = arith.mulf %290, %60 : vector<16x128xf32>
    %cst_119 = arith.constant dense<0.000000e+00> : vector<16x128xf32>
    %292 = tpu.matmul %291, %59, %cst_119 {dimension_numbers = #tpu.dot_dimension_numbers<[1], [0], [0], [1], [0, 0, 1, 1], [], []>} : vector<16x128xf32>, vector<128x128xf32>, vector<16x128xf32> -> vector<16x128xf32>
    %cst_120 = arith.constant 1.000000e+00 : f32
    %293 = vector.broadcast %cst_120 : f32 to vector<16x128xf32>
    %294 = arith.subf %293, %60 : vector<16x128xf32>
    %295 = arith.addf %292, %294 : vector<16x128xf32>
    %296 = tpu.reciprocal %295 {approx = true} : vector<16x128xf32> -> vector<16x128xf32>
    %297 = arith.mulf %291, %296 : vector<16x128xf32>
    %cst_121 = arith.constant dense<0.000000e+00> : vector<16x128xf32>
    %298 = tpu.matmul %297, %282, %cst_121 {dimension_numbers = #tpu.dot_dimension_numbers<[1], [0], [0], [1], [0, 0, 1, 1], [], []>} : vector<16x128xf32>, vector<128x128xf32>, vector<16x128xf32> -> vector<16x128xf32>
    %299 = arith.truncf %298 : vector<16x128xf32> to vector<16x128xbf16>
    %c2_122 = arith.constant 2 : index
    %c0_123 = arith.constant 0 : index
    %c0_124 = arith.constant 0 : index
    %300 = vector.load %arg4[%c2_122, %c0_123, %c0_124] : memref<3x128x64xbf16, #tpu.memory_space<vmem>>, vector<1x128x64xbf16>
    %301 = vector.shape_cast %300 : vector<1x128x64xbf16> to vector<128x64xbf16>
    %cst_125 = arith.constant dense<0.000000e+00> : vector<16x64xf32>
    %302 = tpu.matmul %299, %301, %cst_125 {dimension_numbers = #tpu.dot_dimension_numbers<[1], [0], [0], [1], [0, 0, 1, 1], [], []>} : vector<16x128xbf16>, vector<128x64xbf16>, vector<16x64xf32> -> vector<16x64xf32>
    %303 = vector.broadcast %263 : vector<1x64xf32> to vector<16x64xf32>
    %304 = arith.addf %302, %303 : vector<16x64xf32>
    %305 = arith.addf %260, %304 : vector<16x64xf32>
    %cst_126 = arith.constant dense<0.000000e+00> : vector<16xf32>
    %306 = vector.multi_reduction <add>, %305, %cst_126 [1] : vector<16x64xf32> to vector<16xf32>
    %307 = vector.shape_cast %306 : vector<16xf32> to vector<16x1xf32>
    %cst_127 = arith.constant 6.400000e+01 : f32
    %308 = vector.broadcast %cst_127 : f32 to vector<16x1xf32>
    %309 = arith.divf %307, %308 : vector<16x1xf32>
    %310 = vector.broadcast %309 : vector<16x1xf32> to vector<16x64xf32>
    %311 = arith.subf %305, %310 : vector<16x64xf32>
    %312 = arith.mulf %311, %311 : vector<16x64xf32>
    %cst_128 = arith.constant dense<0.000000e+00> : vector<16xf32>
    %313 = vector.multi_reduction <add>, %312, %cst_128 [1] : vector<16x64xf32> to vector<16xf32>
    %314 = vector.shape_cast %313 : vector<16xf32> to vector<16x1xf32>
    %cst_129 = arith.constant 6.400000e+01 : f32
    %315 = vector.broadcast %cst_129 : f32 to vector<16x1xf32>
    %316 = arith.divf %314, %315 : vector<16x1xf32>
    %cst_130 = arith.constant 9.99999974E-6 : f32
    %317 = vector.broadcast %cst_130 : f32 to vector<16x1xf32>
    %318 = arith.addf %316, %317 : vector<16x1xf32>
    %319 = math.rsqrt %318 : vector<16x1xf32>
    %320 = vector.broadcast %319 : vector<16x1xf32> to vector<16x64xf32>
    %321 = arith.mulf %311, %320 : vector<16x64xf32>
    %322 = vector.broadcast %264 : vector<1x64xf32> to vector<16x64xf32>
    %323 = arith.mulf %321, %322 : vector<16x64xf32>
    %324 = vector.broadcast %265 : vector<1x64xf32> to vector<16x64xf32>
    %325 = arith.addf %323, %324 : vector<16x64xf32>
    %326 = arith.truncf %325 : vector<16x64xf32> to vector<16x64xbf16>
    %c2_131 = arith.constant 2 : index
    %c0_132 = arith.constant 0 : index
    %c0_133 = arith.constant 0 : index
    %327 = vector.load %arg5[%c2_131, %c0_132, %c0_133] : memref<3x64x256xbf16, #tpu.memory_space<vmem>>, vector<1x64x256xbf16>
    %328 = vector.shape_cast %327 : vector<1x64x256xbf16> to vector<64x256xbf16>
    %cst_134 = arith.constant dense<0.000000e+00> : vector<16x256xf32>
    %329 = tpu.matmul %326, %328, %cst_134 {dimension_numbers = #tpu.dot_dimension_numbers<[1], [0], [0], [1], [0, 0, 1, 1], [], []>} : vector<16x64xbf16>, vector<64x256xbf16>, vector<16x256xf32> -> vector<16x256xf32>
    %330 = vector.broadcast %272 : vector<1x256xf32> to vector<16x256xf32>
    %331 = arith.addf %329, %330 : vector<16x256xf32>
    %cst_135 = arith.constant 0.000000e+00 : f32
    %332 = vector.broadcast %cst_135 : f32 to vector<16x256xf32>
    %333 = arith.maximumf %331, %332 : vector<16x256xf32>
    %334 = arith.truncf %333 : vector<16x256xf32> to vector<16x256xbf16>
    %c2_136 = arith.constant 2 : index
    %c0_137 = arith.constant 0 : index
    %c0_138 = arith.constant 0 : index
    %335 = vector.load %arg6[%c2_136, %c0_137, %c0_138] : memref<3x256x64xbf16, #tpu.memory_space<vmem>>, vector<1x256x64xbf16>
    %336 = vector.shape_cast %335 : vector<1x256x64xbf16> to vector<256x64xbf16>
    %cst_139 = arith.constant dense<0.000000e+00> : vector<16x64xf32>
    %337 = tpu.matmul %334, %336, %cst_139 {dimension_numbers = #tpu.dot_dimension_numbers<[1], [0], [0], [1], [0, 0, 1, 1], [], []>} : vector<16x256xbf16>, vector<256x64xbf16>, vector<16x64xf32> -> vector<16x64xf32>
    %338 = vector.broadcast %268 : vector<1x64xf32> to vector<16x64xf32>
    %339 = arith.addf %337, %338 : vector<16x64xf32>
    %340 = arith.addf %325, %339 : vector<16x64xf32>
    %cst_140 = arith.constant dense<0.000000e+00> : vector<16xf32>
    %341 = vector.multi_reduction <add>, %340, %cst_140 [1] : vector<16x64xf32> to vector<16xf32>
    %342 = vector.shape_cast %341 : vector<16xf32> to vector<16x1xf32>
    %cst_141 = arith.constant 6.400000e+01 : f32
    %343 = vector.broadcast %cst_141 : f32 to vector<16x1xf32>
    %344 = arith.divf %342, %343 : vector<16x1xf32>
    %345 = vector.broadcast %344 : vector<16x1xf32> to vector<16x64xf32>
    %346 = arith.subf %340, %345 : vector<16x64xf32>
    %347 = arith.mulf %346, %346 : vector<16x64xf32>
    %cst_142 = arith.constant dense<0.000000e+00> : vector<16xf32>
    %348 = vector.multi_reduction <add>, %347, %cst_142 [1] : vector<16x64xf32> to vector<16xf32>
    %349 = vector.shape_cast %348 : vector<16xf32> to vector<16x1xf32>
    %cst_143 = arith.constant 6.400000e+01 : f32
    %350 = vector.broadcast %cst_143 : f32 to vector<16x1xf32>
    %351 = arith.divf %349, %350 : vector<16x1xf32>
    %cst_144 = arith.constant 9.99999974E-6 : f32
    %352 = vector.broadcast %cst_144 : f32 to vector<16x1xf32>
    %353 = arith.addf %351, %352 : vector<16x1xf32>
    %354 = math.rsqrt %353 : vector<16x1xf32>
    %355 = vector.broadcast %354 : vector<16x1xf32> to vector<16x64xf32>
    %356 = arith.mulf %346, %355 : vector<16x64xf32>
    %357 = vector.broadcast %266 : vector<1x64xf32> to vector<16x64xf32>
    %358 = arith.mulf %356, %357 : vector<16x64xf32>
    %359 = vector.broadcast %267 : vector<1x64xf32> to vector<16x64xf32>
    %360 = arith.addf %358, %359 : vector<16x64xf32>
    %cst_145 = arith.constant dense<0.000000e+00> : vector<16xf32>
    %361 = vector.multi_reduction <add>, %360, %cst_145 [1] : vector<16x64xf32> to vector<16xf32>
    %362 = vector.shape_cast %361 : vector<16xf32> to vector<16x1xf32>
    %cst_146 = arith.constant 6.400000e+01 : f32
    %363 = vector.broadcast %cst_146 : f32 to vector<16x1xf32>
    %364 = arith.divf %362, %363 : vector<16x1xf32>
    %365 = vector.broadcast %364 : vector<16x1xf32> to vector<16x64xf32>
    %366 = arith.subf %360, %365 : vector<16x64xf32>
    %367 = arith.mulf %366, %366 : vector<16x64xf32>
    %cst_147 = arith.constant dense<0.000000e+00> : vector<16xf32>
    %368 = vector.multi_reduction <add>, %367, %cst_147 [1] : vector<16x64xf32> to vector<16xf32>
    %369 = vector.shape_cast %368 : vector<16xf32> to vector<16x1xf32>
    %cst_148 = arith.constant 6.400000e+01 : f32
    %370 = vector.broadcast %cst_148 : f32 to vector<16x1xf32>
    %371 = arith.divf %369, %370 : vector<16x1xf32>
    %cst_149 = arith.constant 9.99999974E-6 : f32
    %372 = vector.broadcast %cst_149 : f32 to vector<16x1xf32>
    %373 = arith.addf %371, %372 : vector<16x1xf32>
    %374 = math.rsqrt %373 : vector<16x1xf32>
    %375 = vector.broadcast %374 : vector<16x1xf32> to vector<16x64xf32>
    %376 = arith.mulf %366, %375 : vector<16x64xf32>
    %377 = vector.broadcast %2 : vector<1x64xf32> to vector<16x64xf32>
    %378 = arith.mulf %376, %377 : vector<16x64xf32>
    %379 = vector.broadcast %3 : vector<1x64xf32> to vector<16x64xf32>
    %380 = arith.addf %378, %379 : vector<16x64xf32>
    %381 = arith.truncf %380 : vector<16x64xf32> to vector<16x64xbf16>
    %c0_150 = arith.constant 0 : index
    %c0_151 = arith.constant 0 : index
    %382 = vector.load %arg10[%c0_150, %c0_151] : memref<64x8xbf16, #tpu.memory_space<vmem>>, vector<64x8xbf16>
    %cst_152 = arith.constant dense<0.000000e+00> : vector<16x8xf32>
    %383 = tpu.matmul %381, %382, %cst_152 {dimension_numbers = #tpu.dot_dimension_numbers<[1], [0], [0], [1], [0, 0, 1, 1], [], []>} : vector<16x64xbf16>, vector<64x8xbf16>, vector<16x8xf32> -> vector<16x8xf32>
    %384 = vector.broadcast %5 : vector<1x8xf32> to vector<16x8xf32>
    %385 = arith.addf %383, %384 : vector<16x8xf32>
    %386 = vector.extract_strided_slice %385 {offsets = [0, 0], sizes = [8, 8], strides = [1, 1]} : vector<16x8xf32> to vector<8x8xf32>
    %387 = arith.mulf %24, %6 : vector<1x8xf32>
    %cst_153 = arith.constant dense<0.000000e+00> : vector<1x8xf32>
    %388 = tpu.matmul %387, %386, %cst_153 {dimension_numbers = #tpu.dot_dimension_numbers<[1], [0], [0], [1], [0, 0, 1, 1], [], []>} : vector<1x8xf32>, vector<8x8xf32>, vector<1x8xf32> -> vector<1x8xf32>
    %389 = arith.mulf %14, %6 : vector<1x8xf32>
    %cst_154 = arith.constant dense<0.000000e+00> : vector<1xf32>
    %390 = vector.multi_reduction <add>, %389, %cst_154 [1] : vector<1x8xf32> to vector<1xf32>
    %391 = vector.shape_cast %390 : vector<1xf32> to vector<1x1xf32>
    %392 = vector.broadcast %391 : vector<1x1xf32> to vector<1x8xf32>
    %393 = arith.addf %388, %392 : vector<1x8xf32>
    %394 = vector.broadcast %7 : vector<1x1xf32> to vector<1x8xf32>
    %395 = arith.addf %393, %394 : vector<1x8xf32>
    %396 = vector.extract_strided_slice %385 {offsets = [8, 0], sizes = [8, 8], strides = [1, 1]} : vector<16x8xf32> to vector<8x8xf32>
    %397 = arith.mulf %47, %6 : vector<1x8xf32>
    %cst_155 = arith.constant dense<0.000000e+00> : vector<1x8xf32>
    %398 = tpu.matmul %397, %396, %cst_155 {dimension_numbers = #tpu.dot_dimension_numbers<[1], [0], [0], [1], [0, 0, 1, 1], [], []>} : vector<1x8xf32>, vector<8x8xf32>, vector<1x8xf32> -> vector<1x8xf32>
    %399 = arith.mulf %37, %6 : vector<1x8xf32>
    %cst_156 = arith.constant dense<0.000000e+00> : vector<1xf32>
    %400 = vector.multi_reduction <add>, %399, %cst_156 [1] : vector<1x8xf32> to vector<1xf32>
    %401 = vector.shape_cast %400 : vector<1xf32> to vector<1x1xf32>
    %402 = vector.broadcast %401 : vector<1x1xf32> to vector<1x8xf32>
    %403 = arith.addf %398, %402 : vector<1x8xf32>
    %404 = vector.broadcast %7 : vector<1x1xf32> to vector<1x8xf32>
    %405 = arith.addf %403, %404 : vector<1x8xf32>
    %406 = tpu.concatenate %395, %405 in 0 : vector<1x8xf32>, vector<1x8xf32> -> vector<2x8xf32>
    %c0_157 = arith.constant 0 : index
    %c0_158 = arith.constant 0 : index
    %407 = vector.load %arg15[%c0_157, %c0_158] : memref<2x8xf32, #tpu.memory_space<vmem>>, vector<2x8xf32>
    tpu.vector_store %arg15[%c0_157, %c0_158], %406 {strides = array<i32>} : memref<2x8xf32, #tpu.memory_space<vmem>>, vector<2x8xf32>,
    return
  }
  func.func @transform_0(%arg0: i32) -> (i32, i32, i32) {
    %c0_i32 = arith.constant 0 : i32
    %c0_i32_0 = arith.constant 0 : i32
    %c0_i32_1 = arith.constant 0 : i32
    %c0_i32_2 = arith.constant 0 : i32
    return %c0_i32, %c0_i32_0, %c0_i32_1 : i32, i32, i32
  }
  func.func @transform_1(%arg0: i32) -> (i32, i32) {
    %c0_i32 = arith.constant 0 : i32
    %c0_i32_0 = arith.constant 0 : i32
    %c0_i32_1 = arith.constant 0 : i32
    return %c0_i32, %c0_i32_0 : i32, i32
  }
  func.func @transform_2(%arg0: i32) -> (i32, i32, i32) {
    %c0_i32 = arith.constant 0 : i32
    %c0_i32_0 = arith.constant 0 : i32
    %c0_i32_1 = arith.constant 0 : i32
    %c0_i32_2 = arith.constant 0 : i32
    return %c0_i32, %c0_i32_0, %c0_i32_1 : i32, i32, i32
  }
  func.func @transform_3(%arg0: i32) -> (i32, i32, i32) {
    %c0_i32 = arith.constant 0 : i32
    %c0_i32_0 = arith.constant 0 : i32
    %c0_i32_1 = arith.constant 0 : i32
    %c0_i32_2 = arith.constant 0 : i32
    return %c0_i32, %c0_i32_0, %c0_i32_1 : i32, i32, i32
  }
  func.func @transform_4(%arg0: i32) -> (i32, i32, i32) {
    %c0_i32 = arith.constant 0 : i32
    %c0_i32_0 = arith.constant 0 : i32
    %c0_i32_1 = arith.constant 0 : i32
    %c0_i32_2 = arith.constant 0 : i32
    return %c0_i32, %c0_i32_0, %c0_i32_1 : i32, i32, i32
  }
  func.func @transform_5(%arg0: i32) -> (i32, i32, i32) {
    %c0_i32 = arith.constant 0 : i32
    %c0_i32_0 = arith.constant 0 : i32
    %c0_i32_1 = arith.constant 0 : i32
    %c0_i32_2 = arith.constant 0 : i32
    return %c0_i32, %c0_i32_0, %c0_i32_1 : i32, i32, i32
  }
  func.func @transform_6(%arg0: i32) -> (i32, i32, i32) {
    %c0_i32 = arith.constant 0 : i32
    %c0_i32_0 = arith.constant 0 : i32
    %c0_i32_1 = arith.constant 0 : i32
    %c0_i32_2 = arith.constant 0 : i32
    return %c0_i32, %c0_i32_0, %c0_i32_1 : i32, i32, i32
  }
  func.func @transform_7(%arg0: i32) -> (i32, i32, i32) {
    %c0_i32 = arith.constant 0 : i32
    %c0_i32_0 = arith.constant 0 : i32
    %c0_i32_1 = arith.constant 0 : i32
    %c0_i32_2 = arith.constant 0 : i32
    return %c0_i32, %c0_i32_0, %c0_i32_1 : i32, i32, i32
  }
  func.func @transform_8(%arg0: i32) -> (i32, i32) {
    %c0_i32 = arith.constant 0 : i32
    %c0_i32_0 = arith.constant 0 : i32
    %c0_i32_1 = arith.constant 0 : i32
    return %c0_i32, %c0_i32_0 : i32, i32
  }
  func.func @transform_9(%arg0: i32) -> (i32, i32) {
    %c0_i32 = arith.constant 0 : i32
    %c0_i32_0 = arith.constant 0 : i32
    %c0_i32_1 = arith.constant 0 : i32
    return %c0_i32, %c0_i32_0 : i32, i32
  }
  func.func @transform_10(%arg0: i32) -> (i32, i32) {
    %c0_i32 = arith.constant 0 : i32
    %c0_i32_0 = arith.constant 0 : i32
    %c0_i32_1 = arith.constant 0 : i32
    return %c0_i32, %c0_i32_0 : i32, i32
  }
  func.func @transform_11(%arg0: i32) -> (i32, i32) {
    %c0_i32 = arith.constant 0 : i32
    %c0_i32_0 = arith.constant 0 : i32
    %c0_i32_1 = arith.constant 0 : i32
    return %c0_i32, %c0_i32_0 : i32, i32
  }
  func.func @transform_12(%arg0: i32) -> (i32, i32) {
    %c0_i32 = arith.constant 0 : i32
    %c0_i32_0 = arith.constant 0 : i32
    %c0_i32_1 = arith.constant 0 : i32
    return %c0_i32, %c0_i32_0 : i32, i32
  }
  func.func @transform_13(%arg0: i32) -> (i32, i32) {
    %c0_i32 = arith.constant 0 : i32
    %c0_i32_0 = arith.constant 0 : i32
    %c0_i32_1 = arith.constant 0 : i32
    return %c0_i32, %c0_i32_0 : i32, i32
  }
  func.func @transform_14(%arg0: i32) -> (i32, i32) {
    %c0_i32 = arith.constant 0 : i32
    %c0_i32_0 = arith.constant 0 : i32
    %c0_i32_1 = arith.constant 0 : i32
    return %c0_i32, %c0_i32_0 : i32, i32
  }
}

</mosaic_0001>

<bundles_post_ra>
// kernel: model_forward.1
= control target key start
LH: loop header
LB: loop body
LE: loop exit
PB: predicated region body
PF: predicated region fallthrough
CT: control target
= control target key end

     0   :  { %vm55_vm0 = vcmask 64512   ;;  %v3273_v5 = vmov 16.0   ;;  %s4516_s0 = inlined_call_operand.vmem [shape: f32[2,16,8], index: 0, kind: input, shape index: {}]   ;;  %s4517_s1 = inlined_call_operand.vmem [shape: bf16[16,64], index: 1, kind: input, shape index: {}]   ;;  %s4518_s2 = inlined_call_operand.vmem [shape: bf16[3,64,256], index: 2, kind: input, shape index: {}]   ;;  %s4519_s3 = inlined_call_operand.vmem [shape: bf16[3,128,64], index: 3, kind: input, shape index: {}]   ;;  %s4520_s4 = inlined_call_operand.vmem [shape: bf16[3,64,256], index: 4, kind: input, shape index: {}]   ;;  %s4521_s5 = inlined_call_operand.vmem [shape: bf16[3,256,64], index: 5, kind: input, shape index: {}]   ;;  %s4522_s6 = inlined_call_operand.vmem [shape: f32[3,6,64], index: 6, kind: input, shape index: {}]   ;;  %s4523_s7 = inlined_call_operand.vmem [shape: f32[3,2,256], index: 7, kind: input, shape index: {}]   ;;  %s4524_s8 = inlined_call_operand.vmem [shape: f32[3,64], index: 8, kind: input, shape index: {}]   ;;  %s4525_s9 = inlined_call_operand.vmem [shape: bf16[64,8], index: 9, kind: input, shape index: {}]   ;;  %s4526_s10 = inlined_call_operand.vmem [shape: f32[3,8], index: 10, kind: input, shape index: {}]   ;;  %s4527_s11 = inlined_call_operand.vmem [shape: f32[128,128], index: 11, kind: input, shape index: {}]   ;;  %s4528_s12 = inlined_call_operand.vmem [shape: f32[128,128], index: 12, kind: input, shape index: {}]   ;;  %s4529_s13 = inlined_call_operand.vmem [shape: f32[16,128], index: 13, kind: input, shape index: {}]   ;;  %s4530_s14 = inlined_call_operand.hbm [shape: f32[2,8], index: 14, kind: output, shape index: {}]  }
   0x1   :  { %v53_v0 = vld [vmem:[%s4516_s0] sm:$0xff]  ;;  %v54_v1 = vld [vmem:[%s4516_s0 + $0x8] sm:$0xff]  ;;  %v2373_v2 = vld [vmem:[%s4516_s0 + $0x10] sm:$0xff]  ;;  %3152 = vrcp.f32 %v3273_v5 }
   0x2   :  { %v56_v3 = vsel %vm55_vm0, %v53_v0, 0.0  ;;  %v57_v4 = vsel %vm55_vm0, %v54_v1, 0.0  ;;  %v2374_v6 = vld [vmem:[%s4516_s0 + $0x18] sm:$0xff]  ;;  %v155_v7 = vsel %vm55_vm0, %v2373_v2, 0.0 }
   0x3   :  { %19 = vsyncpa [#allocation3], 0  ;;  %v58_v8 = vadd.f32 %v57_v4, %v56_v3  ;;  %v156_v9 = vsel %vm55_vm0, %v2374_v6, 0.0  ;;  %v3019_v53 = vld [vmem:[%s4517_s1] sm:$0xff]  ;;  %vm135_vm8 = vcmask 130048   ;;  %vm332_vm9 = vcmask 523264  }
   0x4   :  { %v157_v10 = vadd.f32 %v156_v9, %v155_v7  ;;  %146 = vmatpush.bf16.msra.mxu0 %v3019_v53  ;;  %231 = vmatpush.bf16.msra.mxu1 %v3019_v53  ;;  %s2359_s17 = sshll.u32 %s4530_s14, 4  ;;  %s2360_s17 = int_to_ptr.hbm [resolvable:$true] %s2359_s17 }
   0x5   :  { %v59_v11 = vrot.slane %v58_v8, 4 }
   0x6   :  { %v158_v12 = vrot.slane %v157_v10, 4 }
   0x7   :  { %v60_v13 = vadd.f32 %v59_v11, %v58_v8  ;;  %v3153_v14 = vpop.eup %3152 }
   0x8   :  { %v159_v15 = vadd.f32 %v158_v12, %v157_v10  ;;  %v66_v17 = vmul.f32 16.0, %v3153_v14  ;;  %vm70_vm1 = vweird.f32 %v3153_v14 }
   0x9   :  { %v61_v16 = vrot.slane %v60_v13, 2 }
   0xa   :  { %v160_v18 = vrot.slane %v159_v15, 2  ;;  %v67_v20 = vsub.f32 1.0, %v66_v17 }
   0xb   :  { %v62_v19 = vadd.f32 %v61_v16, %v60_v13 }
   0xc   :  { %v161_v21 = vadd.f32 %v160_v18, %v159_v15  ;;  %v68_v23 = vmul.f32 %v3153_v14, %v67_v20  ;;  %v2402_v18 = vld [vmem:[%s4518_s2 + $0x30] sm:$0xf]  ;;  %v3026_v20 = vld [vmem:[%s4518_s2 + $0x34] sm:$0xf] }
   0xd   :  { %v63_v22 = vrot.slane %v62_v19, 1 }
   0xe   :  { %v162_v24 = vrot.slane %v161_v21, 1  ;;  %v69_v26 = vadd.f32 %v3153_v14, %v68_v23 }
   0xf   :  { %v64_v25 = vadd.f32 %v63_v22, %v62_v19  ;;  %v3027_v19 = vld [vmem:[%s4518_s2 + $0x34] sm:$0xf0]  ;;  %v2404_v22 = vld [vmem:[%s4518_s2 + $0x38] sm:$0xf0] }
  0x10   :  { %v163_v27 = vadd.f32 %v162_v24, %v161_v21  ;;  %v71_v28 = vsel %vm70_vm1, %v3153_v14, %v69_v26  ;;  %v2403_v21 = vor.u32 %v3027_v19, %v2402_v18  ;;  %v2407_v23 = vor.u32 %v3026_v20, %v2404_v22  ;;  %v2394_v26 = vld [vmem:[%s4518_s2 + $0x20] sm:$0xf]  ;;  %v3520_v19 = vld [vmem:[%s4527_s11 + $0x30] sm:$0xff] }
  0x11   :  { %v3368_v29 = vmul.f32 %v71_v28, %v64_v25 }
  0x12   :  { %v3370_v30 = vmul.f32 %v163_v27, %v71_v28  ;;  %340 = vmatpush.bf16.msra.mxu2 %v2403_v21  ;;  %354 = vmatpush.bf16.msra.mxu3 %v2407_v23  ;;  %v3025_v27 = vld [vmem:[%s4518_s2 + $0x24] sm:$0xf0]  ;;  %v3532_v23 = vld [vmem:[%s4527_s11 + $0x20] sm:$0xff] }
  0x13   :  { %v73_v31 = vsub.f32 %v53_v0, %v3368_v29  ;;  %v74_v32 = vsub.f32 %v54_v1, %v3368_v29  ;;  %v3526_v21 = vld [vmem:[%s4527_s11 + $0x28] sm:$0xff] }
  0x14   :  { %v165_v33 = vsub.f32 %v2373_v2, %v3370_v30  ;;  %v166_v34 = vsub.f32 %v2374_v6, %v3370_v30 }
  0x15   :  { %v75_v35 = vmul.f32 %v73_v31, %v73_v31  ;;  %v76_v36 = vmul.f32 %v74_v32, %v74_v32 }
  0x16   :  { %v167_v37 = vmul.f32 %v165_v33, %v165_v33  ;;  %v168_v38 = vmul.f32 %v166_v34, %v166_v34 }
  0x17   :  { %v77_v39 = vsel %vm55_vm0, %v75_v35, 0.0  ;;  %v78_v40 = vsel %vm55_vm0, %v76_v36, 0.0  ;;  %v3023_v35 = vld [vmem:[%s4518_s2 + $0x14] sm:$0xf0] }
  0x18   :  { %v169_v41 = vsel %vm55_vm0, %v167_v37, 0.0  ;;  %v170_v42 = vsel %vm55_vm0, %v168_v38, 0.0  ;;  %v79_v43 = vadd.f32 %v78_v40, %v77_v39  ;;  %v3022_v37 = vld [vmem:[%s4518_s2 + $0x14] sm:$0xf]  ;;  %v2388_v38 = vld [vmem:[%s4518_s2 + $0x18] sm:$0xf0] }
  0x19   :  { %v171_v44 = vadd.f32 %v170_v42, %v169_v41  ;;  %v2391_v39 = vor.u32 %v3022_v37, %v2388_v38  ;;  %v2378_v40 = vld [vmem:[%s4518_s2] sm:$0xf]  ;;  %v3021_v41 = vld [vmem:[%s4518_s2 + $0x4] sm:$0xf0]  ;;  %v3020_v42 = vld [vmem:[%s4518_s2 + $0x4] sm:$0xf] }
  0x1a   :  { %v80_v45 = vrot.slane %v79_v43, 4 }
  0x1b   :  { %v172_v46 = vrot.slane %v171_v44, 4 }
  0x1c   :  { %v81_v47 = vadd.f32 %v80_v45, %v79_v43  ;;  %v2379_v43 = vor.u32 %v3021_v41, %v2378_v40 }
  0x1d   :  { %v173_v48 = vadd.f32 %v172_v46, %v171_v44  ;;  %v2380_v44 = vld [vmem:[%s4518_s2 + $0x8] sm:$0xf0] }
  0x1e   :  { %v82_v49 = vrot.slane %v81_v47, 2  ;;  %v2383_v45 = vor.u32 %v3020_v42, %v2380_v44  ;;  %v3564_v42 = vld [vmem:[%s4528_s12 + $0x78] sm:$0xff]  ;;  %v3575_v44 = vld [vmem:[%s4528_s12 + $0x68] sm:$0xff] }
  0x1f   :  { %v174_v50 = vrot.slane %v173_v48, 2  ;;  %419 = vmatpush.msrb.mxu1 %v3564_v42 }
  0x20   :  { %v83_v51 = vadd.f32 %v82_v49, %v81_v47  ;;  %v49_v47 = vld [vmem:[%s4524_s8] sm:$0x7] }
  0x21   :  { %v175_v52 = vadd.f32 %v174_v50, %v173_v48  ;;  %v237_v48 = vperm.slane %v49_v47, 0  ;;  %v3593_v47 = vld [vmem:[%s4528_s12 + $0x50] sm:$0xff] }
  0x22   :  { %v84_v54 = vrot.slane %v83_v51, 1 }
  0x23   :  { %v176_v55 = vrot.slane %v175_v52, 1 }
  0x24   :  { %v85_v56 = vadd.f32 %v84_v54, %v83_v51 }
  0x25   :  { %v177_v57 = vadd.f32 %v176_v55, %v175_v52  ;;  %v3461_v55 = vld [vmem:[%s4523_s7] sm:$0xf] }
  0x26   :  { %v86_v58 = vmul.f32 %v85_v56, %v71_v28 }
  0x27   :  { %v178_v59 = vmul.f32 %v177_v57, %v71_v28  ;;  %v2395_v28 = vor.u32 %v3025_v27, %v2394_v26  ;;  %v287_v57 = vperm.slane %v3461_v55, 2  ;;  %v3544_v27 = vld [vmem:[%s4527_s11 + $0x10] sm:$0xff] }
  0x28   :  { %v3383_v60 = vadd.f32 1e-05, %v86_v58 }
  0x29   :  { %v3385_v61 = vadd.f32 1e-05, %v178_v59  ;;  %341 = vmatpush.bf16.msra.mxu2 %v2395_v28  ;;  %v291_v58 = vperm.slane %v287_v57, 0 }
  0x2a   :  { %3154 = vrsqrt.f32 %v3383_v60  ;;  %vm106_vm2 = vweird.f32 %v3383_v60 }
  0x2b   :  { %3156 = vrsqrt.f32 %v3385_v61  ;;  %vm198_vm4 = vweird.f32 %v3385_v61 }
  0x30   :  { %v3155_v62 = vpop.eup %3154 }
  0x31   :  { %v3157_v63 = vpop.eup %3156  ;;  %v89_v0 = vmul.f32 %v3155_v62, %v3383_v60  ;;  %vm107_vm3 = vweird.f32 %v3155_v62 }
  0x32   :  { %v181_v1 = vmul.f32 %v3157_v63, %v3385_v61  ;;  %vm199_vm5 = vweird.f32 %v3157_v63  ;;  %vm108_vm6 = vmor %vm106_vm2, %vm107_vm3 }
  0x33   :  { %v90_v2 = vmul.f32 %v3155_v62, %v89_v0  ;;  %vm200_vm7 = vmor %vm198_vm4, %vm199_vm5 }
  0x34   :  { %v182_v3 = vmul.f32 %v3157_v63, %v181_v1  ;;  %v3472_v1 = vld [vmem:[%s4527_s11 + $0x70] sm:$0xff] }
  0x35   :  { %v91_v4 = vmul.f32 0.5, %v90_v2 }
  0x36   :  { %v183_v5 = vmul.f32 0.5, %v182_v3  ;;  %v3478_v3 = vld [vmem:[%s4527_s11 + $0x68] sm:$0xff] }
  0x37   :  { %v92_v6 = vsub.f32 1.5, %v91_v4 }
  0x38   :  { %v184_v7 = vsub.f32 1.5, %v183_v5  ;;  %v3484_v5 = vld [vmem:[%s4527_s11 + $0x60] sm:$0xff] }
  0x39   :  { %v3393_v8 = vmul.f32 %v3155_v62, %v92_v6 }
  0x3a   :  { %v3395_v9 = vmul.f32 %v3157_v63, %v184_v7  ;;  %v3490_v7 = vld [vmem:[%s4527_s11 + $0x58] sm:$0xff] }
  0x3b   :  { %v109_v10 = vsel %vm108_vm6, %v3155_v62, %v3393_v8  ;;  %v3467_v62 = vld [vmem:[%s4527_s11 + $0x78] sm:$0xff] }
  0x3c   :  { %v110_v11 = vmul.f32 %v109_v10, %v73_v31  ;;  %v111_v12 = vmul.f32 %v109_v10, %v74_v32  ;;  %v201_v13 = vsel %vm200_vm7, %v3157_v63, %v3395_v9  ;;  %v3024_v31 = vld [vmem:[%s4518_s2 + $0x24] sm:$0xf]  ;;  %v2396_v32 = vld [vmem:[%s4518_s2 + $0x28] sm:$0xf0] }
  0x3d   :  { %v202_v14 = vmul.f32 %v201_v13, %v165_v33  ;;  %v203_v15 = vmul.f32 %v201_v13, %v166_v34  ;;  %v2399_v33 = vor.u32 %v3024_v31, %v2396_v32  ;;  %v2386_v34 = vld [vmem:[%s4518_s2 + $0x10] sm:$0xf]  ;;  %v3502_v13 = vld [vmem:[%s4527_s11 + $0x48] sm:$0xff] }
  0x3e   :  { %v112_v16 = vpack.c.bf16 %v111_v12, %v110_v11  ;;  %v2387_v36 = vor.u32 %v3023_v35, %v2386_v34  ;;  %v3496_v11 = vld [vmem:[%s4527_s11 + $0x50] sm:$0xff]  ;;  %v3550_v31 = vld [vmem:[%s4527_s11 + $0x8] sm:$0xff] }
  0x3f   :  { %v204_v17 = vpack.c.bf16 %v203_v15, %v202_v14  ;;  %355 = vmatpush.bf16.msra.mxu3 %v2399_v33  ;;  %v3508_v15 = vld [vmem:[%s4527_s11 + $0x40] sm:$0xff] }
  0x40   :  { %342 = vmatpush.bf16.msra.mxu2 %v2387_v36  ;;  %v3556_v33 = vld [vmem:[%s4527_s11] sm:$0xff]  ;;  %v286_v36 = vperm.slane %v3461_v55, 0 }
  0x41   :  { %3148 = vxpose.binary.xlu0.c.b16.start.end [1/2] (short) (narrow) %v204_v17, %v112_v16, 16  ;;  %v3514_v17 = vld [vmem:[%s4527_s11 + $0x38] sm:$0xff] }
  0x42   :  { %v290_v38 = vperm.slane %v286_v36, 0  ;;  %v3034_v36 = vld [vmem:[%s4519_s3 + $0x30] sm:$0xff] }
  0x43   :  { %356 = vmatpush.bf16.msra.mxu3 %v2391_v39 }
  0x44   :  { %343 = vmatpush.bf16.msra.mxu2 %v2379_v43  ;;  %v3569_v43 = vld [vmem:[%s4528_s12 + $0x70] sm:$0xff] }
  0x45   :  { %420 = vmatpush.msrb.mxu1 %v3569_v43 }
  0x47   :  { %357 = vmatpush.bf16.msra.mxu3 %v2383_v45  ;;  %v3581_v45 = vld [vmem:[%s4528_s12 + $0x60] sm:$0xff]  ;;  %421 = vmatpush.msrb.mxu1 %v3575_v44 }
  0x49   :  { %422 = vmatpush.msrb.mxu1 %v3581_v45 }
  0xed   :  { %v3149_v24 = vpop.trf.xlu0 }
  0xee   :  { %2372 = vmatmul.msk.bf16.vlgmr.msra.gmra.mxu0 %vm135_vm8, %v3149_v24 }
  0xf5   :  { %v3150_v25 = vpop.trf.xlu0 }
  0xf6   :  { %2375 = vmatmul.msk.bf16.vlgmr.msra.gmra.mxu1 %vm135_vm8, %v3150_v25  ;;  %v3538_v25 = vld [vmem:[%s4527_s11 + $0x18] sm:$0xff] }
 0x16b   :  { %v148_v46 = vpop.f32.mrf.mxu0 }
 0x16c   :  { %v3450_v51 = vadd.f32 %v237_v48, %v148_v46  ;;  %v3587_v46 = vld [vmem:[%s4528_s12 + $0x58] sm:$0xff] }
 0x16d   :  { %423 = vmatpush.msrb.mxu1 %v3587_v46 }
 0x16f   :  { %424 = vmatpush.msrb.mxu1 %v3593_v47 }
 0x173   :  { %v150_v49 = vpop.f32.mrf.mxu0  ;;  %v233_v50 = vpop.f32.mrf.mxu1 }
 0x174   :  { %v3452_v52 = vadd.f32 %v237_v48, %v233_v50  ;;  %v3599_v48 = vld [vmem:[%s4528_s12 + $0x48] sm:$0xff]  ;;  %v3605_v49 = vld [vmem:[%s4528_s12 + $0x40] sm:$0xff]  ;;  %v3611_v50 = vld [vmem:[%s4528_s12 + $0x38] sm:$0xff] }
 0x175   :  { %425 = vmatpush.msrb.mxu1 %v3599_v48 }
 0x176   :  { %v276_v53 = vpack.c.bf16 %v3452_v52, %v3450_v51 }
 0x177   :  { %426 = vmatpush.msrb.mxu1 %v3605_v49 }
 0x178   :  { %2408 = vmatmul.msk.bf16.vlgmr.msra.gmra.mxu2 %vm332_vm9, %v276_v53  ;;  %2409 = vmatmul.msk.bf16.vlgmr.msra.gmra.mxu3 %vm332_vm9, %v276_v53 }
 0x179   :  { %427 = vmatpush.msrb.mxu1 %v3611_v50 }
 0x17b   :  { %v235_v54 = vpop.f32.mrf.mxu1 }
 0x1fb   :  { %v359_v56 = vpop.f32.mrf.mxu3  ;;  %v345_v37 = vpop.f32.mrf.mxu2 }
 0x1fc   :  { %v360_v63 = vadd.f32 %v359_v56, %v291_v58  ;;  %v346_v39 = vadd.f32 %v345_v37, %v290_v38  ;;  %v3033_v37 = vld [vmem:[%s4519_s3 + $0x28] sm:$0xff] }
 0x1fe   :  { %v378_v4 = vmul.f32 %v360_v63, %v3472_v1  ;;  %v376_v10 = vmul.f32 %v360_v63, %v3484_v5  ;;  %v374_v14 = vmul.f32 %v360_v63, %v3496_v11  ;;  %v372_v18 = vmul.f32 %v360_v63, %v3508_v15 }
 0x1ff   :  { %v370_v22 = vmul.f32 %v360_v63, %v3520_v19  ;;  %v368_v26 = vmul.f32 %v360_v63, %v3532_v23  ;;  %v366_v32 = vmul.f32 %v360_v63, %v3544_v27  ;;  %v364_v35 = vmul.f32 %v360_v63, %v3556_v33  ;;  %v3630_v63 = vld [vmem:[%s4528_s12 + $0x20] sm:$0xff] }
 0x203   :  { %v361_v59 = vpop.f32.mrf.mxu3  ;;  %v347_v40 = vpop.f32.mrf.mxu2 }
 0x204   :  { %v362_v0 = vadd.f32 %v361_v59, %v291_v58  ;;  %v348_v41 = vadd.f32 %v347_v40, %v290_v38  ;;  %v3618_v58 = vld [vmem:[%s4528_s12 + $0x30] sm:$0xff]  ;;  %v3624_v59 = vld [vmem:[%s4528_s12 + $0x28] sm:$0xff] }
 0x205   :  { %428 = vmatpush.msrb.mxu1 %v3618_v58 }
 0x206   :  { %v379_v2 = vmul.f32 %v362_v0, %v3467_v62  ;;  %v377_v6 = vmul.f32 %v362_v0, %v3478_v3  ;;  %v375_v12 = vmul.f32 %v362_v0, %v3490_v7  ;;  %v373_v16 = vmul.f32 %v362_v0, %v3502_v13 }
 0x207   :  { %v371_v20 = vmul.f32 %v362_v0, %v3514_v17  ;;  %v369_v24 = vmul.f32 %v362_v0, %v3526_v21  ;;  %v367_v28 = vmul.f32 %v362_v0, %v3538_v25  ;;  %v365_v34 = vmul.f32 %v362_v0, %v3550_v31  ;;  %429 = vmatpush.msrb.mxu1 %v3624_v59  ;;  %v3635_v0 = vld [vmem:[%s4528_s12 + $0x18] sm:$0xff] }
 0x208   :  { %380 = vmatpush.xpose.msrb.mxu0 %v379_v2  ;;  %446 = vmatpush.msrb.mxu2 %v379_v2  ;;  %v3642_v2 = vld [vmem:[%s4528_s12 + $0x10] sm:$0xff] }
 0x209   :  { %430 = vmatpush.msrb.mxu1 %v3630_v63 }
 0x20a   :  { %447 = vmatpush.msrb.mxu2 %v378_v4 }
 0x20b   :  { %431 = vmatpush.msrb.mxu1 %v3635_v0 }
 0x20c   :  { %381 = vmatpush.xpose.msrb.mxu0 %v378_v4  ;;  %448 = vmatpush.msrb.mxu2 %v377_v6  ;;  %v3648_v4 = vld [vmem:[%s4528_s12 + $0x8] sm:$0xff] }
 0x20d   :  { %432 = vmatpush.msrb.mxu1 %v3642_v2 }
 0x20e   :  { %449 = vmatpush.msrb.mxu2 %v376_v10 }
 0x20f   :  { %433 = vmatpush.msrb.mxu1 %v3648_v4 }
 0x210   :  { %382 = vmatpush.xpose.msrb.mxu0 %v377_v6  ;;  %450 = vmatpush.msrb.mxu2 %v375_v12  ;;  %v3654_v6 = vld [vmem:[%s4528_s12] sm:$0xff] }
 0x211   :  { %434 = vmatpush.msrb.mxu1 %v3654_v6 }
 0x212   :  { %451 = vmatpush.msrb.mxu2 %v374_v14 }
 0x214   :  { %383 = vmatpush.xpose.msrb.mxu0 %v376_v10  ;;  %452 = vmatpush.msrb.mxu2 %v373_v16 }
 0x216   :  { %453 = vmatpush.msrb.mxu2 %v372_v18 }
 0x218   :  { %384 = vmatpush.xpose.msrb.mxu0 %v375_v12  ;;  %454 = vmatpush.msrb.mxu2 %v371_v20 }
 0x21a   :  { %455 = vmatpush.msrb.mxu2 %v370_v22 }
 0x21c   :  { %385 = vmatpush.xpose.msrb.mxu0 %v374_v14  ;;  %456 = vmatpush.msrb.mxu2 %v369_v24 }
 0x21e   :  { %457 = vmatpush.msrb.mxu2 %v368_v26 }
 0x220   :  { %386 = vmatpush.xpose.msrb.mxu0 %v373_v16  ;;  %458 = vmatpush.msrb.mxu2 %v367_v28 }
 0x222   :  { %459 = vmatpush.msrb.mxu2 %v366_v32 }
 0x224   :  { %387 = vmatpush.xpose.msrb.mxu0 %v372_v18  ;;  %460 = vmatpush.msrb.mxu2 %v365_v34 }
 0x226   :  { %461 = vmatpush.msrb.mxu2 %v364_v35 }
 0x228   :  { %388 = vmatpush.xpose.msrb.mxu0 %v371_v20  ;;  %v3660_v20 = vld [vmem:[%s4529_s13] sm:$0xff] }
 0x229   :  { %v3679_v38 = vsub.f32 1.0, %v3660_v20 }
 0x22c   :  { %389 = vmatpush.xpose.msrb.mxu0 %v370_v22 }
 0x230   :  { %390 = vmatpush.xpose.msrb.mxu0 %v369_v24 }
 0x234   :  { %391 = vmatpush.xpose.msrb.mxu0 %v368_v26 }
 0x238   :  { %392 = vmatpush.xpose.msrb.mxu0 %v367_v28  ;;  %v3666_v28 = vld [vmem:[%s4529_s13 + $0x8] sm:$0xff] }
 0x23c   :  { %393 = vmatpush.xpose.msrb.mxu0 %v366_v32 }
 0x240   :  { %394 = vmatpush.xpose.msrb.mxu0 %v365_v34 }
 0x244   :  { %395 = vmatpush.xpose.msrb.mxu0 %v364_v35  ;;  %v3035_v35 = vld [vmem:[%s4519_s3 + $0x38] sm:$0xff] }
 0x245   :  { %535 = vmatpush.bf16.msrb.mxu3 %v3035_v35 }
 0x247   :  { %396 = vmatmul.f32.vlgmr.msrb.gmra.mxu0 %v346_v39  ;;  %v3032_v39 = vld [vmem:[%s4519_s3 + $0x20] sm:$0xff] }
 0x249   :  { %536 = vmatpush.bf16.msrb.mxu3 %v3034_v36 }
 0x24d   :  { %537 = vmatpush.bf16.msrb.mxu3 %v3033_v37 }
 0x24f   :  { %399 = vmatmul.f32.gmra.mxu0 %v348_v41 }
 0x251   :  { %538 = vmatpush.bf16.msrb.mxu3 %v3032_v39 }
 0x2c4   :  { %v397_v53 = vpop.f32.mrf.mxu0 }
 0x2c5   :  { %v403_v54 = vmul.f32 0.35355338, %v397_v53  ;;  %v3031_v53 = vld [vmem:[%s4519_s3 + $0x18] sm:$0xff] }
 0x2c6   :  { %539 = vmatpush.bf16.msrb.mxu3 %v3031_v53 }
 0x2c7   :  { %405 = vmax.xlane.f32.xlu0 %v403_v54 }
 0x2cc   :  { %v400_v56 = vpop.f32.mrf.mxu0 }
 0x2cd   :  { %v404_v57 = vmul.f32 0.35355338, %v400_v56 }
 0x2cf   :  { %407 = vmax.xlane.f32.xlu1 %v404_v57 }
 0x33a   :  { %v406_v10 = vpop.xlane.xlu0 %405 }
 0x33b   :  { %v409_v12 = vsub.f32 %v403_v54, %v406_v10  ;;  %v3689_v54 = vsub.f32 1.0, %v3666_v28 }
 0x33d   :  { %v411_v14 = vmul.f32 1.442695, %v409_v12 }
 0x33f   :  { %3158 = vpow2.f32 %v411_v14 }
 0x342   :  { %v408_v16 = vpop.xlane.xlu1 %407 }
 0x343   :  { %v410_v18 = vsub.f32 %v404_v57, %v408_v16 }
 0x345   :  { %v3159_v22 = vpop.eup %3158  ;;  %v413_v24 = vmul.f32 1.442695, %v410_v18  ;;  %v3030_v18 = vld [vmem:[%s4519_s3 + $0x10] sm:$0xff] }
 0x346   :  { %v415_v26 = vmul.f32 %v3159_v22, %v3660_v20  ;;  %540 = vmatpush.bf16.msrb.mxu3 %v3030_v18  ;;  %v3029_v22 = vld [vmem:[%s4519_s3 + $0x8] sm:$0xff] }
 0x347   :  { %3160 = vpow2.f32 %v413_v24  ;;  %v3028_v24 = vld [vmem:[%s4519_s3] sm:$0xff] }
 0x348   :  { %435 = vmatmul.f32.vlgmr.msrb.gmra.mxu1 %v415_v26 }
 0x34a   :  { %541 = vmatpush.bf16.msrb.mxu3 %v3029_v22 }
 0x34d   :  { %v3161_v32 = vpop.eup %3160 }
 0x34e   :  { %v416_v34 = vmul.f32 %v3161_v32, %v3666_v28  ;;  %542 = vmatpush.bf16.msrb.mxu3 %v3028_v24 }
 0x350   :  { %438 = vmatmul.f32.gmra.mxu1 %v416_v34 }
 0x3c5   :  { %v436_v40 = vpop.f32.mrf.mxu1 }
 0x3c6   :  { %v437_v41 = vadd.f32 %v436_v40, %v3679_v38 }
 0x3c8   :  { %3162 = vrcp.f32 %v437_v41 }
 0x3cd   :  { %v439_v56 = vpop.f32.mrf.mxu1 }
 0x3ce   :  { %v3163_v57 = vpop.eup %3162  ;;  %v440_v10 = vadd.f32 %v439_v56, %v3689_v54 }
 0x3cf   :  { %v444_v12 = vmul.f32 %v3163_v57, %v415_v26 }
 0x3d0   :  { %3164 = vrcp.f32 %v440_v10 }
 0x3d1   :  { %462 = vmatmul.f32.vlgmr.msrb.gmra.mxu2 %v444_v12  ;;  %v3274_v12 = vmov 64.0  }
 0x3d2   :  { %3166 = vrcp.f32 %v3274_v12  ;;  %v3042_v12 = vld [vmem:[%s4520_s4 + $0x34] sm:$0xf] }
 0x3d6   :  { %v3165_v14 = vpop.eup %3164 }
 0x3d7   :  { %v445_v16 = vmul.f32 %v3165_v14, %v416_v34  ;;  %v3704_v34 = vld [vmem:[%s4522_s6] sm:$0x3f] }
 0x3d8   :  { %v486_v36 = vperm.slane %v3704_v34, 0  ;;  %v3167_v14 = vpop.eup %3166 }
 0x3d9   :  { %465 = vmatmul.f32.gmra.mxu2 %v445_v16  ;;  %v558_v16 = vmul.f32 64.0, %v3167_v14  ;;  %vm562_vm10 = vweird.f32 %v3167_v14 }
 0x3db   :  { %v559_v18 = vsub.f32 1.0, %v558_v16 }
 0x3dd   :  { %v560_v22 = vmul.f32 %v3167_v14, %v559_v18  ;;  %v2460_v18 = vld [vmem:[%s4520_s4 + $0x20] sm:$0xf] }
 0x3df   :  { %v561_v24 = vadd.f32 %v3167_v14, %v560_v22  ;;  %v3041_v22 = vld [vmem:[%s4520_s4 + $0x24] sm:$0xf0] }
 0x454   :  { %v463_v26 = vpop.f32.mrf.mxu2 }
 0x45c   :  { %v466_v32 = vpop.f32.mrf.mxu2 }
 0x45d   :  { %v469_v35 = vpack.c.bf16 %v466_v32, %v463_v26  ;;  %v3711_v26 = vsel %vm562_vm10, %v3167_v14, %v561_v24  ;;  %v2470_v14 = vld [vmem:[%s4520_s4 + $0x38] sm:$0xf0]  ;;  %v3040_v24 = vld [vmem:[%s4520_s4 + $0x24] sm:$0xf] }
 0x45e   :  { %v2473_v16 = vor.u32 %v3042_v12, %v2470_v14  ;;  %v3037_v14 = vld [vmem:[%s4520_s4 + $0x4] sm:$0xf0] }
 0x45f   :  { %543 = vmatmul.bf16.vlgmr.msrb.gmra.mxu3 %v469_v35 }
 0x460   :  { %684 = vmatpush.bf16.msra.mxu2 %v2473_v16  ;;  %v3036_v16 = vld [vmem:[%s4520_s4 + $0x4] sm:$0xf] }
 0x4e2   :  { %v544_v37 = vpop.f32.mrf.mxu3 }
 0x4e3   :  { %v545_v39 = vadd.f32 %v544_v37, %v486_v36 }
 0x4e5   :  { %v549_v40 = vadd.f32 %v545_v39, %v3450_v51 }
 0x4e7   :  { %v551_v41 = vsel %vm332_vm9, %v549_v40, 0.0 }
 0x4e8   :  { %552 = vadd.xlane.f32.xlu1 %v551_v41 }
 0x4ea   :  { %v546_v53 = vpop.f32.mrf.mxu3 }
 0x4eb   :  { %v547_v56 = vadd.f32 %v546_v53, %v486_v36 }
 0x4ed   :  { %v550_v57 = vadd.f32 %v547_v56, %v3452_v52 }
 0x4ef   :  { %v554_v10 = vsel %vm332_vm9, %v550_v57, 0.0 }
 0x4f0   :  { %555 = vadd.xlane.f32.xlu2 %v554_v10  ;;  %v3043_v10 = vld [vmem:[%s4520_s4 + $0x34] sm:$0xf0] }
 0x55b   :  { %v553_v51 = vpop.xlane.xlu1 %552 }
 0x55c   :  { %v564_v32 = vmul.f32 %v3711_v26, %v553_v51  ;;  %v2461_v51 = vor.u32 %v3041_v22, %v2460_v18 }
 0x55e   :  { %v3714_v35 = vsub.f32 %v549_v40, %v564_v32  ;;  %v2468_v40 = vld [vmem:[%s4520_s4 + $0x30] sm:$0xf]  ;;  %v2462_v32 = vld [vmem:[%s4520_s4 + $0x28] sm:$0xf0] }
 0x560   :  { %v568_v52 = vmul.f32 %v3714_v35, %v3714_v35 }
 0x562   :  { %v570_v36 = vsel %vm332_vm9, %v568_v52, 0.0  ;;  %v2465_v52 = vor.u32 %v3040_v24, %v2462_v32  ;;  %v2446_v24 = vld [vmem:[%s4520_s4 + $0x8] sm:$0xf0]  ;;  %v3051_v32 = vld [vmem:[%s4521_s5 + $0x38] sm:$0xff] }
 0x563   :  { %v556_v37 = vpop.xlane.xlu2 %555  ;;  %571 = vadd.xlane.f32.xlu2 %v570_v36  ;;  %v2452_v36 = vld [vmem:[%s4520_s4 + $0x10] sm:$0xf]  ;;  %829 = vmatpush.bf16.msra.mxu3 %v3051_v32 }
 0x564   :  { %v565_v39 = vmul.f32 %v3711_v26, %v556_v37  ;;  %685 = vmatpush.bf16.msra.mxu2 %v2465_v52  ;;  %v3039_v37 = vld [vmem:[%s4520_s4 + $0x14] sm:$0xf0] }
 0x565   :  { %v3059_v52 = vld [vmem:[%s4521_s5 + $0x78] sm:$0xff] }
 0x566   :  { %v3720_v41 = vsub.f32 %v550_v57, %v565_v39  ;;  %v2469_v57 = vor.u32 %v3043_v10, %v2468_v40  ;;  %v3038_v39 = vld [vmem:[%s4520_s4 + $0x14] sm:$0xf] }
 0x568   :  { %v569_v53 = vmul.f32 %v3720_v41, %v3720_v41  ;;  %670 = vmatpush.bf16.msra.mxu1 %v2469_v57  ;;  %v2444_v57 = vld [vmem:[%s4520_s4] sm:$0xf] }
 0x569   :  { %v2445_v22 = vor.u32 %v3037_v14, %v2444_v57  ;;  %v3057_v57 = vld [vmem:[%s4521_s5 + $0x68] sm:$0xff] }
 0x56a   :  { %v573_v56 = vsel %vm332_vm9, %v569_v53, 0.0  ;;  %v2453_v53 = vor.u32 %v3039_v37, %v2452_v36 }
 0x56b   :  { %574 = vadd.xlane.f32.xlu1 %v573_v56  ;;  %v2454_v56 = vld [vmem:[%s4520_s4 + $0x18] sm:$0xf0] }
 0x56c   :  { %671 = vmatpush.bf16.msra.mxu1 %v2461_v51  ;;  %v2457_v10 = vor.u32 %v3038_v39, %v2454_v56  ;;  %v2449_v51 = vor.u32 %v3036_v16, %v2446_v24  ;;  %v3050_v39 = vld [vmem:[%s4521_s5 + $0x30] sm:$0xff] }
 0x56d   :  { %830 = vmatpush.bf16.msra.mxu3 %v3050_v39 }
 0x56e   :  { %686 = vmatpush.bf16.msra.mxu2 %v2457_v10 }
 0x570   :  { %672 = vmatpush.bf16.msra.mxu1 %v2453_v53  ;;  %v3058_v53 = vld [vmem:[%s4521_s5 + $0x70] sm:$0xff] }
 0x572   :  { %687 = vmatpush.bf16.msra.mxu2 %v2449_v51 }
 0x574   :  { %673 = vmatpush.bf16.msra.mxu1 %v2445_v22  ;;  %v3048_v22 = vld [vmem:[%s4521_s5 + $0x20] sm:$0xff] }
 0x578   :  { %843 = vmatpush.bf16.msrb.mxu1 %v3059_v52 }
 0x57c   :  { %844 = vmatpush.bf16.msrb.mxu1 %v3058_v53 }
 0x580   :  { %845 = vmatpush.bf16.msrb.mxu1 %v3057_v57 }
 0x5d6   :  { %v572_v40 = vpop.xlane.xlu2 %571 }
 0x5d7   :  { %v576_v12 = vmul.f32 %v572_v40, %v3711_v26 }
 0x5d9   :  { %v578_v18 = vadd.f32 1e-05, %v576_v12  ;;  %v3049_v12 = vld [vmem:[%s4521_s5 + $0x28] sm:$0xff] }
 0x5da   :  { %831 = vmatpush.bf16.msra.mxu3 %v3049_v12 }
 0x5db   :  { %3168 = vrsqrt.f32 %v578_v18  ;;  %vm586_vm12 = vweird.f32 %v578_v18 }
 0x5de   :  { %v575_v36 = vpop.xlane.xlu1 %574  ;;  %832 = vmatpush.bf16.msra.mxu3 %v3048_v22 }
 0x5df   :  { %v577_v37 = vmul.f32 %v575_v36, %v3711_v26 }
 0x5e1   :  { %v3169_v56 = vpop.eup %3168  ;;  %v579_v40 = vadd.f32 1e-05, %v577_v37 }
 0x5e2   :  { %v581_v10 = vmul.f32 %v3169_v56, %v578_v18  ;;  %vm587_vm11 = vweird.f32 %v3169_v56 }
 0x5e3   :  { %3170 = vrsqrt.f32 %v579_v40  ;;  %vm588_vm13 = vmor %vm586_vm12, %vm587_vm11  ;;  %vm596_vm15 = vweird.f32 %v579_v40 }
 0x5e4   :  { %v582_v14 = vmul.f32 %v3169_v56, %v581_v10  ;;  %v602_v10 = vperm.slane %v3704_v34, 1 }
 0x5e6   :  { %v583_v16 = vmul.f32 0.5, %v582_v14 }
 0x5e8   :  { %v584_v24 = vsub.f32 1.5, %v583_v16  ;;  %v605_v16 = vperm.slane %v3704_v34, 2 }
 0x5e9   :  { %v3171_v51 = vpop.eup %3170 }
 0x5ea   :  { %v585_v32 = vmul.f32 %v3169_v56, %v584_v24  ;;  %v591_v52 = vmul.f32 %v3171_v51, %v579_v40  ;;  %vm597_vm14 = vweird.f32 %v3171_v51  ;;  %v3046_v40 = vld [vmem:[%s4521_s5 + $0x10] sm:$0xff] }
 0x5eb   :  { %vm598_vm1 = vmor %vm596_vm15, %vm597_vm14 }
 0x5ec   :  { %v592_v36 = vmul.f32 %v3171_v51, %v591_v52  ;;  %v589_v37 = vsel %vm588_vm13, %v3169_v56, %v585_v32 }
 0x5ed   :  { %v600_v12 = vmul.f32 %v589_v37, %v3714_v35  ;;  %v3047_v35 = vld [vmem:[%s4521_s5 + $0x18] sm:$0xff]  ;;  %v3054_v37 = vld [vmem:[%s4521_s5 + $0x50] sm:$0xff] }
 0x5ee   :  { %v593_v39 = vmul.f32 0.5, %v592_v36  ;;  %833 = vmatpush.bf16.msra.mxu3 %v3047_v35  ;;  %v3045_v36 = vld [vmem:[%s4521_s5 + $0x8] sm:$0xff] }
 0x5ef   :  { %v603_v24 = vmul.f32 %v602_v10, %v600_v12 }
 0x5f0   :  { %v594_v53 = vsub.f32 1.5, %v593_v39  ;;  %v3044_v39 = vld [vmem:[%s4521_s5] sm:$0xff] }
 0x5f1   :  { %v3800_v52 = vadd.f32 %v605_v16, %v603_v24  ;;  %v732_v24 = vperm.slane %v3704_v34, 5 }
 0x5f2   :  { %v595_v14 = vmul.f32 %v3171_v51, %v594_v53  ;;  %834 = vmatpush.bf16.msra.mxu3 %v3046_v40  ;;  %v3053_v53 = vld [vmem:[%s4521_s5 + $0x48] sm:$0xff] }
 0x5f4   :  { %v599_v57 = vsel %vm598_vm1, %v3171_v51, %v595_v14  ;;  %v3055_v51 = vld [vmem:[%s4521_s5 + $0x58] sm:$0xff] }
 0x5f5   :  { %v601_v22 = vmul.f32 %v599_v57, %v3720_v41  ;;  %v3056_v41 = vld [vmem:[%s4521_s5 + $0x60] sm:$0xff] }
 0x5f6   :  { %846 = vmatpush.bf16.msrb.mxu1 %v3056_v41  ;;  %835 = vmatpush.bf16.msra.mxu3 %v3045_v36 }
 0x5f7   :  { %v604_v18 = vmul.f32 %v602_v10, %v601_v22  ;;  %v3052_v10 = vld [vmem:[%s4521_s5 + $0x40] sm:$0xff] }
 0x5f9   :  { %v3802_v56 = vadd.f32 %v605_v16, %v604_v18 }
 0x5fa   :  { %847 = vmatpush.bf16.msrb.mxu1 %v3055_v51  ;;  %836 = vmatpush.bf16.msra.mxu3 %v3044_v39 }
 0x5fb   :  { %v608_v32 = vpack.c.bf16 %v3802_v56, %v3800_v52 }
 0x5fd   :  { %2474 = vmatmul.msk.bf16.vlgmr.msra.gmra.mxu1 %vm332_vm9, %v608_v32  ;;  %2475 = vmatmul.msk.bf16.vlgmr.msra.gmra.mxu2 %vm332_vm9, %v608_v32 }
 0x5fe   :  { %848 = vmatpush.bf16.msrb.mxu1 %v3054_v37  ;;  %1054 = vmatpush.msrb.mxu3 %v3564_v42  ;;  %v617_v42 = vperm.slane %v3461_v55, 1 }
 0x600   :  { %1055 = vmatpush.msrb.mxu3 %v3569_v43 }
 0x602   :  { %849 = vmatpush.bf16.msrb.mxu1 %v3053_v53  ;;  %1056 = vmatpush.msrb.mxu3 %v3575_v44  ;;  %v621_v44 = vperm.slane %v617_v42, 1 }
 0x604   :  { %1057 = vmatpush.msrb.mxu3 %v3581_v45  ;;  %v618_v45 = vperm.slane %v3461_v55, 3 }
 0x606   :  { %850 = vmatpush.bf16.msrb.mxu1 %v3052_v10  ;;  %1058 = vmatpush.msrb.mxu3 %v3587_v46 }
 0x608   :  { %1059 = vmatpush.msrb.mxu3 %v3593_v47 }
 0x60a   :  { %1060 = vmatpush.msrb.mxu3 %v3599_v48 }
 0x60c   :  { %1061 = vmatpush.msrb.mxu3 %v3605_v49  ;;  %v622_v49 = vperm.slane %v618_v45, 1 }
 0x60e   :  { %1062 = vmatpush.msrb.mxu3 %v3611_v50 }
 0x610   :  { %1063 = vmatpush.msrb.mxu3 %v3618_v58 }
 0x612   :  { %1064 = vmatpush.msrb.mxu3 %v3624_v59 }
 0x614   :  { %1065 = vmatpush.msrb.mxu3 %v3630_v63 }
 0x616   :  { %1066 = vmatpush.msrb.mxu3 %v3635_v0 }
 0x618   :  { %1067 = vmatpush.msrb.mxu3 %v3642_v2 }
 0x61a   :  { %1068 = vmatpush.msrb.mxu3 %v3648_v4 }
 0x61c   :  { %1069 = vmatpush.msrb.mxu3 %v3654_v6 }
 0x67a   :  { %v675_v43 = vpop.f32.mrf.mxu1 }
 0x67b   :  { %v676_v47 = vadd.f32 %v675_v43, %v621_v44 }
 0x67d   :  { %v694_v12 = vmax.f32 %v676_v47, 0.0  ;;  %v2576_v47 = vld [vmem:[%s4518_s2 + $0x70] sm:$0xf] }
 0x680   :  { %v689_v46 = vpop.f32.mrf.mxu2 }
 0x681   :  { %v690_v59 = vadd.f32 %v689_v46, %v622_v49 }
 0x682   :  { %v677_v48 = vpop.f32.mrf.mxu1 }
 0x683   :  { %v678_v50 = vadd.f32 %v677_v48, %v621_v44  ;;  %v695_v55 = vmax.f32 %v690_v59, 0.0  ;;  %v3067_v48 = vld [vmem:[%s4518_s2 + $0x74] sm:$0xf0]  ;;  %v2568_v59 = vld [vmem:[%s4518_s2 + $0x60] sm:$0xf] }
 0x685   :  { %v696_v58 = vmax.f32 %v678_v50, 0.0  ;;  %v2577_v50 = vor.u32 %v3067_v48, %v2576_v47 }
 0x687   :  { %v698_v14 = vpack.c.bf16 %v696_v58, %v694_v12  ;;  %v2578_v12 = vld [vmem:[%s4518_s2 + $0x78] sm:$0xf0]  ;;  %977 = vmatpush.bf16.msrb.mxu2 %v2577_v50 }
 0x688   :  { %v691_v63 = vpop.f32.mrf.mxu2 }
 0x689   :  { %v692_v57 = vadd.f32 %v691_v63, %v622_v49  ;;  %837 = vmatmul.bf16.vlgmr.msra.gmra.mxu3 %v698_v14  ;;  %v3066_v49 = vld [vmem:[%s4518_s2 + $0x74] sm:$0xf]  ;;  %v3065_v14 = vld [vmem:[%s4518_s2 + $0x64] sm:$0xf0]  ;;  %v3064_v63 = vld [vmem:[%s4518_s2 + $0x64] sm:$0xf] }
 0x68a   :  { %v2581_v58 = vor.u32 %v3066_v49, %v2578_v12 }
 0x68b   :  { %v697_v16 = vmax.f32 %v692_v57, 0.0  ;;  %v2569_v57 = vor.u32 %v3065_v14, %v2568_v59 }
 0x68c   :  { %991 = vmatpush.bf16.msra.mxu0 %v2581_v58 }
 0x68d   :  { %v699_v0 = vpack.c.bf16 %v697_v16, %v695_v55  ;;  %v2570_v55 = vld [vmem:[%s4518_s2 + $0x68] sm:$0xf0]  ;;  %978 = vmatpush.bf16.msrb.mxu2 %v2569_v57 }
 0x68e   :  { %v2573_v16 = vor.u32 %v3064_v63, %v2570_v55  ;;  %v903_v63 = vperm.slane %v3704_v34, 3 }
 0x68f   :  { %851 = vmatmul.bf16.vlgmr.msrb.gmra.mxu1 %v699_v0  ;;  %v2560_v0 = vld [vmem:[%s4518_s2 + $0x50] sm:$0xf] }
 0x690   :  { %992 = vmatpush.bf16.msra.mxu0 %v2573_v16 }
 0x70c   :  { %v838_v2 = vpop.f32.mrf.mxu3  ;;  %v852_v22 = vpop.f32.mrf.mxu1 }
 0x70d   :  { %v839_v18 = vadd.f32 %v838_v2, %v732_v24  ;;  %v3062_v2 = vld [vmem:[%s4518_s2 + $0x54] sm:$0xf] }
 0x70f   :  { %v853_v32 = vadd.f32 %v852_v22, %v839_v18  ;;  %v2562_v18 = vld [vmem:[%s4518_s2 + $0x58] sm:$0xf0] }
 0x711   :  { %v857_v4 = vadd.f32 %v853_v32, %v3800_v52 }
 0x713   :  { %v859_v35 = vsel %vm332_vm9, %v857_v4, 0.0 }
 0x714   :  { %v840_v6 = vpop.f32.mrf.mxu3  ;;  %860 = vadd.xlane.f32.xlu2 %v859_v35  ;;  %v854_v40 = vpop.f32.mrf.mxu1 }
 0x715   :  { %v841_v41 = vadd.f32 %v840_v6, %v732_v24  ;;  %v3063_v24 = vld [vmem:[%s4518_s2 + $0x54] sm:$0xf0]  ;;  %v2552_v6 = vld [vmem:[%s4518_s2 + $0x40] sm:$0xf] }
 0x716   :  { %v2561_v22 = vor.u32 %v3063_v24, %v2560_v0  ;;  %v906_v0 = vperm.slane %v3704_v34, 4 }
 0x717   :  { %v855_v51 = vadd.f32 %v854_v40, %v841_v41  ;;  %v3061_v41 = vld [vmem:[%s4518_s2 + $0x44] sm:$0xf0]  ;;  %v3060_v40 = vld [vmem:[%s4518_s2 + $0x44] sm:$0xf] }
 0x718   :  { %979 = vmatpush.bf16.msrb.mxu2 %v2561_v22 }
 0x719   :  { %v858_v36 = vadd.f32 %v855_v51, %v3802_v56 }
 0x71b   :  { %v862_v37 = vsel %vm332_vm9, %v858_v36, 0.0 }
 0x71c   :  { %863 = vadd.xlane.f32.xlu1 %v862_v37  ;;  %v2554_v37 = vld [vmem:[%s4518_s2 + $0x48] sm:$0xf0] }
 0x787   :  { %v861_v39 = vpop.xlane.xlu2 %860 }
 0x788   :  { %v865_v53 = vmul.f32 %v861_v39, %v3711_v26  ;;  %v2557_v39 = vor.u32 %v3060_v40, %v2554_v37 }
 0x78a   :  { %v3859_v10 = vsub.f32 %v857_v4, %v865_v53  ;;  %v2565_v4 = vor.u32 %v3062_v2, %v2562_v18 }
 0x78c   :  { %v869_v52 = vmul.f32 %v3859_v10, %v3859_v10  ;;  %993 = vmatpush.bf16.msra.mxu0 %v2565_v4 }
 0x78e   :  { %v871_v42 = vsel %vm332_vm9, %v869_v52, 0.0 }
 0x78f   :  { %v864_v43 = vpop.xlane.xlu1 %863  ;;  %872 = vadd.xlane.f32.xlu2 %v871_v42 }
 0x790   :  { %v866_v44 = vmul.f32 %v864_v43, %v3711_v26  ;;  %994 = vmatpush.bf16.msra.mxu0 %v2557_v39 }
 0x792   :  { %v3865_v45 = vsub.f32 %v858_v36, %v866_v44  ;;  %v2553_v36 = vor.u32 %v3061_v41, %v2552_v6 }
 0x794   :  { %v870_v56 = vmul.f32 %v3865_v45, %v3865_v45  ;;  %980 = vmatpush.bf16.msrb.mxu2 %v2553_v36 }
 0x796   :  { %v874_v46 = vsel %vm332_vm9, %v870_v56, 0.0 }
 0x797   :  { %875 = vadd.xlane.f32.xlu1 %v874_v46 }
 0x802   :  { %v873_v32 = vpop.xlane.xlu2 %872 }
 0x803   :  { %v877_v35 = vmul.f32 %v873_v32, %v3711_v26 }
 0x805   :  { %v879_v51 = vadd.f32 1e-05, %v877_v35 }
 0x807   :  { %3172 = vrsqrt.f32 %v879_v51  ;;  %vm887_vm3 = vweird.f32 %v879_v51 }
 0x80a   :  { %v876_v53 = vpop.xlane.xlu1 %875 }
 0x80b   :  { %v878_v52 = vmul.f32 %v876_v53, %v3711_v26 }
 0x80d   :  { %v3173_v42 = vpop.eup %3172  ;;  %v880_v43 = vadd.f32 1e-05, %v878_v52 }
 0x80e   :  { %v882_v44 = vmul.f32 %v3173_v42, %v879_v51  ;;  %vm888_vm2 = vweird.f32 %v3173_v42 }
 0x80f   :  { %3174 = vrsqrt.f32 %v880_v43  ;;  %vm889_vm4 = vmor %vm887_vm3, %vm888_vm2  ;;  %vm897_vm6 = vweird.f32 %v880_v43 }
 0x810   :  { %v883_v56 = vmul.f32 %v3173_v42, %v882_v44 }
 0x812   :  { %v884_v46 = vmul.f32 0.5, %v883_v56 }
 0x814   :  { %v885_v47 = vsub.f32 1.5, %v884_v46 }
 0x815   :  { %v3175_v48 = vpop.eup %3174 }
 0x816   :  { %v886_v49 = vmul.f32 %v3173_v42, %v885_v47  ;;  %v892_v50 = vmul.f32 %v3175_v48, %v880_v43  ;;  %vm898_vm5 = vweird.f32 %v3175_v48 }
 0x817   :  { %vm899_vm7 = vmor %vm897_vm6, %vm898_vm5 }
 0x818   :  { %v893_v12 = vmul.f32 %v3175_v48, %v892_v50  ;;  %v890_v58 = vsel %vm889_vm4, %v3173_v42, %v886_v49 }
 0x819   :  { %v901_v57 = vmul.f32 %v890_v58, %v3859_v10  ;;  %v3935_v10 = vld [vmem:[%s4523_s7 + $0x4] sm:$0xf] }
 0x81a   :  { %v894_v59 = vmul.f32 0.5, %v893_v12 }
 0x81b   :  { %v904_v24 = vmul.f32 %v903_v63, %v901_v57  ;;  %v3075_v57 = vld [vmem:[%s4519_s3 + $0x78] sm:$0xff] }
 0x81c   :  { %v895_v14 = vsub.f32 1.5, %v894_v59  ;;  %1171 = vmatpush.bf16.msra.mxu1 %v3075_v57 }
 0x81d   :  { %v3924_v18 = vadd.f32 %v906_v0, %v904_v24  ;;  %v3071_v24 = vld [vmem:[%s4519_s3 + $0x58] sm:$0xff] }
 0x81e   :  { %v896_v55 = vmul.f32 %v3175_v48, %v895_v14 }
 0x820   :  { %v900_v16 = vsel %vm899_vm7, %v3175_v48, %v896_v55  ;;  %v3074_v55 = vld [vmem:[%s4519_s3 + $0x70] sm:$0xff] }
 0x821   :  { %v902_v2 = vmul.f32 %v900_v16, %v3865_v45  ;;  %v925_v45 = vperm.slane %v3935_v10, 2  ;;  %1172 = vmatpush.bf16.msra.mxu1 %v3074_v55  ;;  %v2652_v55 = vld [vmem:[%s4520_s4 + $0x58] sm:$0xf0] }
 0x823   :  { %v905_v22 = vmul.f32 %v903_v63, %v902_v2  ;;  %v929_v35 = vperm.slane %v925_v45, 0 }
 0x825   :  { %v3926_v32 = vadd.f32 %v906_v0, %v905_v22 }
 0x827   :  { %v913_v4 = vpack.c.bf16 %v3926_v32, %v3924_v18 }
 0x829   :  { %2582 = vmatmul.msk.bf16.vlgmr.msrb.gmra.mxu2 %vm332_vm9, %v913_v4  ;;  %2583 = vmatmul.msk.bf16.vlgmr.msra.gmra.mxu0 %vm332_vm9, %v913_v4 }
 0x8a6   :  { %v996_v34 = vpop.f32.mrf.mxu0 }
 0x8a7   :  { %v997_v41 = vadd.f32 %v996_v34, %v929_v35 }
 0x8a9   :  { %v1015_v36 = vmul.f32 %v997_v41, %v3472_v1  ;;  %v1013_v39 = vmul.f32 %v997_v41, %v3484_v5  ;;  %v1011_v52 = vmul.f32 %v997_v41, %v3496_v11  ;;  %v1009_v1 = vmul.f32 %v997_v41, %v3508_v15 }
 0x8aa   :  { %v1007_v5 = vmul.f32 %v997_v41, %v3520_v19  ;;  %v1005_v11 = vmul.f32 %v997_v41, %v3532_v23  ;;  %v1003_v15 = vmul.f32 %v997_v41, %v3544_v27  ;;  %v1001_v19 = vmul.f32 %v997_v41, %v3556_v33  ;;  %v3069_v41 = vld [vmem:[%s4519_s3 + $0x48] sm:$0xff] }
 0x8ac   :  { %v982_v23 = vpop.f32.mrf.mxu2 }
 0x8ae   :  { %v998_v6 = vpop.f32.mrf.mxu0 }
 0x8af   :  { %v999_v40 = vadd.f32 %v998_v6, %v929_v35  ;;  %v3070_v6 = vld [vmem:[%s4519_s3 + $0x50] sm:$0xff] }
 0x8b1   :  { %v1016_v51 = vmul.f32 %v999_v40, %v3467_v62  ;;  %v1014_v37 = vmul.f32 %v999_v40, %v3478_v3  ;;  %v1012_v53 = vmul.f32 %v999_v40, %v3490_v7  ;;  %v1010_v62 = vmul.f32 %v999_v40, %v3502_v13 }
 0x8b2   :  { %v1008_v3 = vmul.f32 %v999_v40, %v3514_v17  ;;  %v1006_v7 = vmul.f32 %v999_v40, %v3526_v21  ;;  %v1004_v13 = vmul.f32 %v999_v40, %v3538_v25  ;;  %v1002_v17 = vmul.f32 %v999_v40, %v3550_v31  ;;  %v3068_v40 = vld [vmem:[%s4519_s3 + $0x40] sm:$0xff] }
 0x8b3   :  { %1017 = vmatpush.xpose.msra.mxu2 %v1016_v51  ;;  %1081 = vmatpush.msrb.mxu0 %v1016_v51  ;;  %v924_v21 = vperm.slane %v3935_v10, 0 }
 0x8b4   :  { %v984_v31 = vpop.f32.mrf.mxu2 }
 0x8b5   :  { %1082 = vmatpush.msrb.mxu0 %v1015_v36  ;;  %v928_v25 = vperm.slane %v924_v21, 0 }
 0x8b7   :  { %1018 = vmatpush.xpose.msra.mxu2 %v1015_v36  ;;  %1083 = vmatpush.msrb.mxu0 %v1014_v37  ;;  %v983_v27 = vadd.f32 %v982_v23, %v928_v25  ;;  %v985_v42 = vadd.f32 %v984_v31, %v928_v25 }
 0x8b9   :  { %1084 = vmatpush.msrb.mxu0 %v1013_v39 }
 0x8bb   :  { %1019 = vmatpush.xpose.msra.mxu2 %v1014_v37  ;;  %1085 = vmatpush.msrb.mxu0 %v1012_v53 }
 0x8bd   :  { %1086 = vmatpush.msrb.mxu0 %v1011_v52 }
 0x8bf   :  { %1020 = vmatpush.xpose.msra.mxu2 %v1013_v39  ;;  %1087 = vmatpush.msrb.mxu0 %v1010_v62  ;;  %v3986_v39 = vld [vmem:[%s4522_s6 + $0x8] sm:$0x3f] }
 0x8c1   :  { %1088 = vmatpush.msrb.mxu0 %v1009_v1 }
 0x8c3   :  { %1021 = vmatpush.xpose.msra.mxu2 %v1012_v53  ;;  %1089 = vmatpush.msrb.mxu0 %v1008_v3  ;;  %v1122_v53 = vperm.slane %v3986_v39, 0 }
 0x8c5   :  { %1090 = vmatpush.msrb.mxu0 %v1007_v5 }
 0x8c7   :  { %1022 = vmatpush.xpose.msra.mxu2 %v1011_v52  ;;  %1091 = vmatpush.msrb.mxu0 %v1006_v7 }
 0x8c9   :  { %1092 = vmatpush.msrb.mxu0 %v1005_v11 }
 0x8cb   :  { %1023 = vmatpush.xpose.msra.mxu2 %v1010_v62  ;;  %1093 = vmatpush.msrb.mxu0 %v1004_v13 }
 0x8cd   :  { %1094 = vmatpush.msrb.mxu0 %v1003_v15 }
 0x8cf   :  { %1024 = vmatpush.xpose.msra.mxu2 %v1009_v1  ;;  %1095 = vmatpush.msrb.mxu0 %v1002_v17 }
 0x8d1   :  { %1096 = vmatpush.msrb.mxu0 %v1001_v19 }
 0x8d3   :  { %1025 = vmatpush.xpose.msra.mxu2 %v1008_v3 }
 0x8d7   :  { %1026 = vmatpush.xpose.msra.mxu2 %v1007_v5 }
 0x8db   :  { %1027 = vmatpush.xpose.msra.mxu2 %v1006_v7 }
 0x8df   :  { %1028 = vmatpush.xpose.msra.mxu2 %v1005_v11 }
 0x8e3   :  { %1029 = vmatpush.xpose.msra.mxu2 %v1004_v13 }
 0x8e7   :  { %1030 = vmatpush.xpose.msra.mxu2 %v1003_v15 }
 0x8eb   :  { %1031 = vmatpush.xpose.msra.mxu2 %v1002_v17 }
 0x8ef   :  { %1032 = vmatpush.xpose.msra.mxu2 %v1001_v19 }
 0x8f2   :  { %1033 = vmatmul.f32.vlgmr.msra.gmra.mxu2 %v983_v27 }
 0x8fa   :  { %1036 = vmatmul.f32.gmra.mxu2 %v985_v42  ;;  %v2666_v42 = vld [vmem:[%s4520_s4 + $0x70] sm:$0xf] }
 0x975   :  { %v1034_v43 = vpop.f32.mrf.mxu2 }
 0x976   :  { %v1040_v33 = vmul.f32 0.35355338, %v1034_v43  ;;  %v3083_v43 = vld [vmem:[%s4520_s4 + $0x74] sm:$0xf0] }
 0x978   :  { %1042 = vmax.xlane.f32.xlu2 %v1040_v33 }
 0x97d   :  { %v1037_v44 = vpop.f32.mrf.mxu2 }
 0x97e   :  { %v1041_v56 = vmul.f32 0.35355338, %v1037_v44  ;;  %v2667_v44 = vor.u32 %v3083_v43, %v2666_v42 }
 0x980   :  { %1044 = vmax.xlane.f32.xlu1 %v1041_v56  ;;  %1300 = vmatpush.bf16.msra.mxu3 %v2667_v44 }
 0x9eb   :  { %v1043_v46 = vpop.xlane.xlu2 %1042 }
 0x9ec   :  { %v1046_v47 = vsub.f32 %v1040_v33, %v1043_v46  ;;  %v3082_v33 = vld [vmem:[%s4520_s4 + $0x74] sm:$0xf] }
 0x9ee   :  { %v1048_v48 = vmul.f32 1.442695, %v1046_v47  ;;  %v2658_v47 = vld [vmem:[%s4520_s4 + $0x60] sm:$0xf] }
 0x9f0   :  { %3176 = vpow2.f32 %v1048_v48  ;;  %v3081_v48 = vld [vmem:[%s4520_s4 + $0x64] sm:$0xf0] }
 0x9f3   :  { %v1045_v49 = vpop.xlane.xlu1 %1044 }
 0x9f4   :  { %v1047_v50 = vsub.f32 %v1041_v56, %v1045_v49  ;;  %v2668_v56 = vld [vmem:[%s4520_s4 + $0x78] sm:$0xf0]  ;;  %v3080_v49 = vld [vmem:[%s4520_s4 + $0x64] sm:$0xf] }
 0x9f5   :  { %v2671_v46 = vor.u32 %v3082_v33, %v2668_v56  ;;  %v1234_v33 = vperm.slane %v3986_v39, 2 }
 0x9f6   :  { %v3177_v12 = vpop.eup %3176  ;;  %v1050_v58 = vmul.f32 1.442695, %v1047_v50  ;;  %v2659_v50 = vor.u32 %v3081_v48, %v2658_v47 }
 0x9f7   :  { %v1052_v59 = vmul.f32 %v3177_v12, %v3660_v20  ;;  %v3073_v20 = vld [vmem:[%s4519_s3 + $0x68] sm:$0xff]  ;;  %1314 = vmatpush.bf16.msra.mxu0 %v2671_v46 }
 0x9f8   :  { %3178 = vpow2.f32 %v1050_v58  ;;  %1173 = vmatpush.bf16.msra.mxu1 %v3073_v20  ;;  %v2660_v12 = vld [vmem:[%s4520_s4 + $0x68] sm:$0xf0]  ;;  %1301 = vmatpush.bf16.msra.mxu3 %v2659_v50  ;;  %v3094_v50 = vld [vmem:[%s4521_s5 + $0xd0] sm:$0xff] }
 0x9f9   :  { %1070 = vmatmul.f32.vlgmr.msrb.gmra.mxu3 %v1052_v59  ;;  %v2663_v58 = vor.u32 %v3080_v49, %v2660_v12  ;;  %v3087_v12 = vld [vmem:[%s4521_s5 + $0x98] sm:$0xff] }
 0x9fb   :  { %1315 = vmatpush.bf16.msra.mxu0 %v2663_v58  ;;  %v3093_v58 = vld [vmem:[%s4521_s5 + $0xc8] sm:$0xff] }
 0x9fe   :  { %v3179_v14 = vpop.eup %3178 }
 0x9ff   :  { %v1053_v63 = vmul.f32 %v3179_v14, %v3666_v28  ;;  %v3072_v28 = vld [vmem:[%s4519_s3 + $0x60] sm:$0xff]  ;;  %v3079_v14 = vld [vmem:[%s4520_s4 + $0x54] sm:$0xf0] }
 0xa00   :  { %1174 = vmatpush.bf16.msra.mxu1 %v3072_v28 }
 0xa01   :  { %1073 = vmatmul.f32.gmra.mxu3 %v1053_v63 }
 0xa04   :  { %1175 = vmatpush.bf16.msra.mxu1 %v3071_v24  ;;  %v3077_v24 = vld [vmem:[%s4520_s4 + $0x44] sm:$0xf0] }
 0xa08   :  { %1176 = vmatpush.bf16.msra.mxu1 %v3070_v6  ;;  %v3091_v6 = vld [vmem:[%s4521_s5 + $0xb8] sm:$0xff] }
 0xa0c   :  { %1177 = vmatpush.bf16.msra.mxu1 %v3069_v41 }
 0xa10   :  { %1178 = vmatpush.bf16.msra.mxu1 %v3068_v40 }
 0xa14   :  { %1460 = vmatpush.bf16.msrb.mxu1 %v3091_v6  ;;  %v1247_v6 = vperm.slane %v3935_v10, 1 }
 0xa7c   :  { %v1071_v16 = vpop.f32.mrf.mxu3 }
 0xa7d   :  { %v1072_v0 = vadd.f32 %v1071_v16, %v3679_v38 }
 0xa7f   :  { %3180 = vrcp.f32 %v1072_v0  ;;  %v2642_v0 = vld [vmem:[%s4520_s4 + $0x40] sm:$0xf] }
 0xa84   :  { %v1074_v2 = vpop.f32.mrf.mxu3 }
 0xa85   :  { %v3181_v22 = vpop.eup %3180  ;;  %v1075_v4 = vadd.f32 %v1074_v2, %v3689_v54  ;;  %v3076_v2 = vld [vmem:[%s4520_s4 + $0x44] sm:$0xf] }
 0xa86   :  { %v1079_v34 = vmul.f32 %v3181_v22, %v1052_v59  ;;  %v2650_v59 = vld [vmem:[%s4520_s4 + $0x50] sm:$0xf] }
 0xa87   :  { %3182 = vrcp.f32 %v1075_v4  ;;  %v2651_v57 = vor.u32 %v3079_v14, %v2650_v59  ;;  %v2643_v4 = vor.u32 %v3077_v24, %v2642_v0  ;;  %v3086_v59 = vld [vmem:[%s4521_s5 + $0x90] sm:$0xff]  ;;  %v3092_v14 = vld [vmem:[%s4521_s5 + $0xc0] sm:$0xff]  ;;  %v3216_v0 = vld [vmem:[%s4528_s12 + $0x58] sm:$0xff] }
 0xa88   :  { %1097 = vmatmul.f32.vlgmr.msrb.gmra.mxu0 %v1079_v34  ;;  %v2644_v34 = vld [vmem:[%s4520_s4 + $0x48] sm:$0xf0]  ;;  %v3217_v24 = vld [vmem:[%s4528_s12 + $0x50] sm:$0xff] }
 0xa89   :  { %1302 = vmatpush.bf16.msra.mxu3 %v2651_v57  ;;  %v3084_v57 = vld [vmem:[%s4521_s5 + $0x80] sm:$0xff] }
 0xa8d   :  { %v3183_v45 = vpop.eup %3182  ;;  %1303 = vmatpush.bf16.msra.mxu3 %v2643_v4  ;;  %v3218_v4 = vld [vmem:[%s4528_s12 + $0x48] sm:$0xff] }
 0xa8e   :  { %v1080_v35 = vmul.f32 %v3183_v45, %v1053_v63  ;;  %v3078_v63 = vld [vmem:[%s4520_s4 + $0x54] sm:$0xf]  ;;  %v2647_v45 = vor.u32 %v3076_v2, %v2644_v34  ;;  %v1248_v2 = vperm.slane %v3935_v10, 3  ;;  %v3219_v34 = vld [vmem:[%s4528_s12 + $0x40] sm:$0xff] }
 0xa8f   :  { %v2655_v28 = vor.u32 %v3078_v63, %v2652_v55  ;;  %v3085_v63 = vld [vmem:[%s4521_s5 + $0x88] sm:$0xff]  ;;  %v3212_v55 = vld [vmem:[%s4528_s12 + $0x78] sm:$0xff] }
 0xa90   :  { %1100 = vmatmul.f32.gmra.mxu0 %v1080_v35  ;;  %v3099_v35 = vld [vmem:[%s4521_s5 + $0xf8] sm:$0xff] }
 0xa91   :  { %1316 = vmatpush.bf16.msra.mxu0 %v2655_v28  ;;  %1474 = vmatpush.bf16.msrb.mxu3 %v3099_v35  ;;  %v3214_v28 = vld [vmem:[%s4528_s12 + $0x68] sm:$0xff]  ;;  %v3220_v35 = vld [vmem:[%s4528_s12 + $0x38] sm:$0xff] }
 0xa95   :  { %1317 = vmatpush.bf16.msra.mxu0 %v2647_v45  ;;  %v1252_v45 = vperm.slane %v1248_v2, 1 }
 0xb05   :  { %v1098_v51 = vpop.f32.mrf.mxu0 }
 0xb0d   :  { %v1101_v36 = vpop.f32.mrf.mxu0 }
 0xb0e   :  { %v1104_v37 = vpack.c.bf16 %v1101_v36, %v1098_v51  ;;  %v3098_v51 = vld [vmem:[%s4521_s5 + $0xf0] sm:$0xff] }
 0xb0f   :  { %v3090_v36 = vld [vmem:[%s4521_s5 + $0xb0] sm:$0xff]  ;;  %1475 = vmatpush.bf16.msrb.mxu3 %v3098_v51 }
 0xb10   :  { %1179 = vmatmul.bf16.vlgmr.msra.gmra.mxu1 %v1104_v37 }
 0xb11   :  { %1461 = vmatpush.bf16.msrb.mxu1 %v3090_v36 }
 0xb8d   :  { %v1180_v52 = vpop.f32.mrf.mxu1 }
 0xb8e   :  { %v1181_v62 = vadd.f32 %v1180_v52, %v1122_v53 }
 0xb90   :  { %v1185_v1 = vadd.f32 %v1181_v62, %v3924_v18  ;;  %v3097_v62 = vld [vmem:[%s4521_s5 + $0xe8] sm:$0xff] }
 0xb91   :  { %1476 = vmatpush.bf16.msrb.mxu3 %v3097_v62  ;;  %v3223_v62 = vld [vmem:[%s4528_s12 + $0x20] sm:$0xff] }
 0xb92   :  { %v1187_v3 = vsel %vm332_vm9, %v1185_v1, 0.0 }
 0xb93   :  { %1188 = vadd.xlane.f32.xlu2 %v1187_v3 }
 0xb95   :  { %v1182_v5 = vpop.f32.mrf.mxu1 }
 0xb96   :  { %v1183_v7 = vadd.f32 %v1182_v5, %v1122_v53 }
 0xb98   :  { %v1186_v11 = vadd.f32 %v1183_v7, %v3926_v32  ;;  %v3096_v7 = vld [vmem:[%s4521_s5 + $0xe0] sm:$0xff] }
 0xb99   :  { %1477 = vmatpush.bf16.msrb.mxu3 %v3096_v7 }
 0xb9a   :  { %v1190_v13 = vsel %vm332_vm9, %v1186_v11, 0.0 }
 0xb9b   :  { %1191 = vadd.xlane.f32.xlu1 %v1190_v13 }
 0xc06   :  { %v1189_v15 = vpop.xlane.xlu2 %1188 }
 0xc07   :  { %v1193_v17 = vmul.f32 %v1189_v15, %v3711_v26 }
 0xc09   :  { %v3994_v19 = vsub.f32 %v1185_v1, %v1193_v17  ;;  %v3089_v1 = vld [vmem:[%s4521_s5 + $0xa8] sm:$0xff] }
 0xc0a   :  { %1462 = vmatpush.bf16.msrb.mxu1 %v3089_v1 }
 0xc0b   :  { %v1197_v21 = vmul.f32 %v3994_v19, %v3994_v19 }
 0xc0d   :  { %v1199_v18 = vsel %vm332_vm9, %v1197_v21, 0.0 }
 0xc0e   :  { %v1192_v23 = vpop.xlane.xlu1 %1191  ;;  %1200 = vadd.xlane.f32.xlu2 %v1199_v18 }
 0xc0f   :  { %v1194_v25 = vmul.f32 %v1192_v23, %v3711_v26 }
 0xc11   :  { %v4000_v27 = vsub.f32 %v1186_v11, %v1194_v25 }
 0xc13   :  { %v1198_v32 = vmul.f32 %v4000_v27, %v4000_v27 }
 0xc15   :  { %v1202_v31 = vsel %vm332_vm9, %v1198_v32, 0.0  ;;  %v1231_v32 = vperm.slane %v3986_v39, 1 }
 0xc16   :  { %1203 = vadd.xlane.f32.xlu1 %v1202_v31 }
 0xc81   :  { %v1201_v20 = vpop.xlane.xlu2 %1200 }
 0xc82   :  { %v1205_v16 = vmul.f32 %v1201_v20, %v3711_v26  ;;  %v3213_v20 = vld [vmem:[%s4528_s12 + $0x70] sm:$0xff] }
 0xc84   :  { %v1207_v22 = vadd.f32 1e-05, %v1205_v16  ;;  %v3215_v16 = vld [vmem:[%s4528_s12 + $0x60] sm:$0xff] }
 0xc86   :  { %3184 = vrsqrt.f32 %v1207_v22  ;;  %vm1215_vm10 = vweird.f32 %v1207_v22 }
 0xc89   :  { %v1204_v41 = vpop.xlane.xlu1 %1203 }
 0xc8a   :  { %v1206_v40 = vmul.f32 %v1204_v41, %v3711_v26 }
 0xc8c   :  { %v3185_v37 = vpop.eup %3184  ;;  %v1208_v53 = vadd.f32 1e-05, %v1206_v40  ;;  %v3221_v40 = vld [vmem:[%s4528_s12 + $0x30] sm:$0xff] }
 0xc8d   :  { %v1210_v52 = vmul.f32 %v3185_v37, %v1207_v22  ;;  %vm1216_vm8 = vweird.f32 %v3185_v37 }
 0xc8e   :  { %3186 = vrsqrt.f32 %v1208_v53  ;;  %vm1217_vm11 = vmor %vm1215_vm10, %vm1216_vm8  ;;  %vm1225_vm13 = vweird.f32 %v1208_v53 }
 0xc8f   :  { %v1211_v3 = vmul.f32 %v3185_v37, %v1210_v52 }
 0xc91   :  { %v1212_v5 = vmul.f32 0.5, %v1211_v3  ;;  %v3224_v3 = vld [vmem:[%s4528_s12 + $0x18] sm:$0xff] }
 0xc93   :  { %v1213_v11 = vsub.f32 1.5, %v1212_v5 }
 0xc94   :  { %v3187_v13 = vpop.eup %3186 }
 0xc95   :  { %v1214_v15 = vmul.f32 %v3185_v37, %v1213_v11  ;;  %v1220_v17 = vmul.f32 %v3187_v13, %v1208_v53  ;;  %vm1226_vm12 = vweird.f32 %v3187_v13  ;;  %v1251_v53 = vperm.slane %v1247_v6, 1 }
 0xc96   :  { %vm1227_vm14 = vmor %vm1225_vm13, %vm1226_vm12 }
 0xc97   :  { %v1221_v21 = vmul.f32 %v3187_v13, %v1220_v17  ;;  %v1218_v18 = vsel %vm1217_vm11, %v3185_v37, %v1214_v15  ;;  %v3222_v37 = vld [vmem:[%s4528_s12 + $0x28] sm:$0xff] }
 0xc98   :  { %v1229_v31 = vmul.f32 %v1218_v18, %v3994_v19  ;;  %v3095_v19 = vld [vmem:[%s4521_s5 + $0xd8] sm:$0xff]  ;;  %v3226_v17 = vld [vmem:[%s4528_s12 + $0x8] sm:$0xff] }
 0xc99   :  { %v1222_v23 = vmul.f32 0.5, %v1221_v21  ;;  %1478 = vmatpush.bf16.msrb.mxu3 %v3095_v19 }
 0xc9a   :  { %v1232_v44 = vmul.f32 %v1231_v32, %v1229_v31 }
 0xc9b   :  { %v1223_v25 = vsub.f32 1.5, %v1222_v23  ;;  %v3227_v23 = vld [vmem:[%s4528_s12] sm:$0xff] }
 0xc9c   :  { %v4080_v47 = vadd.f32 %v1234_v33, %v1232_v44 }
 0xc9d   :  { %v1224_v42 = vmul.f32 %v3187_v13, %v1223_v25  ;;  %1479 = vmatpush.bf16.msrb.mxu3 %v3094_v50 }
 0xc9f   :  { %v1228_v43 = vsel %vm1227_vm14, %v3187_v13, %v1224_v42  ;;  %v3225_v13 = vld [vmem:[%s4528_s12 + $0x10] sm:$0xff] }
 0xca0   :  { %v1230_v56 = vmul.f32 %v1228_v43, %v4000_v27  ;;  %v3088_v27 = vld [vmem:[%s4521_s5 + $0xa0] sm:$0xff] }
 0xca1   :  { %1463 = vmatpush.bf16.msrb.mxu1 %v3088_v27  ;;  %1480 = vmatpush.bf16.msrb.mxu3 %v3093_v58 }
 0xca2   :  { %v1233_v46 = vmul.f32 %v1231_v32, %v1230_v56  ;;  %v1363_v32 = vperm.slane %v3986_v39, 5 }
 0xca4   :  { %v4082_v48 = vadd.f32 %v1234_v33, %v1233_v46 }
 0xca5   :  { %1464 = vmatpush.bf16.msrb.mxu1 %v3087_v12  ;;  %1481 = vmatpush.bf16.msrb.mxu3 %v3092_v14 }
 0xca6   :  { %v1237_v49 = vpack.c.bf16 %v4082_v48, %v4080_v47 }
 0xca8   :  { %2672 = vmatmul.msk.bf16.vlgmr.msra.gmra.mxu3 %vm332_vm9, %v1237_v49  ;;  %2673 = vmatmul.msk.bf16.vlgmr.msra.gmra.mxu0 %vm332_vm9, %v1237_v49 }
 0xca9   :  { %1465 = vmatpush.bf16.msrb.mxu1 %v3086_v59 }
 0xcad   :  { %1466 = vmatpush.bf16.msrb.mxu1 %v3085_v63 }
 0xcb1   :  { %1467 = vmatpush.bf16.msrb.mxu1 %v3084_v57 }
 0xcb5   :  { %1685 = vmatpush.msra.mxu1 %v3212_v55 }
 0xcb7   :  { %1686 = vmatpush.msra.mxu1 %v3213_v20 }
 0xcb9   :  { %1687 = vmatpush.msra.mxu1 %v3214_v28 }
 0xcbb   :  { %1688 = vmatpush.msra.mxu1 %v3215_v16  ;;  %v2806_v16 = vld [vmem:[%s4518_s2 + $0xb0] sm:$0xf] }
 0xcbd   :  { %1689 = vmatpush.msra.mxu1 %v3216_v0  ;;  %v3107_v0 = vld [vmem:[%s4518_s2 + $0xb4] sm:$0xf0] }
 0xcbe   :  { %v2807_v2 = vor.u32 %v3107_v0, %v2806_v16 }
 0xcbf   :  { %1690 = vmatpush.msra.mxu1 %v3217_v24  ;;  %v3106_v24 = vld [vmem:[%s4518_s2 + $0xb4] sm:$0xf] }
 0xcc0   :  { %1608 = vmatpush.bf16.msrb.mxu0 %v2807_v2 }
 0xcc1   :  { %1691 = vmatpush.msra.mxu1 %v3218_v4 }
 0xcc3   :  { %1692 = vmatpush.msra.mxu1 %v3219_v34  ;;  %v2798_v34 = vld [vmem:[%s4518_s2 + $0xa0] sm:$0xf] }
 0xcc5   :  { %1693 = vmatpush.msra.mxu1 %v3220_v35  ;;  %v3104_v35 = vld [vmem:[%s4518_s2 + $0xa4] sm:$0xf] }
 0xcc7   :  { %1694 = vmatpush.msra.mxu1 %v3221_v40 }
 0xcc9   :  { %1695 = vmatpush.msra.mxu1 %v3222_v37  ;;  %v3102_v37 = vld [vmem:[%s4518_s2 + $0x94] sm:$0xf] }
 0xccb   :  { %1696 = vmatpush.msra.mxu1 %v3223_v62 }
 0xccd   :  { %1697 = vmatpush.msra.mxu1 %v3224_v3  ;;  %v2782_v3 = vld [vmem:[%s4518_s2 + $0x80] sm:$0xf] }
 0xccf   :  { %1698 = vmatpush.msra.mxu1 %v3225_v13 }
 0xcd1   :  { %1699 = vmatpush.msra.mxu1 %v3226_v17 }
 0xcd3   :  { %1700 = vmatpush.msra.mxu1 %v3227_v23 }
 0xd25   :  { %v1319_v22 = vpop.f32.mrf.mxu0 }
 0xd26   :  { %v1320_v51 = vadd.f32 %v1319_v22, %v1252_v45  ;;  %v2808_v22 = vld [vmem:[%s4518_s2 + $0xb8] sm:$0xf0] }
 0xd27   :  { %v2811_v4 = vor.u32 %v3106_v24, %v2808_v22 }
 0xd28   :  { %v1325_v10 = vmax.f32 %v1320_v51, 0.0  ;;  %v2790_v51 = vld [vmem:[%s4518_s2 + $0x90] sm:$0xf] }
 0xd29   :  { %1622 = vmatpush.bf16.msrb.mxu2 %v2811_v4  ;;  %v3228_v4 = vld [vmem:[%s4527_s11 + $0x78] sm:$0xff] }
 0xd2b   :  { %v1305_v41 = vpop.f32.mrf.mxu3 }
 0xd2c   :  { %v1306_v5 = vadd.f32 %v1305_v41, %v1251_v53  ;;  %v2800_v41 = vld [vmem:[%s4518_s2 + $0xa8] sm:$0xf0] }
 0xd2d   :  { %v1321_v36 = vpop.f32.mrf.mxu0  ;;  %v2803_v40 = vor.u32 %v3104_v35, %v2800_v41 }
 0xd2e   :  { %v1322_v52 = vadd.f32 %v1321_v36, %v1252_v45  ;;  %v1324_v21 = vmax.f32 %v1306_v5, 0.0  ;;  %v3105_v45 = vld [vmem:[%s4518_s2 + $0xa4] sm:$0xf0]  ;;  %v3103_v36 = vld [vmem:[%s4518_s2 + $0x94] sm:$0xf0] }
 0xd2f   :  { %v2799_v6 = vor.u32 %v3105_v45, %v2798_v34  ;;  %1623 = vmatpush.bf16.msrb.mxu2 %v2803_v40  ;;  %v3101_v5 = vld [vmem:[%s4518_s2 + $0x84] sm:$0xf0]  ;;  %v3229_v45 = vld [vmem:[%s4527_s11 + $0x70] sm:$0xff]  ;;  %v3231_v40 = vld [vmem:[%s4527_s11 + $0x60] sm:$0xff] }
 0xd30   :  { %v1327_v1 = vmax.f32 %v1322_v52, 0.0  ;;  %v2792_v52 = vld [vmem:[%s4518_s2 + $0x98] sm:$0xf0]  ;;  %v2783_v13 = vor.u32 %v3101_v5, %v2782_v3 }
 0xd31   :  { %1609 = vmatpush.bf16.msrb.mxu0 %v2799_v6  ;;  %v3230_v6 = vld [vmem:[%s4527_s11 + $0x68] sm:$0xff]  ;;  %v3236_v5 = vld [vmem:[%s4527_s11 + $0x38] sm:$0xff] }
 0xd32   :  { %v1329_v7 = vpack.c.bf16 %v1327_v1, %v1325_v10  ;;  %v2795_v10 = vor.u32 %v3102_v37, %v2792_v52 }
 0xd33   :  { %v1307_v11 = vpop.f32.mrf.mxu3 }
 0xd34   :  { %v1308_v15 = vadd.f32 %v1307_v11, %v1251_v53  ;;  %1482 = vmatmul.bf16.vlgmr.msrb.gmra.mxu3 %v1329_v7  ;;  %v2791_v53 = vor.u32 %v3103_v36, %v2790_v51  ;;  %1624 = vmatpush.bf16.msrb.mxu2 %v2795_v10  ;;  %v3100_v7 = vld [vmem:[%s4518_s2 + $0x84] sm:$0xf]  ;;  %v3232_v36 = vld [vmem:[%s4527_s11 + $0x58] sm:$0xff] }
 0xd36   :  { %v1326_v18 = vmax.f32 %v1308_v15, 0.0  ;;  %1610 = vmatpush.bf16.msrb.mxu0 %v2791_v53  ;;  %v2784_v15 = vld [vmem:[%s4518_s2 + $0x88] sm:$0xf0]  ;;  %v3233_v53 = vld [vmem:[%s4527_s11 + $0x50] sm:$0xff] }
 0xd37   :  { %v2787_v17 = vor.u32 %v3100_v7, %v2784_v15  ;;  %v3238_v15 = vld [vmem:[%s4527_s11 + $0x28] sm:$0xff] }
 0xd38   :  { %v1328_v25 = vpack.c.bf16 %v1326_v18, %v1324_v21 }
 0xd39   :  { %1625 = vmatpush.bf16.msrb.mxu2 %v2787_v17 }
 0xd3a   :  { %1468 = vmatmul.bf16.vlgmr.msrb.gmra.mxu1 %v1328_v25  ;;  %1611 = vmatpush.bf16.msrb.mxu0 %v2783_v13 }
 0xdb7   :  { %v1469_v31 = vpop.f32.mrf.mxu1  ;;  %v1483_v42 = vpop.f32.mrf.mxu3 }
 0xdb8   :  { %v1470_v43 = vadd.f32 %v1469_v31, %v1363_v32 }
 0xdba   :  { %v1484_v33 = vadd.f32 %v1483_v42, %v1470_v43 }
 0xdbc   :  { %v1488_v44 = vadd.f32 %v1484_v33, %v4080_v47 }
 0xdbe   :  { %v1490_v56 = vsel %vm332_vm9, %v1488_v44, 0.0 }
 0xdbf   :  { %v1471_v46 = vpop.f32.mrf.mxu1  ;;  %1491 = vadd.xlane.f32.xlu2 %v1490_v56  ;;  %v1485_v19 = vpop.f32.mrf.mxu3 }
 0xdc0   :  { %v1472_v49 = vadd.f32 %v1471_v46, %v1363_v32 }
 0xdc2   :  { %v1486_v27 = vadd.f32 %v1485_v19, %v1472_v49 }
 0xdc4   :  { %v1489_v50 = vadd.f32 %v1486_v27, %v4082_v48 }
 0xdc6   :  { %v1493_v12 = vsel %vm332_vm9, %v1489_v50, 0.0 }
 0xdc7   :  { %1494 = vadd.xlane.f32.xlu1 %v1493_v12 }
 0xe32   :  { %v1492_v58 = vpop.xlane.xlu2 %1491 }
 0xe33   :  { %v1496_v59 = vmul.f32 %v1492_v58, %v3711_v26 }
 0xe35   :  { %v4171_v14 = vsub.f32 %v1488_v44, %v1496_v59 }
 0xe37   :  { %v1500_v47 = vmul.f32 %v4171_v14, %v4171_v14 }
 0xe39   :  { %v1502_v63 = vsel %vm332_vm9, %v1500_v47, 0.0  ;;  %v1537_v47 = vperm.slane %v3986_v39, 4 }
 0xe3a   :  { %v1495_v57 = vpop.xlane.xlu1 %1494  ;;  %1503 = vadd.xlane.f32.xlu2 %v1502_v63 }
 0xe3b   :  { %v1497_v55 = vmul.f32 %v1495_v57, %v3711_v26 }
 0xe3d   :  { %v4177_v20 = vsub.f32 %v1489_v50, %v1497_v55  ;;  %v1534_v50 = vperm.slane %v3986_v39, 3 }
 0xe3f   :  { %v1501_v48 = vmul.f32 %v4177_v20, %v4177_v20 }
 0xe41   :  { %v1505_v28 = vsel %vm332_vm9, %v1501_v48, 0.0 }
 0xe42   :  { %1506 = vadd.xlane.f32.xlu1 %v1505_v28 }
 0xead   :  { %v1504_v62 = vpop.xlane.xlu2 %1503 }
 0xeae   :  { %v1508_v1 = vmul.f32 %v1504_v62, %v3711_v26  ;;  %v3234_v62 = vld [vmem:[%s4527_s11 + $0x48] sm:$0xff] }
 0xeb0   :  { %v1510_v11 = vadd.f32 1e-05, %v1508_v1  ;;  %v3235_v1 = vld [vmem:[%s4527_s11 + $0x40] sm:$0xff] }
 0xeb2   :  { %3188 = vrsqrt.f32 %v1510_v11  ;;  %vm1518_vm1 = vweird.f32 %v1510_v11 }
 0xeb5   :  { %v1507_v21 = vpop.xlane.xlu1 %1506 }
 0xeb6   :  { %v1509_v18 = vmul.f32 %v1507_v21, %v3711_v26  ;;  %v3239_v21 = vld [vmem:[%s4527_s11 + $0x20] sm:$0xff] }
 0xeb8   :  { %v3189_v23 = vpop.eup %3188  ;;  %v1511_v25 = vadd.f32 1e-05, %v1509_v18 }
 0xeb9   :  { %v1513_v32 = vmul.f32 %v3189_v23, %v1510_v11  ;;  %vm1519_vm15 = vweird.f32 %v3189_v23  ;;  %v3237_v11 = vld [vmem:[%s4527_s11 + $0x30] sm:$0xff] }
 0xeba   :  { %3190 = vrsqrt.f32 %v1511_v25  ;;  %vm1520_vm2 = vmor %vm1518_vm1, %vm1519_vm15  ;;  %vm1528_vm4 = vweird.f32 %v1511_v25 }
 0xebb   :  { %v1514_v31 = vmul.f32 %v3189_v23, %v1513_v32  ;;  %v3241_v32 = vld [vmem:[%s4527_s11 + $0x10] sm:$0xff] }
 0xebd   :  { %v1515_v42 = vmul.f32 0.5, %v1514_v31 }
 0xebf   :  { %v1516_v43 = vsub.f32 1.5, %v1515_v42  ;;  %v3242_v42 = vld [vmem:[%s4527_s11 + $0x8] sm:$0xff] }
 0xec0   :  { %v3191_v33 = vpop.eup %3190 }
 0xec1   :  { %v1517_v44 = vmul.f32 %v3189_v23, %v1516_v43  ;;  %v1523_v56 = vmul.f32 %v3191_v33, %v1511_v25  ;;  %vm1529_vm3 = vweird.f32 %v3191_v33 }
 0xec2   :  { %vm1530_vm5 = vmor %vm1528_vm4, %vm1529_vm3 }
 0xec3   :  { %v1524_v46 = vmul.f32 %v3191_v33, %v1523_v56  ;;  %v1521_v49 = vsel %vm1520_vm2, %v3189_v23, %v1517_v44  ;;  %v3240_v23 = vld [vmem:[%s4527_s11 + $0x18] sm:$0xff] }
 0xec4   :  { %v1532_v12 = vmul.f32 %v1521_v49, %v4171_v14  ;;  %v4247_v14 = vld [vmem:[%s4523_s7 + $0x8] sm:$0xf] }
 0xec5   :  { %v1525_v19 = vmul.f32 0.5, %v1524_v46  ;;  %v1555_v56 = vperm.slane %v4247_v14, 0 }
 0xec6   :  { %v1535_v63 = vmul.f32 %v1534_v50, %v1532_v12 }
 0xec7   :  { %v1526_v27 = vsub.f32 1.5, %v1525_v19  ;;  %v1559_v49 = vperm.slane %v1555_v56, 0 }
 0xec8   :  { %v4236_v48 = vadd.f32 %v1537_v47, %v1535_v63 }
 0xec9   :  { %v1527_v58 = vmul.f32 %v3191_v33, %v1526_v27 }
 0xecb   :  { %v1531_v59 = vsel %vm1530_vm5, %v3191_v33, %v1527_v58  ;;  %v3243_v33 = vld [vmem:[%s4527_s11] sm:$0xff] }
 0xecc   :  { %v1533_v57 = vmul.f32 %v1531_v59, %v4177_v20  ;;  %v1556_v20 = vperm.slane %v4247_v14, 2 }
 0xece   :  { %v1536_v55 = vmul.f32 %v1534_v50, %v1533_v57  ;;  %v1560_v0 = vperm.slane %v1556_v20, 0 }
 0xed0   :  { %v4238_v28 = vadd.f32 %v1537_v47, %v1536_v55 }
 0xed2   :  { %v1544_v16 = vpack.c.bf16 %v4238_v28, %v4236_v48 }
 0xed4   :  { %2812 = vmatmul.msk.bf16.vlgmr.msrb.gmra.mxu0 %vm332_vm9, %v1544_v16  ;;  %2813 = vmatmul.msk.bf16.vlgmr.msrb.gmra.mxu2 %vm332_vm9, %v1544_v16 }
 0xf51   :  { %v1613_v46 = vpop.f32.mrf.mxu0 }
 0xf52   :  { %v1614_v19 = vadd.f32 %v1613_v46, %v1559_v49 }
 0xf57   :  { %v1627_v39 = vpop.f32.mrf.mxu2 }
 0xf58   :  { %v1628_v2 = vadd.f32 %v1627_v39, %v1560_v0 }
 0xf59   :  { %v1615_v27 = vpop.f32.mrf.mxu0 }
 0xf5a   :  { %v1646_v35 = vmul.f32 %v3229_v45, %v1628_v2  ;;  %v1644_v51 = vmul.f32 %v3231_v40, %v1628_v2  ;;  %v1642_v52 = vmul.f32 %v3233_v53, %v1628_v2  ;;  %v1640_v3 = vmul.f32 %v3235_v1, %v1628_v2  ;;  %v3115_v45 = vld [vmem:[%s4519_s3 + $0xb8] sm:$0xff] }
 0xf5b   :  { %v1638_v13 = vmul.f32 %v3237_v11, %v1628_v2  ;;  %v1636_v18 = vmul.f32 %v3239_v21, %v1628_v2  ;;  %v1634_v31 = vmul.f32 %v3241_v32, %v1628_v2  ;;  %v1632_v44 = vmul.f32 %v3243_v33, %v1628_v2  ;;  %1802 = vmatpush.bf16.msra.mxu3 %v3115_v45  ;;  %v2882_v45 = vld [vmem:[%s4520_s4 + $0x98] sm:$0xf0] }
 0xf5c   :  { %v1616_v50 = vadd.f32 %v1615_v27, %v1559_v49 }
 0xf5f   :  { %v1629_v24 = vpop.f32.mrf.mxu2 }
 0xf60   :  { %v1630_v22 = vadd.f32 %v1629_v24, %v1560_v0  ;;  %v3244_v24 = vld [vmem:[%s4529_s13] sm:$0xff] }
 0xf62   :  { %v1647_v34 = vmul.f32 %v3228_v4, %v1630_v22  ;;  %v1645_v41 = vmul.f32 %v3230_v6, %v1630_v22  ;;  %v1643_v37 = vmul.f32 %v3232_v36, %v1630_v22  ;;  %v1641_v10 = vmul.f32 %v3234_v62, %v1630_v22  ;;  %v3245_v4 = vld [vmem:[%s4529_s13 + $0x8] sm:$0xff]  ;;  %v3111_v36 = vld [vmem:[%s4519_s3 + $0x98] sm:$0xff] }
 0xf63   :  { %v1639_v7 = vmul.f32 %v3236_v5, %v1630_v22  ;;  %v1637_v17 = vmul.f32 %v3238_v15, %v1630_v22  ;;  %v1635_v25 = vmul.f32 %v3240_v23, %v1630_v22  ;;  %v1633_v43 = vmul.f32 %v3242_v42, %v1630_v22  ;;  %v3113_v6 = vld [vmem:[%s4519_s3 + $0xa8] sm:$0xff] }
 0xf64   :  { %1648 = vmatpush.xpose.msra.mxu0 %v1647_v34  ;;  %1712 = vmatpush.msra.mxu2 %v1647_v34 }
 0xf66   :  { %1713 = vmatpush.msra.mxu2 %v1646_v35 }
 0xf68   :  { %1649 = vmatpush.xpose.msra.mxu0 %v1646_v35  ;;  %1714 = vmatpush.msra.mxu2 %v1645_v41  ;;  %v3114_v35 = vld [vmem:[%s4519_s3 + $0xb0] sm:$0xff] }
 0xf69   :  { %1803 = vmatpush.bf16.msra.mxu3 %v3114_v35 }
 0xf6a   :  { %1715 = vmatpush.msra.mxu2 %v1644_v51 }
 0xf6c   :  { %1650 = vmatpush.xpose.msra.mxu0 %v1645_v41  ;;  %1716 = vmatpush.msra.mxu2 %v1643_v37  ;;  %v3112_v41 = vld [vmem:[%s4519_s3 + $0xa0] sm:$0xff] }
 0xf6d   :  { %1804 = vmatpush.bf16.msra.mxu3 %v3113_v6 }
 0xf6e   :  { %1717 = vmatpush.msra.mxu2 %v1642_v52 }
 0xf70   :  { %1651 = vmatpush.xpose.msra.mxu0 %v1644_v51  ;;  %1718 = vmatpush.msra.mxu2 %v1641_v10 }
 0xf71   :  { %1805 = vmatpush.bf16.msra.mxu3 %v3112_v41 }
 0xf72   :  { %1719 = vmatpush.msra.mxu2 %v1640_v3 }
 0xf74   :  { %1652 = vmatpush.xpose.msra.mxu0 %v1643_v37  ;;  %1720 = vmatpush.msra.mxu2 %v1639_v7 }
 0xf75   :  { %1806 = vmatpush.bf16.msra.mxu3 %v3111_v36 }
 0xf76   :  { %1721 = vmatpush.msra.mxu2 %v1638_v13 }
 0xf78   :  { %1653 = vmatpush.xpose.msra.mxu0 %v1642_v52  ;;  %1722 = vmatpush.msra.mxu2 %v1637_v17 }
 0xf7a   :  { %1723 = vmatpush.msra.mxu2 %v1636_v18 }
 0xf7c   :  { %1654 = vmatpush.xpose.msra.mxu0 %v1641_v10  ;;  %1724 = vmatpush.msra.mxu2 %v1635_v25 }
 0xf7e   :  { %1725 = vmatpush.msra.mxu2 %v1634_v31 }
 0xf80   :  { %1655 = vmatpush.xpose.msra.mxu0 %v1640_v3  ;;  %1726 = vmatpush.msra.mxu2 %v1633_v43  ;;  %v3109_v3 = vld [vmem:[%s4519_s3 + $0x88] sm:$0xff] }
 0xf82   :  { %1727 = vmatpush.msra.mxu2 %v1632_v44 }
 0xf84   :  { %1656 = vmatpush.xpose.msra.mxu0 %v1639_v7 }
 0xf88   :  { %1657 = vmatpush.xpose.msra.mxu0 %v1638_v13  ;;  %v4334_v13 = vld [vmem:[%s4522_s6 + $0x10] sm:$0x3f] }
 0xf89   :  { %v1753_v15 = vperm.slane %v4334_v13, 0 }
 0xf8c   :  { %1658 = vmatpush.xpose.msra.mxu0 %v1637_v17 }
 0xf90   :  { %1659 = vmatpush.xpose.msra.mxu0 %v1636_v18 }
 0xf94   :  { %1660 = vmatpush.xpose.msra.mxu0 %v1635_v25 }
 0xf98   :  { %1661 = vmatpush.xpose.msra.mxu0 %v1634_v31 }
 0xf9c   :  { %1662 = vmatpush.xpose.msra.mxu0 %v1633_v43 }
 0xfa0   :  { %1663 = vmatpush.xpose.msra.mxu0 %v1632_v44 }
 0xfa3   :  { %1664 = vmatmul.f32.vlgmr.msra.gmra.mxu0 %v1614_v19 }
 0xfab   :  { %1667 = vmatmul.f32.gmra.mxu0 %v1616_v50  ;;  %v2896_v50 = vld [vmem:[%s4520_s4 + $0xb0] sm:$0xf] }
0x1020   :  { %v1665_v12 = vpop.f32.mrf.mxu0 }
0x1021   :  { %v1671_v58 = vmul.f32 0.35355338, %v1665_v12  ;;  %v3123_v12 = vld [vmem:[%s4520_s4 + $0xb4] sm:$0xf0] }
0x1023   :  { %1673 = vmax.xlane.f32.xlu2 %v1671_v58 }
0x1028   :  { %v1668_v59 = vpop.f32.mrf.mxu0 }
0x1029   :  { %v1672_v47 = vmul.f32 0.35355338, %v1668_v59  ;;  %v2897_v59 = vor.u32 %v3123_v12, %v2896_v50  ;;  %v1865_v50 = vperm.slane %v4334_v13, 2 }
0x102b   :  { %1675 = vmax.xlane.f32.xlu1 %v1672_v47  ;;  %1931 = vmatpush.bf16.msrb.mxu1 %v2897_v59 }
0x1096   :  { %v1674_v63 = vpop.xlane.xlu2 %1673 }
0x1097   :  { %v1677_v57 = vsub.f32 %v1671_v58, %v1674_v63  ;;  %v3122_v58 = vld [vmem:[%s4520_s4 + $0xb4] sm:$0xf] }
0x1099   :  { %v1679_v55 = vmul.f32 1.442695, %v1677_v57  ;;  %v2888_v57 = vld [vmem:[%s4520_s4 + $0xa0] sm:$0xf] }
0x109b   :  { %3192 = vpow2.f32 %v1679_v55  ;;  %v3121_v55 = vld [vmem:[%s4520_s4 + $0xa4] sm:$0xf0] }
0x109e   :  { %v1676_v16 = vpop.xlane.xlu1 %1675 }
0x109f   :  { %v1678_v39 = vsub.f32 %v1672_v47, %v1676_v16  ;;  %v2898_v47 = vld [vmem:[%s4520_s4 + $0xb8] sm:$0xf0]  ;;  %v3120_v16 = vld [vmem:[%s4520_s4 + $0xa4] sm:$0xf] }
0x10a0   :  { %v2901_v63 = vor.u32 %v3122_v58, %v2898_v47 }
0x10a1   :  { %v3193_v20 = vpop.eup %3192  ;;  %v1681_v0 = vmul.f32 1.442695, %v1678_v39  ;;  %v2889_v39 = vor.u32 %v3121_v55, %v2888_v57  ;;  %v3136_v55 = vld [vmem:[%s4521_s5 + $0x160] sm:$0xff] }
0x10a2   :  { %v1683_v2 = vmul.f32 %v3244_v24, %v3193_v20  ;;  %1945 = vmatpush.bf16.msrb.mxu2 %v2901_v63  ;;  %v2890_v20 = vld [vmem:[%s4520_s4 + $0xa8] sm:$0xf0]  ;;  %v2880_v24 = vld [vmem:[%s4520_s4 + $0x90] sm:$0xf] }
0x10a3   :  { %3194 = vpow2.f32 %v1681_v0  ;;  %v2893_v0 = vor.u32 %v3120_v16, %v2890_v20  ;;  %1932 = vmatpush.bf16.msrb.mxu1 %v2889_v39  ;;  %v3135_v16 = vld [vmem:[%s4521_s5 + $0x158] sm:$0xff]  ;;  %v3125_v39 = vld [vmem:[%s4521_s5 + $0x108] sm:$0xff]  ;;  %v3134_v20 = vld [vmem:[%s4521_s5 + $0x150] sm:$0xff] }
0x10a4   :  { %1701 = vmatmul.f32.vlgmr.msra.gmra.mxu1 %v1683_v2 }
0x10a6   :  { %1946 = vmatpush.bf16.msrb.mxu2 %v2893_v0  ;;  %v3124_v0 = vld [vmem:[%s4521_s5 + $0x100] sm:$0xff] }
0x10a9   :  { %v3195_v22 = vpop.eup %3194 }
0x10aa   :  { %v1684_v34 = vmul.f32 %v3245_v4, %v3195_v22  ;;  %v3118_v22 = vld [vmem:[%s4520_s4 + $0x94] sm:$0xf] }
0x10ab   :  { %v2885_v6 = vor.u32 %v3118_v22, %v2882_v45  ;;  %v1878_v22 = vperm.slane %v4247_v14, 1  ;;  %v1879_v45 = vperm.slane %v4247_v14, 3 }
0x10ac   :  { %1704 = vmatmul.f32.gmra.mxu1 %v1684_v34 }
0x10ad   :  { %1947 = vmatpush.bf16.msrb.mxu2 %v2885_v6 }
0x1121   :  { %v1702_v40 = vpop.f32.mrf.mxu1 }
0x1122   :  { %v1703_v51 = vadd.f32 %v1702_v40, %v3679_v38  ;;  %v3110_v38 = vld [vmem:[%s4519_s3 + $0x90] sm:$0xff]  ;;  %v2872_v40 = vld [vmem:[%s4520_s4 + $0x80] sm:$0xf] }
0x1123   :  { %1807 = vmatpush.bf16.msra.mxu3 %v3110_v38 }
0x1124   :  { %3196 = vrcp.f32 %v1703_v51  ;;  %v3117_v51 = vld [vmem:[%s4520_s4 + $0x84] sm:$0xf0] }
0x1125   :  { %v2873_v36 = vor.u32 %v3117_v51, %v2872_v40  ;;  %v1883_v40 = vperm.slane %v1879_v45, 1  ;;  %v2168_v45 = vperm.slane %v4334_v13, 4 }
0x1127   :  { %1808 = vmatpush.bf16.msra.mxu3 %v3109_v3  ;;  %v3130_v3 = vld [vmem:[%s4521_s5 + $0x130] sm:$0xff] }
0x1129   :  { %v1705_v37 = vpop.f32.mrf.mxu1 }
0x112a   :  { %v3197_v53 = vpop.eup %3196  ;;  %v1706_v52 = vadd.f32 %v1705_v37, %v3689_v54  ;;  %v3108_v54 = vld [vmem:[%s4519_s3 + $0x80] sm:$0xff] }
0x112b   :  { %v1710_v62 = vmul.f32 %v3197_v53, %v1683_v2  ;;  %1809 = vmatpush.bf16.msra.mxu3 %v3108_v54  ;;  %v3119_v2 = vld [vmem:[%s4520_s4 + $0x94] sm:$0xf0]  ;;  %v3116_v37 = vld [vmem:[%s4520_s4 + $0x84] sm:$0xf]  ;;  %v2874_v53 = vld [vmem:[%s4520_s4 + $0x88] sm:$0xf0] }
0x112c   :  { %3198 = vrcp.f32 %v1706_v52  ;;  %v2877_v52 = vor.u32 %v3116_v37, %v2874_v53  ;;  %v3138_v54 = vld [vmem:[%s4521_s5 + $0x170] sm:$0xff] }
0x112d   :  { %1728 = vmatmul.f32.vlgmr.msra.gmra.mxu2 %v1710_v62  ;;  %v3131_v62 = vld [vmem:[%s4521_s5 + $0x138] sm:$0xff] }
0x112e   :  { %1948 = vmatpush.bf16.msrb.mxu2 %v2877_v52 }
0x112f   :  { %2091 = vmatpush.bf16.msrb.mxu3 %v3131_v62 }
0x1132   :  { %v3199_v10 = vpop.eup %3198 }
0x1133   :  { %v1711_v1 = vmul.f32 %v3199_v10, %v1684_v34  ;;  %v2881_v34 = vor.u32 %v3119_v2, %v2880_v24  ;;  %v3139_v10 = vld [vmem:[%s4521_s5 + $0x178] sm:$0xff]  ;;  %2092 = vmatpush.bf16.msrb.mxu3 %v3130_v3  ;;  %v3133_v24 = vld [vmem:[%s4521_s5 + $0x148] sm:$0xff]  ;;  %v3132_v2 = vld [vmem:[%s4521_s5 + $0x140] sm:$0xff] }
0x1135   :  { %1731 = vmatmul.f32.gmra.mxu2 %v1711_v1  ;;  %1933 = vmatpush.bf16.msrb.mxu1 %v2881_v34  ;;  %v1882_v34 = vperm.slane %v1878_v22, 1 }
0x1139   :  { %1934 = vmatpush.bf16.msrb.mxu1 %v2873_v36 }
0x113d   :  { %2105 = vmatpush.bf16.msra.mxu1 %v3139_v10 }
0x1141   :  { %2106 = vmatpush.bf16.msra.mxu1 %v3138_v54  ;;  %v1994_v54 = vperm.slane %v4334_v13, 5 }
0x11b0   :  { %v1729_v5 = vpop.f32.mrf.mxu2 }
0x11b8   :  { %v1732_v7 = vpop.f32.mrf.mxu2 }
0x11b9   :  { %v1735_v11 = vpack.c.bf16 %v1732_v7, %v1729_v5 }
0x11bb   :  { %1810 = vmatmul.bf16.vlgmr.msra.gmra.mxu3 %v1735_v11 }
0x123e   :  { %v1811_v17 = vpop.f32.mrf.mxu3 }
0x123f   :  { %v1812_v21 = vadd.f32 %v1811_v17, %v1753_v15  ;;  %v3137_v17 = vld [vmem:[%s4521_s5 + $0x168] sm:$0xff] }
0x1240   :  { %2107 = vmatpush.bf16.msra.mxu1 %v3137_v17 }
0x1241   :  { %v1816_v18 = vadd.f32 %v1812_v21, %v4236_v48 }
0x1243   :  { %v1818_v23 = vsel %vm332_vm9, %v1816_v18, 0.0 }
0x1244   :  { %1819 = vadd.xlane.f32.xlu2 %v1818_v23  ;;  %v3128_v23 = vld [vmem:[%s4521_s5 + $0x120] sm:$0xff]  ;;  %2108 = vmatpush.bf16.msra.mxu1 %v3136_v55 }
0x1246   :  { %v1813_v25 = vpop.f32.mrf.mxu3 }
0x1247   :  { %v1814_v32 = vadd.f32 %v1813_v25, %v1753_v15  ;;  %v3129_v15 = vld [vmem:[%s4521_s5 + $0x128] sm:$0xff] }
0x1248   :  { %2093 = vmatpush.bf16.msrb.mxu3 %v3129_v15  ;;  %2109 = vmatpush.bf16.msra.mxu1 %v3135_v16 }
0x1249   :  { %v1817_v31 = vadd.f32 %v1814_v32, %v4238_v28 }
0x124b   :  { %v1821_v42 = vsel %vm332_vm9, %v1817_v31, 0.0 }
0x124c   :  { %1822 = vadd.xlane.f32.xlu1 %v1821_v42  ;;  %2094 = vmatpush.bf16.msrb.mxu3 %v3128_v23 }
0x124d   :  { %2110 = vmatpush.bf16.msra.mxu1 %v3134_v20 }
0x1251   :  { %2111 = vmatpush.bf16.msra.mxu1 %v3133_v24 }
0x1255   :  { %2112 = vmatpush.bf16.msra.mxu1 %v3132_v2  ;;  %v2165_v2 = vperm.slane %v4334_v13, 3 }
0x12b7   :  { %v1820_v43 = vpop.xlane.xlu2 %1819 }
0x12b8   :  { %v1824_v33 = vmul.f32 %v1820_v43, %v3711_v26 }
0x12ba   :  { %v4342_v44 = vsub.f32 %v1816_v18, %v1824_v33 }
0x12bc   :  { %v1828_v56 = vmul.f32 %v4342_v44, %v4342_v44 }
0x12be   :  { %v1830_v48 = vsel %vm332_vm9, %v1828_v56, 0.0 }
0x12bf   :  { %v1823_v46 = vpop.xlane.xlu1 %1822  ;;  %1831 = vadd.xlane.f32.xlu2 %v1830_v48 }
0x12c0   :  { %v1825_v49 = vmul.f32 %v1823_v46, %v3711_v26  ;;  %v1862_v46 = vperm.slane %v4334_v13, 1 }
0x12c2   :  { %v4348_v19 = vsub.f32 %v1817_v31, %v1825_v49 }
0x12c4   :  { %v1829_v28 = vmul.f32 %v4348_v19, %v4348_v19 }
0x12c6   :  { %v1833_v27 = vsel %vm332_vm9, %v1829_v28, 0.0 }
0x12c7   :  { %1834 = vadd.xlane.f32.xlu1 %v1833_v27 }
0x1332   :  { %v1832_v4 = vpop.xlane.xlu2 %1831 }
0x1333   :  { %v1836_v35 = vmul.f32 %v1832_v4, %v3711_v26 }
0x1335   :  { %v1838_v41 = vadd.f32 1e-05, %v1836_v35 }
0x1337   :  { %3200 = vrsqrt.f32 %v1838_v41  ;;  %vm1846_vm7 = vweird.f32 %v1838_v41 }
0x133a   :  { %v1835_v1 = vpop.xlane.xlu1 %1834 }
0x133b   :  { %v1837_v38 = vmul.f32 %v1835_v1, %v3711_v26 }
0x133d   :  { %v3201_v5 = vpop.eup %3200  ;;  %v1839_v7 = vadd.f32 1e-05, %v1837_v38 }
0x133e   :  { %v1841_v11 = vmul.f32 %v3201_v5, %v1838_v41  ;;  %vm1847_vm6 = vweird.f32 %v3201_v5 }
0x133f   :  { %3202 = vrsqrt.f32 %v1839_v7  ;;  %vm1848_vm8 = vmor %vm1846_vm7, %vm1847_vm6  ;;  %vm1856_vm11 = vweird.f32 %v1839_v7 }
0x1340   :  { %v1842_v21 = vmul.f32 %v3201_v5, %v1841_v11 }
0x1342   :  { %v1843_v18 = vmul.f32 0.5, %v1842_v21 }
0x1344   :  { %v1844_v25 = vsub.f32 1.5, %v1843_v18 }
0x1345   :  { %v3203_v32 = vpop.eup %3202 }
0x1346   :  { %v1845_v31 = vmul.f32 %v3201_v5, %v1844_v25  ;;  %v1851_v42 = vmul.f32 %v3203_v32, %v1839_v7  ;;  %vm1857_vm10 = vweird.f32 %v3203_v32 }
0x1347   :  { %vm1858_vm12 = vmor %vm1856_vm11, %vm1857_vm10  ;;  %vm2274_vm11 = vcmask 58369  }
0x1348   :  { %v1852_v43 = vmul.f32 %v3203_v32, %v1851_v42  ;;  %v1849_v33 = vsel %vm1848_vm8, %v3201_v5, %v1845_v31 }
0x1349   :  { %v1860_v49 = vmul.f32 %v1849_v33, %v4342_v44  ;;  %v3127_v44 = vld [vmem:[%s4521_s5 + $0x118] sm:$0xff] }
0x134a   :  { %v1853_v56 = vmul.f32 0.5, %v1852_v43  ;;  %2095 = vmatpush.bf16.msrb.mxu3 %v3127_v44 }
0x134b   :  { %v1863_v12 = vmul.f32 %v1862_v46, %v1860_v49 }
0x134c   :  { %v1854_v48 = vsub.f32 1.5, %v1853_v56 }
0x134d   :  { %v1866_v47 = vadd.f32 %v1865_v50, %v1863_v12 }
0x134e   :  { %v1855_v28 = vmul.f32 %v3203_v32, %v1854_v48 }
0x1350   :  { %v1859_v27 = vsel %vm1858_vm12, %v3203_v32, %v1855_v28  ;;  %vm97_vm12 = vcmp.eq.f32.partialorder %v3383_v60, 0.0 }
0x1351   :  { %v1861_v58 = vmul.f32 %v1859_v27, %v4348_v19  ;;  %v3126_v19 = vld [vmem:[%s4521_s5 + $0x110] sm:$0xff] }
0x1352   :  { %2096 = vmatpush.bf16.msrb.mxu3 %v3126_v19 }
0x1353   :  { %v1864_v59 = vmul.f32 %v1862_v46, %v1861_v58 }
0x1355   :  { %v1867_v63 = vadd.f32 %v1865_v50, %v1864_v59 }
0x1356   :  { %2097 = vmatpush.bf16.msrb.mxu3 %v3125_v39 }
0x1357   :  { %v1868_v57 = vpack.c.bf16 %v1867_v63, %v1866_v47 }
0x1359   :  { %2902 = vmatmul.msk.bf16.vlgmr.msrb.gmra.mxu1 %vm332_vm9, %v1868_v57  ;;  %2903 = vmatmul.msk.bf16.vlgmr.msrb.gmra.mxu2 %vm332_vm9, %v1868_v57 }
0x135a   :  { %2098 = vmatpush.bf16.msrb.mxu3 %v3124_v0 }
0x13d6   :  { %v1936_v4 = vpop.f32.mrf.mxu1 }
0x13d7   :  { %v1937_v6 = vadd.f32 %v1936_v4, %v1882_v34 }
0x13d9   :  { %v1955_v36 = vmax.f32 %v1937_v6, 0.0 }
0x13dc   :  { %v1950_v35 = vpop.f32.mrf.mxu2 }
0x13dd   :  { %v1951_v53 = vadd.f32 %v1950_v35, %v1883_v40 }
0x13de   :  { %v1938_v41 = vpop.f32.mrf.mxu1 }
0x13df   :  { %v1939_v51 = vadd.f32 %v1938_v41, %v1882_v34  ;;  %v1956_v1 = vmax.f32 %v1951_v53, 0.0 }
0x13e1   :  { %v1957_v37 = vmax.f32 %v1939_v51, 0.0 }
0x13e3   :  { %v1959_v52 = vpack.c.bf16 %v1957_v37, %v1955_v36 }
0x13e4   :  { %v1952_v62 = vpop.f32.mrf.mxu2 }
0x13e5   :  { %v1953_v10 = vadd.f32 %v1952_v62, %v1883_v40  ;;  %2099 = vmatmul.bf16.vlgmr.msrb.gmra.mxu3 %v1959_v52 }
0x13e7   :  { %v1958_v38 = vmax.f32 %v1953_v10, 0.0 }
0x13e9   :  { %v1960_v3 = vpack.c.bf16 %v1958_v38, %v1956_v1 }
0x13eb   :  { %2113 = vmatmul.bf16.vlgmr.msra.gmra.mxu1 %v1960_v3 }
0x1468   :  { %v2100_v5 = vpop.f32.mrf.mxu3  ;;  %v2114_v14 = vpop.f32.mrf.mxu1 }
0x1469   :  { %v2101_v7 = vadd.f32 %v2100_v5, %v1994_v54 }
0x146b   :  { %v2115_v11 = vadd.f32 %v2114_v14, %v2101_v7 }
0x146d   :  { %v2119_v15 = vadd.f32 %v2115_v11, %v1866_v47 }
0x146f   :  { %v2121_v17 = vsel %vm332_vm9, %v2119_v15, 0.0 }
0x1470   :  { %v2102_v21 = vpop.f32.mrf.mxu3  ;;  %2122 = vadd.xlane.f32.xlu2 %v2121_v17  ;;  %v2116_v23 = vpop.f32.mrf.mxu1  ;;  %v3143_v17 = vld [vmem:[%s4525_s9 + $0x18] sm:$0xff] }
0x1471   :  { %v2103_v18 = vadd.f32 %v2102_v21, %v1994_v54  ;;  %2262 = vmatpush.bf16.msra.mxu2 %v3143_v17  ;;  %v3142_v21 = vld [vmem:[%s4525_s9 + $0x10] sm:$0xff] }
0x1473   :  { %v2117_v25 = vadd.f32 %v2116_v23, %v2103_v18  ;;  %v3141_v23 = vld [vmem:[%s4525_s9 + $0x8] sm:$0xff] }
0x1475   :  { %v2120_v32 = vadd.f32 %v2117_v25, %v1867_v63  ;;  %2263 = vmatpush.bf16.msra.mxu2 %v3142_v21 }
0x1477   :  { %v2124_v31 = vsel %vm332_vm9, %v2120_v32, 0.0 }
0x1478   :  { %2125 = vadd.xlane.f32.xlu1 %v2124_v31  ;;  %v3140_v31 = vld [vmem:[%s4525_s9] sm:$0xff] }
0x1479   :  { %2264 = vmatpush.bf16.msra.mxu2 %v3141_v23 }
0x147d   :  { %2265 = vmatpush.bf16.msra.mxu2 %v3140_v31 }
0x14e3   :  { %v2123_v42 = vpop.xlane.xlu2 %2122 }
0x14e4   :  { %v2127_v43 = vmul.f32 %v2123_v42, %v3711_v26 }
0x14e6   :  { %v2129_v33 = vsub.f32 %v2119_v15, %v2127_v43 }
0x14e8   :  { %v2131_v56 = vmul.f32 %v2129_v33, %v2129_v33 }
0x14ea   :  { %v2133_v48 = vsel %vm332_vm9, %v2131_v56, 0.0 }
0x14eb   :  { %v2126_v46 = vpop.xlane.xlu1 %2125  ;;  %2134 = vadd.xlane.f32.xlu2 %v2133_v48 }
0x14ec   :  { %v2128_v49 = vmul.f32 %v2126_v46, %v3711_v26 }
0x14ee   :  { %v2130_v28 = vsub.f32 %v2120_v32, %v2128_v49 }
0x14f0   :  { %v2132_v27 = vmul.f32 %v2130_v28, %v2130_v28 }
0x14f2   :  { %v2136_v50 = vsel %vm332_vm9, %v2132_v27, 0.0 }
0x14f3   :  { %2137 = vadd.xlane.f32.xlu1 %v2136_v50 }
0x155e   :  { %v2135_v12 = vpop.xlane.xlu2 %2134 }
0x155f   :  { %v2139_v58 = vmul.f32 %v2135_v12, %v3711_v26 }
0x1561   :  { %v2141_v59 = vadd.f32 1e-05, %v2139_v58 }
0x1563   :  { %3204 = vrsqrt.f32 %v2141_v59  ;;  %vm2149_vm14 = vweird.f32 %v2141_v59 }
0x1566   :  { %v2138_v47 = vpop.xlane.xlu1 %2137 }
0x1567   :  { %v2140_v63 = vmul.f32 %v2138_v47, %v3711_v26 }
0x1569   :  { %v3205_v57 = vpop.eup %3204  ;;  %v2142_v44 = vadd.f32 1e-05, %v2140_v63 }
0x156a   :  { %v2144_v55 = vmul.f32 %v3205_v57, %v2141_v59  ;;  %vm2150_vm13 = vweird.f32 %v3205_v57 }
0x156b   :  { %3206 = vrsqrt.f32 %v2142_v44  ;;  %vm2151_vm15 = vmor %vm2149_vm14, %vm2150_vm13  ;;  %vm2159_vm2 = vweird.f32 %v2142_v44  ;;  %vm187_vm13 = vcmp.eq.f32.partialorder %v3385_v61, inf  ;;  %vm189_vm14 = vcmp.eq.f32.partialorder %v3385_v61, 0.0 }
0x156c   :  { %v2145_v19 = vmul.f32 %v3205_v57, %v2144_v55 }
0x156e   :  { %v2146_v16 = vmul.f32 0.5, %v2145_v19 }
0x1570   :  { %v2147_v39 = vsub.f32 1.5, %v2146_v16 }
0x1571   :  { %v3207_v20 = vpop.eup %3206 }
0x1572   :  { %v2148_v0 = vmul.f32 %v3205_v57, %v2147_v39  ;;  %v2154_v24 = vmul.f32 %v3207_v20, %v2142_v44  ;;  %vm2160_vm1 = vweird.f32 %v3207_v20 }
0x1573   :  { %vm2161_vm3 = vmor %vm2159_vm2, %vm2160_vm1 }
0x1574   :  { %v2155_v22 = vmul.f32 %v3207_v20, %v2154_v24  ;;  %v2152_v4 = vsel %vm2151_vm15, %v3205_v57, %v2148_v0  ;;  %vm2348_vm15 = vcmask 1040384  }
0x1575   :  { %v2163_v34 = vmul.f32 %v2152_v4, %v2129_v33  ;;  %v50_v4 = vld [vmem:[%s4526_s10] sm:$0x7] }
0x1576   :  { %v2156_v35 = vmul.f32 0.5, %v2155_v22 }
0x1577   :  { %v2166_v6 = vmul.f32 %v2165_v2, %v2163_v34  ;;  %v2273_v34 = vmul.f32 %v3368_v29, %v50_v4 }
0x1578   :  { %v2157_v41 = vsub.f32 1.5, %v2156_v35  ;;  %v3275_v35 = vmov 0  }
0x1579   :  { %v2169_v40 = vadd.f32 %v2168_v45, %v2166_v6  ;;  %3151 = vset.pattern.permute.xlu0 %v3275_v35  ;;  %v2275_v6 = vsel %vm2274_vm11, %v2273_v34, 0.0 }
0x157a   :  { %v2158_v51 = vmul.f32 %v3207_v20, %v2157_v41 }
0x157b   :  { %v2171_v36 = vsel %vm332_vm9, %v2169_v40, 0.0 }
0x157c   :  { %2172 = vadd.xlane.f32.xlu2 %v2171_v36  ;;  %v2162_v37 = vsel %vm2161_vm3, %v3207_v20, %v2158_v51  ;;  %v98_v51 = vand.u32 2147483648, %v3383_v60 }
0x157d   :  { %v2164_v53 = vmul.f32 %v2162_v37, %v2130_v28 }
0x157f   :  { %v2167_v52 = vmul.f32 %v2165_v2, %v2164_v53  ;;  %v2230_v53 = vperm.slane %v50_v4, 0 }
0x1581   :  { %v2170_v62 = vadd.f32 %v2168_v45, %v2167_v52  ;;  %v2313_v45 = vmul.f32 %v3370_v30, %v50_v4  ;;  %v186_v30 = vmul.f32 %v3395_v9, %v3385_v61  ;;  %v190_v52 = vand.u32 2147483648, %v3385_v61 }
0x1583   :  { %v2174_v10 = vsel %vm332_vm9, %v2170_v62, 0.0  ;;  %v2314_v41 = vsel %vm2274_vm11, %v2313_v45, 0.0 }
0x1584   :  { %2175 = vadd.xlane.f32.xlu1 %v2174_v10 }
0x158c   :  { %2315 = vadd.xlane.f32.xlu1 %v2314_v41 }
0x15ef   :  { %v2173_v1 = vpop.xlane.xlu2 %2172 }
0x15f0   :  { %v2177_v13 = vmul.f32 %v2173_v1, %v3711_v26 }
0x15f2   :  { %v2179_v38 = vsub.f32 %v2169_v40, %v2177_v13  ;;  %v94_v40 = vmul.f32 %v3393_v8, %v3383_v60  ;;  %v188_v8 = vsel %vm187_vm13, %v3385_v61, %v186_v30 }
0x15f3   :  { %v191_v13 = vsel %vm189_vm14, %v190_v52, %v188_v8 }
0x15f4   :  { %v2181_v3 = vmul.f32 %v2179_v38, %v2179_v38 }
0x15f6   :  { %v2183_v54 = vsel %vm332_vm9, %v2181_v3, 0.0 }
0x15f7   :  { %v2176_v5 = vpop.xlane.xlu1 %2175  ;;  %2184 = vadd.xlane.f32.xlu2 %v2183_v54 }
0x15f8   :  { %v2178_v14 = vmul.f32 %v2176_v5, %v3711_v26 }
0x15fa   :  { %v2180_v7 = vsub.f32 %v2170_v62, %v2178_v14 }
0x15fc   :  { %v2182_v11 = vmul.f32 %v2180_v7, %v2180_v7 }
0x15fe   :  { %v2186_v15 = vsel %vm332_vm9, %v2182_v11, 0.0 }
0x15ff   :  { %2187 = vadd.xlane.f32.xlu0 %v2186_v15  ;;  %2276 = vadd.xlane.f32.xlu2 %v2275_v6  ;;  %v2316_v5 = vpop.xlane.xlu1 %2315 }
0x1613   :  { %2307 = vperm.xlu0 %3151, %v50_v4  }
0x166a   :  { %v2185_v18 = vpop.xlane.xlu2 %2184 }
0x166b   :  { %v2189_v25 = vmul.f32 %v2185_v18, %v3711_v26 }
0x166d   :  { %v2191_v32 = vadd.f32 1e-05, %v2189_v25 }
0x166f   :  { %3208 = vrsqrt.f32 %v2191_v32  ;;  %vm2199_vm5 = vweird.f32 %v2191_v32 }
0x1672   :  { %v2188_v42 = vpop.xlane.xlu0 %2187  ;;  %v2277_v14 = vpop.xlane.xlu2 %2276 }
0x1673   :  { %v2190_v43 = vmul.f32 %v2188_v42, %v3711_v26  ;;  %v3246_v26 = vld [vmem:[%s4524_s8] sm:$0x7]  ;;  %v2281_v11 = vrot.slane %v2277_v14, 1  ;;  %s3276_s8 = smov [#allocation2]  }
0x1674   :  { %v2215_v57 = vperm.slane %v3246_v26, 1  ;;  %v2218_v16 = vperm.slane %v3246_v26, 2  ;;  %s2357_s10 = sshll.u32 %s3276_s8, 4  ;;  %s2358_s10 = int_to_ptr.vmem [resolvable:$true] %s2357_s10 }
0x1675   :  { %v3209_v33 = vpop.eup %3208  ;;  %v2192_v56 = vadd.f32 1e-05, %v2190_v43 }
0x1676   :  { %v2194_v48 = vmul.f32 %v3209_v33, %v2191_v32  ;;  %vm2200_vm4 = vweird.f32 %v3209_v33 }
0x1677   :  { %3210 = vrsqrt.f32 %v2192_v56  ;;  %vm2201_vm6 = vmor %vm2199_vm5, %vm2200_vm4  ;;  %vm2209_vm8 = vweird.f32 %v2192_v56 }
0x1678   :  { %v2195_v46 = vmul.f32 %v3209_v33, %v2194_v48 }
0x167a   :  { %v2196_v49 = vmul.f32 0.5, %v2195_v46 }
0x167c   :  { %v2197_v28 = vsub.f32 1.5, %v2196_v49 }
0x167d   :  { %v3211_v27 = vpop.eup %3210 }
0x167e   :  { %v2198_v50 = vmul.f32 %v3209_v33, %v2197_v28  ;;  %v2204_v12 = vmul.f32 %v3211_v27, %v2192_v56  ;;  %vm2210_vm7 = vweird.f32 %v3211_v27 }
0x167f   :  { %vm2211_vm10 = vmor %vm2209_vm8, %vm2210_vm7 }
0x1680   :  { %v2205_v58 = vmul.f32 %v3211_v27, %v2204_v12  ;;  %v2202_v59 = vsel %vm2201_vm6, %v3209_v33, %v2198_v50 }
0x1681   :  { %v2213_v44 = vmul.f32 %v2202_v59, %v2179_v38 }
0x1682   :  { %v2206_v47 = vmul.f32 0.5, %v2205_v58 }
0x1683   :  { %v2216_v39 = vmul.f32 %v2215_v57, %v2213_v44 }
0x1684   :  { %v2207_v63 = vsub.f32 1.5, %v2206_v47 }
0x1685   :  { %v2219_v24 = vadd.f32 %v2218_v16, %v2216_v39  ;;  %v2308_v61 = vpop.permute.xlu0 %2307 }
0x1686   :  { %v2208_v55 = vmul.f32 %v3211_v27, %v2207_v63  ;;  %v2309_v17 = vrot.slane %v2308_v61, 2 }
0x1688   :  { %v2212_v19 = vsel %vm2211_vm10, %v3211_v27, %v2208_v55 }
0x1689   :  { %v2214_v20 = vmul.f32 %v2212_v19, %v2180_v7  ;;  %v2320_v7 = vrot.slane %v2316_v5, 1 }
0x168b   :  { %v2217_v0 = vmul.f32 %v2215_v57, %v2214_v20 }
0x168d   :  { %v2220_v2 = vadd.f32 %v2218_v16, %v2217_v0 }
0x168f   :  { %v2221_v22 = vpack.c.bf16 %v2220_v2, %v2219_v24 }
0x1691   :  { %3016 = vmatmul.msk.bf16.vlgmr.msra.gmra.mxu2 %vm332_vm9, %v2221_v22  ;;  %vm95_vm9 = vcmp.eq.f32.partialorder %v3383_v60, inf }
0x1692   :  { %v96_v36 = vsel %vm95_vm9, %v3383_v60, %v94_v40  ;;  %v2312_v60 = vmul.f32 %v191_v13, %v50_v4 }
0x1693   :  { %v99_v29 = vsel %vm97_vm12, %v98_v51, %v96_v36 }
0x1694   :  { %v2272_v37 = vmul.f32 %v99_v29, %v50_v4  ;;  %v2318_v9 = vrot.slane %v2312_v60, 1 }
0x1696   :  { %v2279_v10 = vrot.slane %v2272_v37, 1 }
0x1714   :  { %v2267_v62 = vpop.f32.mrf.mxu2 }
0x1715   :  { %v2268_v1 = vadd.f32 %v2267_v62, %v2230_v53 }
0x1717   :  { %2300 = vmatpush.msrb.mxu0 %v2268_v1 }
0x1718   :  { %3017 = vmatmul.msk.f32.vlgmr.msrb.gmra.mxu0 %vm55_vm0, %v2279_v10 }
0x171c   :  { %v2269_v38 = vpop.f32.mrf.mxu2 }
0x171d   :  { %v2270_v3 = vadd.f32 %v2269_v38, %v2230_v53 }
0x171f   :  { %2339 = vmatpush.msra.mxu0 %v2270_v3 }
0x1720   :  { %3018 = vmatmul.msk.f32.vlgmr.msra.gmra.mxu0 %vm55_vm0, %v2318_v9  ;;  %vm2350_vm0 = vcmask 58368  }
0x1795   :  { %v2302_v54 = vpop.f32.mrf.mxu0 }
0x1796   :  { %v2303_v18 = vadd.f32 %v2302_v54, %v2281_v11 }
0x1798   :  { %v2311_v32 = vadd.f32 %v2309_v17, %v2303_v18 }
0x179d   :  { %v2341_v15 = vpop.f32.mrf.mxu0 }
0x179e   :  { %v2342_v21 = vadd.f32 %v2341_v15, %v2320_v7 }
0x17a0   :  { %v2344_v23 = vadd.f32 %v2342_v21, %v2309_v17 }
0x17a2   :  { %v2346_v25 = vrot.slane %v2344_v23, 7 }
0x17a4   :  { %v2349_v31 = vsel %vm2348_vm15, %v2311_v32, %v2346_v25 }
0x17a5   :  { %2351 = vst.msk [vmem:[#allocation2] sm:$0x3] %vm2350_vm0, %v2349_v31 }
0x17a6   :  { %2362 = dma.vmem_to_hbm [thread:$0]  %s2358_s10, 32, %s2360_s17, [#allocation3]  }
0x17a7   :  { %3271 = dma.done.wait [#allocation3], 32  }
0x17a8   :  { %3272 = vsyncadd [#allocation3], 4294967264 }
0x17a9   :  { %2367 = vsyncpa [#allocation3], 1 }

</bundles_post_ra>
